<compile_context>
chip_gen: v7x
topology: tpu7x:2x2x1
jax: 0.10.0
libtpu: 0.0.40
codegen_flags: <defaults>
</compile_context>

<pallas_src>
import functools

import jax
import jax.numpy as jnp
from jax.experimental import pallas as pl
from jax.experimental.pallas import tpu as pltpu


def _round_up(n, m):
    return -(-n // m) * m


# ---------------------------------------------------------------------------
# In-kernel helpers (traced inside Pallas kernels)
# ---------------------------------------------------------------------------
def _layer_norm(x, g, b, eps=1e-5):
    mu = jnp.mean(x, axis=-1, keepdims=True)
    var = jnp.mean((x - mu) ** 2, axis=-1, keepdims=True)
    return (x - mu) * jax.lax.rsqrt(var + eps) * g + b


def _lstm_step(gx, h, c, w_hh, H):
    # gx already holds x @ W_ih + b (hoisted out of the time loop).
    gates = gx + jnp.dot(h, w_hh, preferred_element_type=jnp.float32)  # (rows, 4H)
    i = jax.nn.sigmoid(gates[:, 0:H])
    f = jax.nn.sigmoid(gates[:, H:2 * H])
    g = jnp.tanh(gates[:, 2 * H:3 * H])
    o = jax.nn.sigmoid(gates[:, 3 * H:4 * H])
    c_new = f * c + i * g
    return o * jnp.tanh(c_new), c_new


# ---------------------------------------------------------------------------
# Kernel: both trajectory-encoder LSTMs, full time loop, one launch
# ---------------------------------------------------------------------------
def _dual_lstm_kernel(xt_ref, xo_ref, wiht_ref, whht_ref, bt_ref,
                      wiho_ref, whho_ref, bo_ref, ht_out_ref, ho_out_ref, *, T):
    Bt, H = ht_out_ref.shape
    Bo = ho_out_ref.shape[0]
    # Hoisted input projections: ONE lane-dense matmul per LSTM covering all T
    # steps (replaces 2*T tiny per-step matmuls of the previous version).
    gx_t = (jnp.dot(xt_ref[...], wiht_ref[...],
                    preferred_element_type=jnp.float32) + bt_ref[...])   # (T*Bt, 4H)
    gx_o = (jnp.dot(xo_ref[...], wiho_ref[...],
                    preferred_element_type=jnp.float32) + bo_ref[...])   # (T*Bo, 4H)
    whh_t = whht_ref[...]
    whh_o = whho_ref[...]
    ht = jnp.zeros((Bt, H), jnp.float32)
    ct = jnp.zeros((Bt, H), jnp.float32)
    ho = jnp.zeros((Bo, H), jnp.float32)
    co = jnp.zeros((Bo, H), jnp.float32)
    # T is small & static -> trace-time unroll; h/c stay in vregs/VMEM.
    # Bt/Bo are host-padded multiples of 8 -> all sublane slices are 8-aligned.
    for t in range(T):
        ht, ct = _lstm_step(gx_t[t * Bt:(t + 1) * Bt], ht, ct, whh_t, H)
        ho, co = _lstm_step(gx_o[t * Bo:(t + 1) * Bo], ho, co, whh_o, H)
    ht_out_ref[...] = ht
    ho_out_ref[...] = ho


def dual_lstm_pallas(target_traj, other_trajs_flat, p_t, p_o, H):
    """target_traj: (B, T, Din); other_trajs_flat: (B*A, T, Din)."""
    B, T, Din = target_traj.shape
    BA = other_trajs_flat.shape[0]
    Bpt = _round_up(B, 8)
    Bpo = _round_up(BA, 8)
    # Time-major, batch padded to a multiple of 8, flattened to (T*Bp, Din)
    # so the per-step slices inside the kernel are 8-aligned sublane windows.
    xt = jnp.transpose(target_traj, (1, 0, 2))
    xo = jnp.transpose(other_trajs_flat, (1, 0, 2))
    xt = jnp.pad(xt, ((0, 0), (0, Bpt - B), (0, 0))).reshape(T * Bpt, Din)
    xo = jnp.pad(xo, ((0, 0), (0, Bpo - BA), (0, 0))).reshape(T * Bpo, Din)
    ht, ho = pl.pallas_call(
        functools.partial(_dual_lstm_kernel, T=T),
        out_shape=[jax.ShapeDtypeStruct((Bpt, H), jnp.float32),
                   jax.ShapeDtypeStruct((Bpo, H), jnp.float32)],
    )(xt, xo,
      p_t["w_ih"], p_t["w_hh"], p_t["b"].reshape(1, 4 * H),
      p_o["w_ih"], p_o["w_hh"], p_o["b"].reshape(1, 4 * H))
    return ht[:B], ho[:BA]


# ---------------------------------------------------------------------------
# Kernel: one fully fused post-norm transformer encoder layer (per batch row)
# ---------------------------------------------------------------------------
def _tf_layer_kernel(x_ref, mask_ref, wqkv_ref, bqkv_ref, wo_ref, bo_ref,
                     ln1g_ref, ln1b_ref, w1_ref, b1_ref, w2_ref, b2_ref,
                     ln2g_ref, ln2b_ref, o_ref, *, nheads):
    N, D = x_ref.shape[1], x_ref.shape[2]
    dh = D // nheads
    scale = 1.0 / (dh ** 0.5)
    x = x_ref[0]                                        # (N, D)
    mask_add = mask_ref[0] * (-1e9)                     # (1, N) additive key mask
    # Fused QKV projection -> lane-dense (N, 3D) slab.
    qkv = (jnp.dot(x, wqkv_ref[...], preferred_element_type=jnp.float32)
           + bqkv_ref[...])
    wo = wo_ref[...]
    attn = jnp.zeros((N, D), jnp.float32)
    # Per-head attention with the output projection folded into the loop
    # (no trailing concat).  TODO(synk): heads are unrolled instead of a
    # batched dot_general because the (N,D)->(heads,N,dh) minor-dim reshape
    # has no tile-aligned layout at these tiny shapes.
    for h in range(nheads):
        qh = qkv[:, h * dh:(h + 1) * dh]
        kh = qkv[:, D + h * dh:D + (h + 1) * dh]
        vh = qkv[:, 2 * D + h * dh:2 * D + (h + 1) * dh]
        s = jax.lax.dot_general(qh, kh, (((1,), (1,)), ((), ())),
                                preferred_element_type=jnp.float32)   # (N, N)
        p = jax.nn.softmax(s * scale + mask_add, axis=-1)
        oh = jnp.dot(p, vh, preferred_element_type=jnp.float32)       # (N, dh)
        attn = attn + jnp.dot(oh, wo[h * dh:(h + 1) * dh, :],
                              preferred_element_type=jnp.float32)
    attn = attn + bo_ref[...]
    x1 = _layer_norm(x + attn, ln1g_ref[...], ln1b_ref[...])
    ff = jnp.maximum(jnp.dot(x1, w1_ref[...],
                             preferred_element_type=jnp.float32) + b1_ref[...], 0.0)
    ff = jnp.dot(ff, w2_ref[...], preferred_element_type=jnp.float32) + b2_ref[...]
    o_ref[0] = _layer_norm(x1 + ff, ln2g_ref[...], ln2b_ref[...])


def transformer_layer_pallas(x, maskf, p, nheads):
    B, N, D = x.shape
    FF = p["w1"].shape[1]
    rep = lambda b: (0, 0)
    return pl.pallas_call(
        functools.partial(_tf_layer_kernel, nheads=nheads),
        grid=(B,),
        in_specs=[
            pl.BlockSpec((1, N, D), lambda b: (b, 0, 0)),
            pl.BlockSpec((1, 1, N), lambda b: (b, 0, 0)),
            pl.BlockSpec((D, 3 * D), rep),
            pl.BlockSpec((1, 3 * D), rep),
            pl.BlockSpec((D, D), rep),
            pl.BlockSpec((1, D), rep),
            pl.BlockSpec((1, D), rep),
            pl.BlockSpec((1, D), rep),
            pl.BlockSpec((D, FF), rep),
            pl.BlockSpec((1, FF), rep),
            pl.BlockSpec((FF, D), rep),
            pl.BlockSpec((1, D), rep),
            pl.BlockSpec((1, D), rep),
            pl.BlockSpec((1, D), rep),
        ],
        out_specs=pl.BlockSpec((1, N, D), lambda b: (b, 0, 0)),
        out_shape=jax.ShapeDtypeStruct((B, N, D), jnp.float32),
        compiler_params=pltpu.CompilerParams(dimension_semantics=("parallel",)),
    )(x, maskf,
      p["wqkv"], p["bqkv"].reshape(1, 3 * D),
      p["wo"], p["bo"].reshape(1, D),
      p["ln1_g"].reshape(1, D), p["ln1_b"].reshape(1, D),
      p["w1"], p["b1"].reshape(1, FF),
      p["w2"], p["b2"].reshape(1, D),
      p["ln2_g"].reshape(1, D), p["ln2_b"].reshape(1, D))


# ---------------------------------------------------------------------------
# Kernel: generic tiled linear (used for conv1-as-matmul)
# ---------------------------------------------------------------------------
def _linear_kernel(x_ref, w_ref, b_ref, o_ref, *, act):
    y = (jnp.dot(x_ref[...], w_ref[...], preferred_element_type=jnp.float32)
         + b_ref[...])
    if act == "relu":
        y = jnp.maximum(y, 0.0)
    o_ref[...] = y


def linear_pallas(x, w, b, act=None, tile_m=512):
    """y = act(x @ w + b); M-tiled so it stays VMEM-friendly when scaled up."""
    M, K = x.shape
    _, N = w.shape
    tm = min(M, tile_m)
    if M % tm != 0:
        tm = M
    return pl.pallas_call(
        functools.partial(_linear_kernel, act=act),
        grid=(M // tm,),
        in_specs=[pl.BlockSpec((tm, K), lambda i: (i, 0)),
                  pl.BlockSpec((K, N), lambda i: (0, 0)),
                  pl.BlockSpec((1, N), lambda i: (0, 0))],
        out_specs=pl.BlockSpec((tm, N), lambda i: (i, 0)),
        out_shape=jax.ShapeDtypeStruct((M, N), jnp.float32),
        compiler_params=pltpu.CompilerParams(dimension_semantics=("parallel",)),
    )(x, w, b.reshape(1, N))


# ---------------------------------------------------------------------------
# Kernel: grid-encoder tail (conv2 + relu + token attention + pool + fc)
# ---------------------------------------------------------------------------
def _grid_tail_kernel(col_ref, cw_ref, cb_ref, wqkv_ref, bqkv_ref,
                      fcw_ref, fcb_ref, o_ref, *, nheads):
    N = col_ref.shape[1]
    D = cw_ref.shape[1]
    dh = D // nheads
    scale = 1.0 / (dh ** 0.5)
    col = col_ref[0]                                                  # (N, 9*C1)
    tok = jnp.maximum(jnp.dot(col, cw_ref[...],
                              preferred_element_type=jnp.float32) + cb_ref[...],
                      0.0)                                            # conv2 + relu
    qkv = (jnp.dot(tok, wqkv_ref[...], preferred_element_type=jnp.float32)
           + bqkv_ref[...])
    fcw = fcw_ref[...]
    pool = jnp.full((1, N), 1.0 / N, jnp.float32)       # mean-pool as a matmul
    out = jnp.zeros((1, fcw.shape[1]), jnp.float32)
    for h in range(nheads):
        qh = qkv[:, h * dh:(h + 1) * dh]
        kh = qkv[:, D + h * dh:D + (h + 1) * dh]
        vh = qkv[:, 2 * D + h * dh:2 * D + (h + 1) * dh]
        s = jax.lax.dot_general(qh, kh, (((1,), (1,)), ((), ())),
                                preferred_element_type=jnp.float32)
        p = jax.nn.softmax(s * scale, axis=-1)
        oh = jnp.dot(p, vh, preferred_element_type=jnp.float32)         # (N, dh)
        pooled = jnp.dot(pool, oh, preferred_element_type=jnp.float32)  # (1, dh)
        out = out + jnp.dot(pooled, fcw[h * dh:(h + 1) * dh, :],
                            preferred_element_type=jnp.float32)
    o_ref[0] = jnp.maximum(out + fcb_ref[...], 0.0)


def im2col_nhwc(x, kh, kw, stride, pad):
    """Host-side patch extraction (pure XLA data movement, NHWC layout)."""
    B, H, W, C = x.shape
    xp = jnp.pad(x, ((0, 0), (pad, pad), (pad, pad), (0, 0)))
    Ho = (H + 2 * pad - kh) // stride + 1
    Wo = (W + 2 * pad - kw) // stride + 1
    cols = []
    for i in range(kh):
        for j in range(kw):
            cols.append(xp[:, i:i + stride * Ho:stride,
                           j:j + stride * Wo:stride, :])
    col = jnp.concatenate(cols, axis=-1)                # (B, Ho, Wo, kh*kw*C)
    return col.reshape(B * Ho * Wo, kh * kw * C), Ho, Wo


def grid_encoder(grid_nchw, p, nheads, G):
    B = grid_nchw.shape[0]
    x = jnp.transpose(grid_nchw, (0, 2, 3, 1))          # NHWC, features on lanes
    # conv1: Cin -> 16, 3x3, stride 2, pad 1 (im2col + Pallas matmul + relu)
    col1, Ho, Wo = im2col_nhwc(x, 3, 3, 2, 1)
    y1 = linear_pallas(col1, p["conv1_w"], p["conv1_b"], act="relu")
    # conv2 + relu + token attention + mean-pool + fc + relu : ONE fused kernel.
    # TODO(synk): the patch extraction (pad + 9 strided slices) stays host-side
    # XLA; in-kernel strided minor-dim gathers are not safely expressible here.
    col2, Ho2, Wo2 = im2col_nhwc(y1.reshape(B, Ho, Wo, 16), 3, 3, 2, 1)
    N2 = Ho2 * Wo2
    Kc = col2.shape[1]
    col2 = col2.reshape(B, N2, Kc)
    D = p["conv2_w"].shape[1]
    rep = lambda b: (0, 0)
    out = pl.pallas_call(
        functools.partial(_grid_tail_kernel, nheads=nheads),
        grid=(B,),
        in_specs=[
            pl.BlockSpec((1, N2, Kc), lambda b: (b, 0, 0)),
            pl.BlockSpec((Kc, D), rep),
            pl.BlockSpec((1, D), rep),
            pl.BlockSpec((D, 3 * D), rep),
            pl.BlockSpec((1, 3 * D), rep),
            pl.BlockSpec((D, G), rep),
            pl.BlockSpec((1, G), rep),
        ],
        out_specs=pl.BlockSpec((1, 1, G), lambda b: (b, 0, 0)),
        out_shape=jax.ShapeDtypeStruct((B, 1, G), jnp.float32),
        compiler_params=pltpu.CompilerParams(dimension_semantics=("parallel",)),
    )(col2, p["conv2_w"], p["conv2_b"].reshape(1, D),
      p["wqkv"], p["bqkv"].reshape(1, 3 * D),
      p["fc_w"], p["fc_b"].reshape(1, G))
    return out[:, 0, :]


# ---------------------------------------------------------------------------
# Kernel: fused mixture-density head (fc1 -> fc2 -> pi/mu/sigma + activations)
# ---------------------------------------------------------------------------
def _mdn_kernel(x_ref, w1_ref, b1_ref, w2_ref, b2_ref,
                piw_ref, pib_ref, muw_ref, mub_ref, sgw_ref, sgb_ref,
                pi_ref, mu_ref, sg_ref):
    K = piw_ref.shape[0]
    h = jnp.maximum(jnp.dot(x_ref[...], w1_ref[...],
                            preferred_element_type=jnp.float32) + b1_ref[...], 0.0)
    h = jnp.maximum(jnp.dot(h, w2_ref[...],
                            preferred_element_type=jnp.float32) + b2_ref[...], 0.0)
    mu_ref[...] = (jnp.dot(h, muw_ref[...], preferred_element_type=jnp.float32)
                   + mub_ref[...])
    # TODO(synk): exp() is unclamped (matches reference MDN convention).
    sg_ref[...] = jnp.exp(jnp.dot(h, sgw_ref[...],
                                  preferred_element_type=jnp.float32)
                          + sgb_ref[...])
    # Per-component logits are produced component-major so the softmax over K
    # is pure element-wise work (no unaligned lane slicing).
    logits = [jnp.dot(h, piw_ref[k], preferred_element_type=jnp.float32)
              + pib_ref[k] for k in range(K)]
    m = logits[0]
    for k in range(1, K):
        m = jnp.maximum(m, logits[k])
    exps = [jnp.exp(l - m) for l in logits]
    s = exps[0]
    for k in range(1, K):
        s = s + exps[k]
    inv = 1.0 / s
    for k in range(K):
        pi_ref[k] = exps[k] * inv


def mdn_pallas(x, p, T, K, OD):
    B = x.shape[0]
    nmu = T * K * OD
    pi_kbt, mu_flat, sg_flat = pl.pallas_call(
        _mdn_kernel,
        out_shape=[jax.ShapeDtypeStruct((K, B, T), jnp.float32),
                   jax.ShapeDtypeStruct((B, nmu), jnp.float32),
                   jax.ShapeDtypeStruct((B, nmu), jnp.float32)],
    )(x, p["fc1_w"], p["fc1_b"].reshape(1, -1),
      p["fc2_w"], p["fc2_b"].reshape(1, -1),
      p["pi_w"], p["pi_b"].reshape(K, 1, T),
      p["mu_w"], p["mu_b"].reshape(1, -1),
      p["sig_w"], p["sig_b"].reshape(1, -1))
    pi = jnp.transpose(pi_kbt, (1, 2, 0))               # (B, T, K)
    mu = mu_flat.reshape(B, T, K, OD)
    sigma = sg_flat.reshape(B, T, K, OD)
    return pi, mu, sigma


# ---------------------------------------------------------------------------
# Full forward
# ---------------------------------------------------------------------------
def context_mdn_forward(params, cfg, target_traj, other_trajs,
                        padding_mask, occupancy_grid):
    B, A, T, Din = other_trajs.shape
    H = cfg["lstm_hidden_size"]
    # grid features (2 kernels total)
    grid_features = grid_encoder(occupancy_grid, params["grid"],
                                 cfg["grid_head_size"], cfg["grid_feature_size"])
    # both trajectory encoders in ONE kernel (hoisted input projections)
    target_emb, other_emb_flat = dual_lstm_pallas(
        target_traj, other_trajs.reshape(B * A, T, Din),
        params["target_lstm"], params["others_lstm"], H)
    other_emb = other_emb_flat.reshape(B, A, H)
    # social transformer over [target, others]
    all_emb = jnp.concatenate([target_emb[:, None, :], other_emb], axis=1)
    maskf = padding_mask.astype(jnp.float32)[:, None, :]                # (B,1,1+A)
    x = all_emb
    for layer_p in params["social"]:
        x = transformer_layer_pallas(x, maskf, layer_p, cfg["tf_head_size"])
    social_target = x[:, 0, :]
    # fused MDN head
    mdn_in = jnp.concatenate([social_target, grid_features], axis=1)
    return mdn_pallas(mdn_in, params["mdn"], cfg["forecast_horizon"],
                      cfg["mdn_num_gaussians"], cfg["mdn_output_dim"])


# ---------------------------------------------------------------------------
# Deterministic parameter init (synthetic weights)
# ---------------------------------------------------------------------------
def init_params(key, cfg):
    keys = iter(jax.random.split(key, 128))

    def w(*shape, scale=0.1):
        return (scale * jax.random.normal(next(keys), shape)).astype(jnp.float32)

    def z(*shape):
        return jnp.zeros(shape, jnp.float32)

    Din = cfg["lstm_input_dim"]; H = cfg["lstm_hidden_size"]
    D = cfg["tf_model_dim"]; FF = cfg["tf_forward_dim"]
    G = cfg["grid_feature_size"]; Cin = cfg["grid_input_dim"]
    MH = cfg["mdn_hidden_size"]; T = cfg["forecast_horizon"]
    K = cfg["mdn_num_gaussians"]; OD = cfg["mdn_output_dim"]

    def lstm_p():
        # single bias = b_ih + b_hh of the PyTorch LSTM convention
        return {"w_ih": w(Din, 4 * H), "w_hh": w(H, 4 * H), "b": z(4 * H)}

    def tf_layer_p():
        return {"wqkv": w(D, 3 * D), "bqkv": z(3 * D),
                "wo": w(D, D), "bo": z(D),
                "ln1_g": jnp.ones((D,), jnp.float32), "ln1_b": z(D),
                "w1": w(D, FF), "b1": z(FF), "w2": w(FF, D), "b2": z(D),
                "ln2_g": jnp.ones((D,), jnp.float32), "ln2_b": z(D)}

    grid_p = {"conv1_w": w(9 * Cin, 16), "conv1_b": z(16),
              "conv2_w": w(9 * 16, 32), "conv2_b": z(32),
              "wqkv": w(32, 3 * 32), "bqkv": z(3 * 32),
              "fc_w": w(32, G), "fc_b": z(G)}

    mdn_in = D + G
    mdn_p = {"fc1_w": w(mdn_in, MH), "fc1_b": z(MH),
             "fc2_w": w(MH, MH), "fc2_b": z(MH),
             "pi_w": w(K, MH, T), "pi_b": z(K, T),
             "mu_w": w(MH, T * K * OD), "mu_b": z(T * K * OD),
             "sig_w": w(MH, T * K * OD), "sig_b": z(T * K * OD)}

    return {"target_lstm": lstm_p(),
            "others_lstm": lstm_p(),
            "social": [tf_layer_p() for _ in range(cfg["tf_layer_size"])],
            "grid": grid_p,
            "mdn": mdn_p}


# ---------------------------------------------------------------------------
if __name__ == "__main__":
    cfg = dict(
        lstm_input_dim=2, lstm_hidden_size=32, lstm_layer_size=1,
        grid_feature_size=32, grid_input_dim=4, grid_head_size=4,
        tf_model_dim=32, tf_head_size=4, tf_layer_size=1, tf_forward_dim=64,
        mdn_hidden_size=64, mdn_output_dim=2, mdn_num_gaussians=3,
        forecast_horizon=5, dropout_prob=0.0,
    )

    B, A, T_hist = 2, 3, 8
    key = jax.random.PRNGKey(0)
    k_p, k1, k2, k3 = jax.random.split(key, 4)

    params = init_params(k_p, cfg)

    target_traj = jax.random.normal(k1, (B, T_hist, cfg["lstm_input_dim"]),
                                    dtype=jnp.float32)
    other_trajs = jax.random.normal(k2, (B, A, T_hist, cfg["lstm_input_dim"]),
                                    dtype=jnp.float32)
    # padding mask over [target] + others; True = padded token
    padding_mask = jnp.zeros((B, 1 + A), dtype=bool).at[1, A].set(True)
    occupancy_grid = jax.random.normal(k3, (B, cfg["grid_input_dim"], 16, 16),
                                       dtype=jnp.float32)  # NCHW

    fwd = jax.jit(lambda p, tt, ot, pm, og:
                  context_mdn_forward(p, cfg, tt, ot, pm, og))
    pi, mu, sigma = fwd(params, target_traj, other_trajs, padding_mask,
                        occupancy_grid)
    jax.block_until_ready((pi, mu, sigma))

    assert pi.shape == (B, cfg["forecast_horizon"], cfg["mdn_num_gaussians"])
    assert mu.shape == (B, cfg["forecast_horizon"], cfg["mdn_num_gaussians"],
                        cfg["mdn_output_dim"])
    assert sigma.shape == mu.shape
    print("KERNEL_OK")
</pallas_src>

<mosaic_0001>
module attributes {stable_mosaic.version = 11 : i64} {
  func.func @_linear_kernel(%arg0: i32, %arg1: memref<128x36xf32, #tpu.memory_space<vmem>>, %arg2: memref<36x16xf32, #tpu.memory_space<vmem>>, %arg3: memref<1x16xf32, #tpu.memory_space<vmem>>, %arg4: memref<128x16xf32, #tpu.memory_space<vmem>>) attributes {dimension_semantics = [#tpu.dimension_semantics<parallel>], iteration_bounds = array<i64: 1>, scalar_prefetch = 0 : i64, scratch_operands = 0 : i64, tpu.core_type = #tpu.core_type<tc>, window_params = [{transform_indices = @transform_0, window_bounds = array<i64: 128, 36>}, {pipeline_mode = #tpu.pipeline_mode<synchronous>, transform_indices = @transform_1, window_bounds = array<i64: 36, 16>}, {pipeline_mode = #tpu.pipeline_mode<synchronous>, transform_indices = @transform_2, window_bounds = array<i64: 1, 16>}, {transform_indices = @transform_3, window_bounds = array<i64: 128, 16>}]} {
    %c0 = arith.constant 0 : index
    %c0_0 = arith.constant 0 : index
    %0 = vector.load %arg1[%c0, %c0_0] : memref<128x36xf32, #tpu.memory_space<vmem>>, vector<128x36xf32>
    %c0_1 = arith.constant 0 : index
    %c0_2 = arith.constant 0 : index
    %1 = vector.load %arg2[%c0_1, %c0_2] : memref<36x16xf32, #tpu.memory_space<vmem>>, vector<36x16xf32>
    %cst = arith.constant dense<0.000000e+00> : vector<128x16xf32>
    %2 = tpu.matmul %0, %1, %cst {dimension_numbers = #tpu.dot_dimension_numbers<[1], [0], [0], [1], [0, 0, 1, 1], [], []>} : vector<128x36xf32>, vector<36x16xf32>, vector<128x16xf32> -> vector<128x16xf32>
    %c0_3 = arith.constant 0 : index
    %c0_4 = arith.constant 0 : index
    %3 = vector.load %arg3[%c0_3, %c0_4] : memref<1x16xf32, #tpu.memory_space<vmem>>, vector<1x16xf32>
    %4 = vector.broadcast %3 : vector<1x16xf32> to vector<128x16xf32>
    %5 = arith.addf %2, %4 : vector<128x16xf32>
    %cst_5 = arith.constant 0.000000e+00 : f32
    %6 = vector.broadcast %cst_5 : f32 to vector<128x16xf32>
    %7 = arith.maximumf %5, %6 : vector<128x16xf32>
    %c0_6 = arith.constant 0 : index
    %c0_7 = arith.constant 0 : index
    %8 = vector.load %arg4[%c0_6, %c0_7] : memref<128x16xf32, #tpu.memory_space<vmem>>, vector<128x16xf32>
    tpu.vector_store %arg4[%c0_6, %c0_7], %7 {strides = array<i32>} : memref<128x16xf32, #tpu.memory_space<vmem>>, vector<128x16xf32>,
    return
  }
  func.func @transform_0(%arg0: i32) -> (i32, i32) {
    %c0_i32 = arith.constant 0 : i32
    %c0_i32_0 = arith.constant 0 : i32
    return %arg0, %c0_i32 : i32, i32
  }
  func.func @transform_1(%arg0: i32) -> (i32, i32) {
    %c0_i32 = arith.constant 0 : i32
    %c0_i32_0 = arith.constant 0 : i32
    %c0_i32_1 = arith.constant 0 : i32
    return %c0_i32, %c0_i32_0 : i32, i32
  }
  func.func @transform_2(%arg0: i32) -> (i32, i32) {
    %c0_i32 = arith.constant 0 : i32
    %c0_i32_0 = arith.constant 0 : i32
    %c0_i32_1 = arith.constant 0 : i32
    return %c0_i32, %c0_i32_0 : i32, i32
  }
  func.func @transform_3(%arg0: i32) -> (i32, i32) {
    %c0_i32 = arith.constant 0 : i32
    %c0_i32_0 = arith.constant 0 : i32
    return %arg0, %c0_i32 : i32, i32
  }
}

module attributes {stable_mosaic.version = 11 : i64} {
  func.func @_grid_tail_kernel(%arg0: i32, %arg1: memref<1x16x144xf32, #tpu.memory_space<vmem>>, %arg2: memref<144x32xf32, #tpu.memory_space<vmem>>, %arg3: memref<1x32xf32, #tpu.memory_space<vmem>>, %arg4: memref<32x96xf32, #tpu.memory_space<vmem>>, %arg5: memref<1x96xf32, #tpu.memory_space<vmem>>, %arg6: memref<32x32xf32, #tpu.memory_space<vmem>>, %arg7: memref<1x32xf32, #tpu.memory_space<vmem>>, %arg8: memref<1x1x32xf32, #tpu.memory_space<vmem>>) attributes {dimension_semantics = [#tpu.dimension_semantics<parallel>], iteration_bounds = array<i64: 2>, scalar_prefetch = 0 : i64, scratch_operands = 0 : i64, tpu.core_type = #tpu.core_type<tc>, window_params = [{transform_indices = @transform_0, window_bounds = array<i64: 1, 16, 144>}, {pipeline_mode = #tpu.pipeline_mode<synchronous>, transform_indices = @transform_1, window_bounds = array<i64: 144, 32>}, {pipeline_mode = #tpu.pipeline_mode<synchronous>, transform_indices = @transform_2, window_bounds = array<i64: 1, 32>}, {pipeline_mode = #tpu.pipeline_mode<synchronous>, transform_indices = @transform_3, window_bounds = array<i64: 32, 96>}, {pipeline_mode = #tpu.pipeline_mode<synchronous>, transform_indices = @transform_4, window_bounds = array<i64: 1, 96>}, {pipeline_mode = #tpu.pipeline_mode<synchronous>, transform_indices = @transform_5, window_bounds = array<i64: 32, 32>}, {pipeline_mode = #tpu.pipeline_mode<synchronous>, transform_indices = @transform_6, window_bounds = array<i64: 1, 32>}, {transform_indices = @transform_7, window_bounds = array<i64: 1, 1, 32>}]} {
    %c0 = arith.constant 0 : index
    %c0_0 = arith.constant 0 : index
    %c0_1 = arith.constant 0 : index
    %0 = vector.load %arg1[%c0, %c0_0, %c0_1] : memref<1x16x144xf32, #tpu.memory_space<vmem>>, vector<1x16x144xf32>
    %1 = vector.shape_cast %0 : vector<1x16x144xf32> to vector<16x144xf32>
    %c0_2 = arith.constant 0 : index
    %c0_3 = arith.constant 0 : index
    %2 = vector.load %arg2[%c0_2, %c0_3] : memref<144x32xf32, #tpu.memory_space<vmem>>, vector<144x32xf32>
    %cst = arith.constant dense<0.000000e+00> : vector<16x32xf32>
    %3 = tpu.matmul %1, %2, %cst {dimension_numbers = #tpu.dot_dimension_numbers<[1], [0], [0], [1], [0, 0, 1, 1], [], []>} : vector<16x144xf32>, vector<144x32xf32>, vector<16x32xf32> -> vector<16x32xf32>
    %c0_4 = arith.constant 0 : index
    %c0_5 = arith.constant 0 : index
    %4 = vector.load %arg3[%c0_4, %c0_5] : memref<1x32xf32, #tpu.memory_space<vmem>>, vector<1x32xf32>
    %5 = vector.broadcast %4 : vector<1x32xf32> to vector<16x32xf32>
    %6 = arith.addf %3, %5 : vector<16x32xf32>
    %cst_6 = arith.constant 0.000000e+00 : f32
    %7 = vector.broadcast %cst_6 : f32 to vector<16x32xf32>
    %8 = arith.maximumf %6, %7 : vector<16x32xf32>
    %c0_7 = arith.constant 0 : index
    %c0_8 = arith.constant 0 : index
    %9 = vector.load %arg4[%c0_7, %c0_8] : memref<32x96xf32, #tpu.memory_space<vmem>>, vector<32x96xf32>
    %cst_9 = arith.constant dense<0.000000e+00> : vector<16x96xf32>
    %10 = tpu.matmul %8, %9, %cst_9 {dimension_numbers = #tpu.dot_dimension_numbers<[1], [0], [0], [1], [0, 0, 1, 1], [], []>} : vector<16x32xf32>, vector<32x96xf32>, vector<16x96xf32> -> vector<16x96xf32>
    %c0_10 = arith.constant 0 : index
    %c0_11 = arith.constant 0 : index
    %11 = vector.load %arg5[%c0_10, %c0_11] : memref<1x96xf32, #tpu.memory_space<vmem>>, vector<1x96xf32>
    %12 = vector.broadcast %11 : vector<1x96xf32> to vector<16x96xf32>
    %13 = arith.addf %10, %12 : vector<16x96xf32>
    %c0_12 = arith.constant 0 : index
    %c0_13 = arith.constant 0 : index
    %14 = vector.load %arg6[%c0_12, %c0_13] : memref<32x32xf32, #tpu.memory_space<vmem>>, vector<32x32xf32>
    %cst_14 = arith.constant 6.250000e-02 : f32
    %15 = vector.broadcast %cst_14 : f32 to vector<1x16xf32>
    %cst_15 = arith.constant 0.000000e+00 : f32
    %16 = vector.broadcast %cst_15 : f32 to vector<1x32xf32>
    %17 = vector.extract_strided_slice %13 {offsets = [0, 0], sizes = [16, 8], strides = [1, 1]} : vector<16x96xf32> to vector<16x8xf32>
    %18 = vector.extract_strided_slice %13 {offsets = [0, 32], sizes = [16, 8], strides = [1, 1]} : vector<16x96xf32> to vector<16x8xf32>
    %19 = vector.extract_strided_slice %13 {offsets = [0, 64], sizes = [16, 8], strides = [1, 1]} : vector<16x96xf32> to vector<16x8xf32>
    %cst_16 = arith.constant dense<0.000000e+00> : vector<16x16xf32>
    %20 = tpu.matmul %17, %18, %cst_16 {dimension_numbers = #tpu.dot_dimension_numbers<[1], [1], [0], [0], [0, 0, 1, 0], [], []>} : vector<16x8xf32>, vector<16x8xf32>, vector<16x16xf32> -> vector<16x16xf32>
    %cst_17 = arith.constant 0.353553385 : f32
    %21 = vector.broadcast %cst_17 : f32 to vector<16x16xf32>
    %22 = arith.mulf %20, %21 : vector<16x16xf32>
    %cst_18 = arith.constant dense<0xFF800000> : vector<16xf32>
    %23 = vector.multi_reduction <maximumf>, %22, %cst_18 [1] : vector<16x16xf32> to vector<16xf32>
    %cst_19 = arith.constant 0xFF800000 : f32
    %24 = vector.broadcast %cst_19 : f32 to vector<16xf32>
    %25 = arith.maximumf %24, %23 : vector<16xf32>
    %26 = vector.shape_cast %25 : vector<16xf32> to vector<16x1xf32>
    %27 = vector.broadcast %26 : vector<16x1xf32> to vector<16x16xf32>
    %28 = arith.subf %22, %27 : vector<16x16xf32>
    %29 = math.exp %28 : vector<16x16xf32>
    %cst_20 = arith.constant dense<0.000000e+00> : vector<16xf32>
    %30 = vector.multi_reduction <add>, %29, %cst_20 [1] : vector<16x16xf32> to vector<16xf32>
    %31 = vector.shape_cast %30 : vector<16xf32> to vector<16x1xf32>
    %32 = vector.broadcast %31 : vector<16x1xf32> to vector<16x16xf32>
    %33 = arith.divf %29, %32 : vector<16x16xf32>
    %cst_21 = arith.constant dense<0.000000e+00> : vector<16x8xf32>
    %34 = tpu.matmul %33, %19, %cst_21 {dimension_numbers = #tpu.dot_dimension_numbers<[1], [0], [0], [1], [0, 0, 1, 1], [], []>} : vector<16x16xf32>, vector<16x8xf32>, vector<16x8xf32> -> vector<16x8xf32>
    %cst_22 = arith.constant dense<0.000000e+00> : vector<1x8xf32>
    %35 = tpu.matmul %15, %34, %cst_22 {dimension_numbers = #tpu.dot_dimension_numbers<[1], [0], [0], [1], [0, 0, 1, 1], [], []>} : vector<1x16xf32>, vector<16x8xf32>, vector<1x8xf32> -> vector<1x8xf32>
    %36 = vector.extract_strided_slice %14 {offsets = [0, 0], sizes = [8, 32], strides = [1, 1]} : vector<32x32xf32> to vector<8x32xf32>
    %cst_23 = arith.constant dense<0.000000e+00> : vector<1x32xf32>
    %37 = tpu.matmul %35, %36, %cst_23 {dimension_numbers = #tpu.dot_dimension_numbers<[1], [0], [0], [1], [0, 0, 1, 1], [], []>} : vector<1x8xf32>, vector<8x32xf32>, vector<1x32xf32> -> vector<1x32xf32>
    %38 = arith.addf %16, %37 : vector<1x32xf32>
    %39 = vector.extract_strided_slice %13 {offsets = [0, 8], sizes = [16, 8], strides = [1, 1]} : vector<16x96xf32> to vector<16x8xf32>
    %40 = vector.extract_strided_slice %13 {offsets = [0, 40], sizes = [16, 8], strides = [1, 1]} : vector<16x96xf32> to vector<16x8xf32>
    %41 = vector.extract_strided_slice %13 {offsets = [0, 72], sizes = [16, 8], strides = [1, 1]} : vector<16x96xf32> to vector<16x8xf32>
    %cst_24 = arith.constant dense<0.000000e+00> : vector<16x16xf32>
    %42 = tpu.matmul %39, %40, %cst_24 {dimension_numbers = #tpu.dot_dimension_numbers<[1], [1], [0], [0], [0, 0, 1, 0], [], []>} : vector<16x8xf32>, vector<16x8xf32>, vector<16x16xf32> -> vector<16x16xf32>
    %cst_25 = arith.constant 0.353553385 : f32
    %43 = vector.broadcast %cst_25 : f32 to vector<16x16xf32>
    %44 = arith.mulf %42, %43 : vector<16x16xf32>
    %cst_26 = arith.constant dense<0xFF800000> : vector<16xf32>
    %45 = vector.multi_reduction <maximumf>, %44, %cst_26 [1] : vector<16x16xf32> to vector<16xf32>
    %cst_27 = arith.constant 0xFF800000 : f32
    %46 = vector.broadcast %cst_27 : f32 to vector<16xf32>
    %47 = arith.maximumf %46, %45 : vector<16xf32>
    %48 = vector.shape_cast %47 : vector<16xf32> to vector<16x1xf32>
    %49 = vector.broadcast %48 : vector<16x1xf32> to vector<16x16xf32>
    %50 = arith.subf %44, %49 : vector<16x16xf32>
    %51 = math.exp %50 : vector<16x16xf32>
    %cst_28 = arith.constant dense<0.000000e+00> : vector<16xf32>
    %52 = vector.multi_reduction <add>, %51, %cst_28 [1] : vector<16x16xf32> to vector<16xf32>
    %53 = vector.shape_cast %52 : vector<16xf32> to vector<16x1xf32>
    %54 = vector.broadcast %53 : vector<16x1xf32> to vector<16x16xf32>
    %55 = arith.divf %51, %54 : vector<16x16xf32>
    %cst_29 = arith.constant dense<0.000000e+00> : vector<16x8xf32>
    %56 = tpu.matmul %55, %41, %cst_29 {dimension_numbers = #tpu.dot_dimension_numbers<[1], [0], [0], [1], [0, 0, 1, 1], [], []>} : vector<16x16xf32>, vector<16x8xf32>, vector<16x8xf32> -> vector<16x8xf32>
    %cst_30 = arith.constant dense<0.000000e+00> : vector<1x8xf32>
    %57 = tpu.matmul %15, %56, %cst_30 {dimension_numbers = #tpu.dot_dimension_numbers<[1], [0], [0], [1], [0, 0, 1, 1], [], []>} : vector<1x16xf32>, vector<16x8xf32>, vector<1x8xf32> -> vector<1x8xf32>
    %58 = vector.extract_strided_slice %14 {offsets = [8, 0], sizes = [8, 32], strides = [1, 1]} : vector<32x32xf32> to vector<8x32xf32>
    %cst_31 = arith.constant dense<0.000000e+00> : vector<1x32xf32>
    %59 = tpu.matmul %57, %58, %cst_31 {dimension_numbers = #tpu.dot_dimension_numbers<[1], [0], [0], [1], [0, 0, 1, 1], [], []>} : vector<1x8xf32>, vector<8x32xf32>, vector<1x32xf32> -> vector<1x32xf32>
    %60 = arith.addf %38, %59 : vector<1x32xf32>
    %61 = vector.extract_strided_slice %13 {offsets = [0, 16], sizes = [16, 8], strides = [1, 1]} : vector<16x96xf32> to vector<16x8xf32>
    %62 = vector.extract_strided_slice %13 {offsets = [0, 48], sizes = [16, 8], strides = [1, 1]} : vector<16x96xf32> to vector<16x8xf32>
    %63 = vector.extract_strided_slice %13 {offsets = [0, 80], sizes = [16, 8], strides = [1, 1]} : vector<16x96xf32> to vector<16x8xf32>
    %cst_32 = arith.constant dense<0.000000e+00> : vector<16x16xf32>
    %64 = tpu.matmul %61, %62, %cst_32 {dimension_numbers = #tpu.dot_dimension_numbers<[1], [1], [0], [0], [0, 0, 1, 0], [], []>} : vector<16x8xf32>, vector<16x8xf32>, vector<16x16xf32> -> vector<16x16xf32>
    %cst_33 = arith.constant 0.353553385 : f32
    %65 = vector.broadcast %cst_33 : f32 to vector<16x16xf32>
    %66 = arith.mulf %64, %65 : vector<16x16xf32>
    %cst_34 = arith.constant dense<0xFF800000> : vector<16xf32>
    %67 = vector.multi_reduction <maximumf>, %66, %cst_34 [1] : vector<16x16xf32> to vector<16xf32>
    %cst_35 = arith.constant 0xFF800000 : f32
    %68 = vector.broadcast %cst_35 : f32 to vector<16xf32>
    %69 = arith.maximumf %68, %67 : vector<16xf32>
    %70 = vector.shape_cast %69 : vector<16xf32> to vector<16x1xf32>
    %71 = vector.broadcast %70 : vector<16x1xf32> to vector<16x16xf32>
    %72 = arith.subf %66, %71 : vector<16x16xf32>
    %73 = math.exp %72 : vector<16x16xf32>
    %cst_36 = arith.constant dense<0.000000e+00> : vector<16xf32>
    %74 = vector.multi_reduction <add>, %73, %cst_36 [1] : vector<16x16xf32> to vector<16xf32>
    %75 = vector.shape_cast %74 : vector<16xf32> to vector<16x1xf32>
    %76 = vector.broadcast %75 : vector<16x1xf32> to vector<16x16xf32>
    %77 = arith.divf %73, %76 : vector<16x16xf32>
    %cst_37 = arith.constant dense<0.000000e+00> : vector<16x8xf32>
    %78 = tpu.matmul %77, %63, %cst_37 {dimension_numbers = #tpu.dot_dimension_numbers<[1], [0], [0], [1], [0, 0, 1, 1], [], []>} : vector<16x16xf32>, vector<16x8xf32>, vector<16x8xf32> -> vector<16x8xf32>
    %cst_38 = arith.constant dense<0.000000e+00> : vector<1x8xf32>
    %79 = tpu.matmul %15, %78, %cst_38 {dimension_numbers = #tpu.dot_dimension_numbers<[1], [0], [0], [1], [0, 0, 1, 1], [], []>} : vector<1x16xf32>, vector<16x8xf32>, vector<1x8xf32> -> vector<1x8xf32>
    %80 = vector.extract_strided_slice %14 {offsets = [16, 0], sizes = [8, 32], strides = [1, 1]} : vector<32x32xf32> to vector<8x32xf32>
    %cst_39 = arith.constant dense<0.000000e+00> : vector<1x32xf32>
    %81 = tpu.matmul %79, %80, %cst_39 {dimension_numbers = #tpu.dot_dimension_numbers<[1], [0], [0], [1], [0, 0, 1, 1], [], []>} : vector<1x8xf32>, vector<8x32xf32>, vector<1x32xf32> -> vector<1x32xf32>
    %82 = arith.addf %60, %81 : vector<1x32xf32>
    %83 = vector.extract_strided_slice %13 {offsets = [0, 24], sizes = [16, 8], strides = [1, 1]} : vector<16x96xf32> to vector<16x8xf32>
    %84 = vector.extract_strided_slice %13 {offsets = [0, 56], sizes = [16, 8], strides = [1, 1]} : vector<16x96xf32> to vector<16x8xf32>
    %85 = vector.extract_strided_slice %13 {offsets = [0, 88], sizes = [16, 8], strides = [1, 1]} : vector<16x96xf32> to vector<16x8xf32>
    %cst_40 = arith.constant dense<0.000000e+00> : vector<16x16xf32>
    %86 = tpu.matmul %83, %84, %cst_40 {dimension_numbers = #tpu.dot_dimension_numbers<[1], [1], [0], [0], [0, 0, 1, 0], [], []>} : vector<16x8xf32>, vector<16x8xf32>, vector<16x16xf32> -> vector<16x16xf32>
    %cst_41 = arith.constant 0.353553385 : f32
    %87 = vector.broadcast %cst_41 : f32 to vector<16x16xf32>
    %88 = arith.mulf %86, %87 : vector<16x16xf32>
    %cst_42 = arith.constant dense<0xFF800000> : vector<16xf32>
    %89 = vector.multi_reduction <maximumf>, %88, %cst_42 [1] : vector<16x16xf32> to vector<16xf32>
    %cst_43 = arith.constant 0xFF800000 : f32
    %90 = vector.broadcast %cst_43 : f32 to vector<16xf32>
    %91 = arith.maximumf %90, %89 : vector<16xf32>
    %92 = vector.shape_cast %91 : vector<16xf32> to vector<16x1xf32>
    %93 = vector.broadcast %92 : vector<16x1xf32> to vector<16x16xf32>
    %94 = arith.subf %88, %93 : vector<16x16xf32>
    %95 = math.exp %94 : vector<16x16xf32>
    %cst_44 = arith.constant dense<0.000000e+00> : vector<16xf32>
    %96 = vector.multi_reduction <add>, %95, %cst_44 [1] : vector<16x16xf32> to vector<16xf32>
    %97 = vector.shape_cast %96 : vector<16xf32> to vector<16x1xf32>
    %98 = vector.broadcast %97 : vector<16x1xf32> to vector<16x16xf32>
    %99 = arith.divf %95, %98 : vector<16x16xf32>
    %cst_45 = arith.constant dense<0.000000e+00> : vector<16x8xf32>
    %100 = tpu.matmul %99, %85, %cst_45 {dimension_numbers = #tpu.dot_dimension_numbers<[1], [0], [0], [1], [0, 0, 1, 1], [], []>} : vector<16x16xf32>, vector<16x8xf32>, vector<16x8xf32> -> vector<16x8xf32>
    %cst_46 = arith.constant dense<0.000000e+00> : vector<1x8xf32>
    %101 = tpu.matmul %15, %100, %cst_46 {dimension_numbers = #tpu.dot_dimension_numbers<[1], [0], [0], [1], [0, 0, 1, 1], [], []>} : vector<1x16xf32>, vector<16x8xf32>, vector<1x8xf32> -> vector<1x8xf32>
    %102 = vector.extract_strided_slice %14 {offsets = [24, 0], sizes = [8, 32], strides = [1, 1]} : vector<32x32xf32> to vector<8x32xf32>
    %cst_47 = arith.constant dense<0.000000e+00> : vector<1x32xf32>
    %103 = tpu.matmul %101, %102, %cst_47 {dimension_numbers = #tpu.dot_dimension_numbers<[1], [0], [0], [1], [0, 0, 1, 1], [], []>} : vector<1x8xf32>, vector<8x32xf32>, vector<1x32xf32> -> vector<1x32xf32>
    %104 = arith.addf %82, %103 : vector<1x32xf32>
    %c0_48 = arith.constant 0 : index
    %c0_49 = arith.constant 0 : index
    %105 = vector.load %arg7[%c0_48, %c0_49] : memref<1x32xf32, #tpu.memory_space<vmem>>, vector<1x32xf32>
    %106 = arith.addf %104, %105 : vector<1x32xf32>
    %cst_50 = arith.constant 0.000000e+00 : f32
    %107 = vector.broadcast %cst_50 : f32 to vector<1x32xf32>
    %108 = arith.maximumf %106, %107 : vector<1x32xf32>
    %c0_51 = arith.constant 0 : index
    %c0_52 = arith.constant 0 : index
    %c0_53 = arith.constant 0 : index
    %109 = vector.load %arg8[%c0_51, %c0_52, %c0_53] : memref<1x1x32xf32, #tpu.memory_space<vmem>>, vector<1x1x32xf32>
    %110 = vector.shape_cast %109 : vector<1x1x32xf32> to vector<1x32xf32>
    %111 = vector.shape_cast %108 : vector<1x32xf32> to vector<1x1x32xf32>
    tpu.vector_store %arg8[%c0_51, %c0_52, %c0_53], %111 {strides = array<i32>} : memref<1x1x32xf32, #tpu.memory_space<vmem>>, vector<1x1x32xf32>,
    return
  }
  func.func @transform_0(%arg0: i32) -> (i32, i32, i32) {
    %c0_i32 = arith.constant 0 : i32
    %c0_i32_0 = arith.constant 0 : i32
    %c0_i32_1 = arith.constant 0 : i32
    return %arg0, %c0_i32, %c0_i32_0 : i32, i32, i32
  }
  func.func @transform_1(%arg0: i32) -> (i32, i32) {
    %c0_i32 = arith.constant 0 : i32
    %c0_i32_0 = arith.constant 0 : i32
    %c0_i32_1 = arith.constant 0 : i32
    return %c0_i32, %c0_i32_0 : i32, i32
  }
  func.func @transform_2(%arg0: i32) -> (i32, i32) {
    %c0_i32 = arith.constant 0 : i32
    %c0_i32_0 = arith.constant 0 : i32
    %c0_i32_1 = arith.constant 0 : i32
    return %c0_i32, %c0_i32_0 : i32, i32
  }
  func.func @transform_3(%arg0: i32) -> (i32, i32) {
    %c0_i32 = arith.constant 0 : i32
    %c0_i32_0 = arith.constant 0 : i32
    %c0_i32_1 = arith.constant 0 : i32
    return %c0_i32, %c0_i32_0 : i32, i32
  }
  func.func @transform_4(%arg0: i32) -> (i32, i32) {
    %c0_i32 = arith.constant 0 : i32
    %c0_i32_0 = arith.constant 0 : i32
    %c0_i32_1 = arith.constant 0 : i32
    return %c0_i32, %c0_i32_0 : i32, i32
  }
  func.func @transform_5(%arg0: i32) -> (i32, i32) {
    %c0_i32 = arith.constant 0 : i32
    %c0_i32_0 = arith.constant 0 : i32
    %c0_i32_1 = arith.constant 0 : i32
    return %c0_i32, %c0_i32_0 : i32, i32
  }
  func.func @transform_6(%arg0: i32) -> (i32, i32) {
    %c0_i32 = arith.constant 0 : i32
    %c0_i32_0 = arith.constant 0 : i32
    %c0_i32_1 = arith.constant 0 : i32
    return %c0_i32, %c0_i32_0 : i32, i32
  }
  func.func @transform_7(%arg0: i32) -> (i32, i32, i32) {
    %c0_i32 = arith.constant 0 : i32
    %c0_i32_0 = arith.constant 0 : i32
    %c0_i32_1 = arith.constant 0 : i32
    return %arg0, %c0_i32, %c0_i32_0 : i32, i32, i32
  }
}

module attributes {stable_mosaic.version = 11 : i64} {
  func.func @_tf_layer_kernel(%arg0: i32, %arg1: memref<1x4x32xf32, #tpu.memory_space<vmem>>, %arg2: memref<1x1x4xf32, #tpu.memory_space<vmem>>, %arg3: memref<32x96xf32, #tpu.memory_space<vmem>>, %arg4: memref<1x96xf32, #tpu.memory_space<vmem>>, %arg5: memref<32x32xf32, #tpu.memory_space<vmem>>, %arg6: memref<1x32xf32, #tpu.memory_space<vmem>>, %arg7: memref<1x32xf32, #tpu.memory_space<vmem>>, %arg8: memref<1x32xf32, #tpu.memory_space<vmem>>, %arg9: memref<32x64xf32, #tpu.memory_space<vmem>>, %arg10: memref<1x64xf32, #tpu.memory_space<vmem>>, %arg11: memref<64x32xf32, #tpu.memory_space<vmem>>, %arg12: memref<1x32xf32, #tpu.memory_space<vmem>>, %arg13: memref<1x32xf32, #tpu.memory_space<vmem>>, %arg14: memref<1x32xf32, #tpu.memory_space<vmem>>, %arg15: memref<1x4x32xf32, #tpu.memory_space<vmem>>) attributes {dimension_semantics = [#tpu.dimension_semantics<parallel>], iteration_bounds = array<i64: 2>, scalar_prefetch = 0 : i64, scratch_operands = 0 : i64, tpu.core_type = #tpu.core_type<tc>, window_params = [{transform_indices = @transform_0, window_bounds = array<i64: 1, 4, 32>}, {transform_indices = @transform_1, window_bounds = array<i64: 1, 1, 4>}, {pipeline_mode = #tpu.pipeline_mode<synchronous>, transform_indices = @transform_2, window_bounds = array<i64: 32, 96>}, {pipeline_mode = #tpu.pipeline_mode<synchronous>, transform_indices = @transform_3, window_bounds = array<i64: 1, 96>}, {pipeline_mode = #tpu.pipeline_mode<synchronous>, transform_indices = @transform_4, window_bounds = array<i64: 32, 32>}, {pipeline_mode = #tpu.pipeline_mode<synchronous>, transform_indices = @transform_5, window_bounds = array<i64: 1, 32>}, {pipeline_mode = #tpu.pipeline_mode<synchronous>, transform_indices = @transform_6, window_bounds = array<i64: 1, 32>}, {pipeline_mode = #tpu.pipeline_mode<synchronous>, transform_indices = @transform_7, window_bounds = array<i64: 1, 32>}, {pipeline_mode = #tpu.pipeline_mode<synchronous>, transform_indices = @transform_8, window_bounds = array<i64: 32, 64>}, {pipeline_mode = #tpu.pipeline_mode<synchronous>, transform_indices = @transform_9, window_bounds = array<i64: 1, 64>}, {pipeline_mode = #tpu.pipeline_mode<synchronous>, transform_indices = @transform_10, window_bounds = array<i64: 64, 32>}, {pipeline_mode = #tpu.pipeline_mode<synchronous>, transform_indices = @transform_11, window_bounds = array<i64: 1, 32>}, {pipeline_mode = #tpu.pipeline_mode<synchronous>, transform_indices = @transform_12, window_bounds = array<i64: 1, 32>}, {pipeline_mode = #tpu.pipeline_mode<synchronous>, transform_indices = @transform_13, window_bounds = array<i64: 1, 32>}, {transform_indices = @transform_14, window_bounds = array<i64: 1, 4, 32>}]} {
    %c0 = arith.constant 0 : index
    %c0_0 = arith.constant 0 : index
    %c0_1 = arith.constant 0 : index
    %0 = vector.load %arg1[%c0, %c0_0, %c0_1] : memref<1x4x32xf32, #tpu.memory_space<vmem>>, vector<1x4x32xf32>
    %1 = vector.shape_cast %0 : vector<1x4x32xf32> to vector<4x32xf32>
    %c0_2 = arith.constant 0 : index
    %c0_3 = arith.constant 0 : index
    %c0_4 = arith.constant 0 : index
    %2 = vector.load %arg2[%c0_2, %c0_3, %c0_4] : memref<1x1x4xf32, #tpu.memory_space<vmem>>, vector<1x1x4xf32>
    %3 = vector.shape_cast %2 : vector<1x1x4xf32> to vector<1x4xf32>
    %cst = arith.constant -1.000000e+09 : f32
    %4 = vector.broadcast %cst : f32 to vector<1x4xf32>
    %5 = arith.mulf %3, %4 : vector<1x4xf32>
    %c0_5 = arith.constant 0 : index
    %c0_6 = arith.constant 0 : index
    %6 = vector.load %arg3[%c0_5, %c0_6] : memref<32x96xf32, #tpu.memory_space<vmem>>, vector<32x96xf32>
    %cst_7 = arith.constant dense<0.000000e+00> : vector<4x96xf32>
    %7 = tpu.matmul %1, %6, %cst_7 {dimension_numbers = #tpu.dot_dimension_numbers<[1], [0], [0], [1], [0, 0, 1, 1], [], []>} : vector<4x32xf32>, vector<32x96xf32>, vector<4x96xf32> -> vector<4x96xf32>
    %c0_8 = arith.constant 0 : index
    %c0_9 = arith.constant 0 : index
    %8 = vector.load %arg4[%c0_8, %c0_9] : memref<1x96xf32, #tpu.memory_space<vmem>>, vector<1x96xf32>
    %9 = vector.broadcast %8 : vector<1x96xf32> to vector<4x96xf32>
    %10 = arith.addf %7, %9 : vector<4x96xf32>
    %c0_10 = arith.constant 0 : index
    %c0_11 = arith.constant 0 : index
    %11 = vector.load %arg5[%c0_10, %c0_11] : memref<32x32xf32, #tpu.memory_space<vmem>>, vector<32x32xf32>
    %cst_12 = arith.constant 0.000000e+00 : f32
    %12 = vector.broadcast %cst_12 : f32 to vector<4x32xf32>
    %13 = vector.extract_strided_slice %10 {offsets = [0, 0], sizes = [4, 8], strides = [1, 1]} : vector<4x96xf32> to vector<4x8xf32>
    %14 = vector.extract_strided_slice %10 {offsets = [0, 32], sizes = [4, 8], strides = [1, 1]} : vector<4x96xf32> to vector<4x8xf32>
    %15 = vector.extract_strided_slice %10 {offsets = [0, 64], sizes = [4, 8], strides = [1, 1]} : vector<4x96xf32> to vector<4x8xf32>
    %cst_13 = arith.constant dense<0.000000e+00> : vector<4x4xf32>
    %16 = tpu.matmul %13, %14, %cst_13 {dimension_numbers = #tpu.dot_dimension_numbers<[1], [1], [0], [0], [0, 0, 1, 0], [], []>} : vector<4x8xf32>, vector<4x8xf32>, vector<4x4xf32> -> vector<4x4xf32>
    %cst_14 = arith.constant 0.353553385 : f32
    %17 = vector.broadcast %cst_14 : f32 to vector<4x4xf32>
    %18 = arith.mulf %16, %17 : vector<4x4xf32>
    %19 = vector.broadcast %5 : vector<1x4xf32> to vector<4x4xf32>
    %20 = arith.addf %18, %19 : vector<4x4xf32>
    %cst_15 = arith.constant dense<0xFF800000> : vector<4xf32>
    %21 = vector.multi_reduction <maximumf>, %20, %cst_15 [1] : vector<4x4xf32> to vector<4xf32>
    %cst_16 = arith.constant 0xFF800000 : f32
    %22 = vector.broadcast %cst_16 : f32 to vector<4xf32>
    %23 = arith.maximumf %22, %21 : vector<4xf32>
    %24 = vector.shape_cast %23 : vector<4xf32> to vector<4x1xf32>
    %25 = vector.broadcast %24 : vector<4x1xf32> to vector<4x4xf32>
    %26 = arith.subf %20, %25 : vector<4x4xf32>
    %27 = math.exp %26 : vector<4x4xf32>
    %cst_17 = arith.constant dense<0.000000e+00> : vector<4xf32>
    %28 = vector.multi_reduction <add>, %27, %cst_17 [1] : vector<4x4xf32> to vector<4xf32>
    %29 = vector.shape_cast %28 : vector<4xf32> to vector<4x1xf32>
    %30 = vector.broadcast %29 : vector<4x1xf32> to vector<4x4xf32>
    %31 = arith.divf %27, %30 : vector<4x4xf32>
    %cst_18 = arith.constant dense<0.000000e+00> : vector<4x8xf32>
    %32 = tpu.matmul %31, %15, %cst_18 {dimension_numbers = #tpu.dot_dimension_numbers<[1], [0], [0], [1], [0, 0, 1, 1], [], []>} : vector<4x4xf32>, vector<4x8xf32>, vector<4x8xf32> -> vector<4x8xf32>
    %33 = vector.extract_strided_slice %11 {offsets = [0, 0], sizes = [8, 32], strides = [1, 1]} : vector<32x32xf32> to vector<8x32xf32>
    %cst_19 = arith.constant dense<0.000000e+00> : vector<4x32xf32>
    %34 = tpu.matmul %32, %33, %cst_19 {dimension_numbers = #tpu.dot_dimension_numbers<[1], [0], [0], [1], [0, 0, 1, 1], [], []>} : vector<4x8xf32>, vector<8x32xf32>, vector<4x32xf32> -> vector<4x32xf32>
    %35 = arith.addf %12, %34 : vector<4x32xf32>
    %36 = vector.extract_strided_slice %10 {offsets = [0, 8], sizes = [4, 8], strides = [1, 1]} : vector<4x96xf32> to vector<4x8xf32>
    %37 = vector.extract_strided_slice %10 {offsets = [0, 40], sizes = [4, 8], strides = [1, 1]} : vector<4x96xf32> to vector<4x8xf32>
    %38 = vector.extract_strided_slice %10 {offsets = [0, 72], sizes = [4, 8], strides = [1, 1]} : vector<4x96xf32> to vector<4x8xf32>
    %cst_20 = arith.constant dense<0.000000e+00> : vector<4x4xf32>
    %39 = tpu.matmul %36, %37, %cst_20 {dimension_numbers = #tpu.dot_dimension_numbers<[1], [1], [0], [0], [0, 0, 1, 0], [], []>} : vector<4x8xf32>, vector<4x8xf32>, vector<4x4xf32> -> vector<4x4xf32>
    %cst_21 = arith.constant 0.353553385 : f32
    %40 = vector.broadcast %cst_21 : f32 to vector<4x4xf32>
    %41 = arith.mulf %39, %40 : vector<4x4xf32>
    %42 = vector.broadcast %5 : vector<1x4xf32> to vector<4x4xf32>
    %43 = arith.addf %41, %42 : vector<4x4xf32>
    %cst_22 = arith.constant dense<0xFF800000> : vector<4xf32>
    %44 = vector.multi_reduction <maximumf>, %43, %cst_22 [1] : vector<4x4xf32> to vector<4xf32>
    %cst_23 = arith.constant 0xFF800000 : f32
    %45 = vector.broadcast %cst_23 : f32 to vector<4xf32>
    %46 = arith.maximumf %45, %44 : vector<4xf32>
    %47 = vector.shape_cast %46 : vector<4xf32> to vector<4x1xf32>
    %48 = vector.broadcast %47 : vector<4x1xf32> to vector<4x4xf32>
    %49 = arith.subf %43, %48 : vector<4x4xf32>
    %50 = math.exp %49 : vector<4x4xf32>
    %cst_24 = arith.constant dense<0.000000e+00> : vector<4xf32>
    %51 = vector.multi_reduction <add>, %50, %cst_24 [1] : vector<4x4xf32> to vector<4xf32>
    %52 = vector.shape_cast %51 : vector<4xf32> to vector<4x1xf32>
    %53 = vector.broadcast %52 : vector<4x1xf32> to vector<4x4xf32>
    %54 = arith.divf %50, %53 : vector<4x4xf32>
    %cst_25 = arith.constant dense<0.000000e+00> : vector<4x8xf32>
    %55 = tpu.matmul %54, %38, %cst_25 {dimension_numbers = #tpu.dot_dimension_numbers<[1], [0], [0], [1], [0, 0, 1, 1], [], []>} : vector<4x4xf32>, vector<4x8xf32>, vector<4x8xf32> -> vector<4x8xf32>
    %56 = vector.extract_strided_slice %11 {offsets = [8, 0], sizes = [8, 32], strides = [1, 1]} : vector<32x32xf32> to vector<8x32xf32>
    %cst_26 = arith.constant dense<0.000000e+00> : vector<4x32xf32>
    %57 = tpu.matmul %55, %56, %cst_26 {dimension_numbers = #tpu.dot_dimension_numbers<[1], [0], [0], [1], [0, 0, 1, 1], [], []>} : vector<4x8xf32>, vector<8x32xf32>, vector<4x32xf32> -> vector<4x32xf32>
    %58 = arith.addf %35, %57 : vector<4x32xf32>
    %59 = vector.extract_strided_slice %10 {offsets = [0, 16], sizes = [4, 8], strides = [1, 1]} : vector<4x96xf32> to vector<4x8xf32>
    %60 = vector.extract_strided_slice %10 {offsets = [0, 48], sizes = [4, 8], strides = [1, 1]} : vector<4x96xf32> to vector<4x8xf32>
    %61 = vector.extract_strided_slice %10 {offsets = [0, 80], sizes = [4, 8], strides = [1, 1]} : vector<4x96xf32> to vector<4x8xf32>
    %cst_27 = arith.constant dense<0.000000e+00> : vector<4x4xf32>
    %62 = tpu.matmul %59, %60, %cst_27 {dimension_numbers = #tpu.dot_dimension_numbers<[1], [1], [0], [0], [0, 0, 1, 0], [], []>} : vector<4x8xf32>, vector<4x8xf32>, vector<4x4xf32> -> vector<4x4xf32>
    %cst_28 = arith.constant 0.353553385 : f32
    %63 = vector.broadcast %cst_28 : f32 to vector<4x4xf32>
    %64 = arith.mulf %62, %63 : vector<4x4xf32>
    %65 = vector.broadcast %5 : vector<1x4xf32> to vector<4x4xf32>
    %66 = arith.addf %64, %65 : vector<4x4xf32>
    %cst_29 = arith.constant dense<0xFF800000> : vector<4xf32>
    %67 = vector.multi_reduction <maximumf>, %66, %cst_29 [1] : vector<4x4xf32> to vector<4xf32>
    %cst_30 = arith.constant 0xFF800000 : f32
    %68 = vector.broadcast %cst_30 : f32 to vector<4xf32>
    %69 = arith.maximumf %68, %67 : vector<4xf32>
    %70 = vector.shape_cast %69 : vector<4xf32> to vector<4x1xf32>
    %71 = vector.broadcast %70 : vector<4x1xf32> to vector<4x4xf32>
    %72 = arith.subf %66, %71 : vector<4x4xf32>
    %73 = math.exp %72 : vector<4x4xf32>
    %cst_31 = arith.constant dense<0.000000e+00> : vector<4xf32>
    %74 = vector.multi_reduction <add>, %73, %cst_31 [1] : vector<4x4xf32> to vector<4xf32>
    %75 = vector.shape_cast %74 : vector<4xf32> to vector<4x1xf32>
    %76 = vector.broadcast %75 : vector<4x1xf32> to vector<4x4xf32>
    %77 = arith.divf %73, %76 : vector<4x4xf32>
    %cst_32 = arith.constant dense<0.000000e+00> : vector<4x8xf32>
    %78 = tpu.matmul %77, %61, %cst_32 {dimension_numbers = #tpu.dot_dimension_numbers<[1], [0], [0], [1], [0, 0, 1, 1], [], []>} : vector<4x4xf32>, vector<4x8xf32>, vector<4x8xf32> -> vector<4x8xf32>
    %79 = vector.extract_strided_slice %11 {offsets = [16, 0], sizes = [8, 32], strides = [1, 1]} : vector<32x32xf32> to vector<8x32xf32>
    %cst_33 = arith.constant dense<0.000000e+00> : vector<4x32xf32>
    %80 = tpu.matmul %78, %79, %cst_33 {dimension_numbers = #tpu.dot_dimension_numbers<[1], [0], [0], [1], [0, 0, 1, 1], [], []>} : vector<4x8xf32>, vector<8x32xf32>, vector<4x32xf32> -> vector<4x32xf32>
    %81 = arith.addf %58, %80 : vector<4x32xf32>
    %82 = vector.extract_strided_slice %10 {offsets = [0, 24], sizes = [4, 8], strides = [1, 1]} : vector<4x96xf32> to vector<4x8xf32>
    %83 = vector.extract_strided_slice %10 {offsets = [0, 56], sizes = [4, 8], strides = [1, 1]} : vector<4x96xf32> to vector<4x8xf32>
    %84 = vector.extract_strided_slice %10 {offsets = [0, 88], sizes = [4, 8], strides = [1, 1]} : vector<4x96xf32> to vector<4x8xf32>
    %cst_34 = arith.constant dense<0.000000e+00> : vector<4x4xf32>
    %85 = tpu.matmul %82, %83, %cst_34 {dimension_numbers = #tpu.dot_dimension_numbers<[1], [1], [0], [0], [0, 0, 1, 0], [], []>} : vector<4x8xf32>, vector<4x8xf32>, vector<4x4xf32> -> vector<4x4xf32>
    %cst_35 = arith.constant 0.353553385 : f32
    %86 = vector.broadcast %cst_35 : f32 to vector<4x4xf32>
    %87 = arith.mulf %85, %86 : vector<4x4xf32>
    %88 = vector.broadcast %5 : vector<1x4xf32> to vector<4x4xf32>
    %89 = arith.addf %87, %88 : vector<4x4xf32>
    %cst_36 = arith.constant dense<0xFF800000> : vector<4xf32>
    %90 = vector.multi_reduction <maximumf>, %89, %cst_36 [1] : vector<4x4xf32> to vector<4xf32>
    %cst_37 = arith.constant 0xFF800000 : f32
    %91 = vector.broadcast %cst_37 : f32 to vector<4xf32>
    %92 = arith.maximumf %91, %90 : vector<4xf32>
    %93 = vector.shape_cast %92 : vector<4xf32> to vector<4x1xf32>
    %94 = vector.broadcast %93 : vector<4x1xf32> to vector<4x4xf32>
    %95 = arith.subf %89, %94 : vector<4x4xf32>
    %96 = math.exp %95 : vector<4x4xf32>
    %cst_38 = arith.constant dense<0.000000e+00> : vector<4xf32>
    %97 = vector.multi_reduction <add>, %96, %cst_38 [1] : vector<4x4xf32> to vector<4xf32>
    %98 = vector.shape_cast %97 : vector<4xf32> to vector<4x1xf32>
    %99 = vector.broadcast %98 : vector<4x1xf32> to vector<4x4xf32>
    %100 = arith.divf %96, %99 : vector<4x4xf32>
    %cst_39 = arith.constant dense<0.000000e+00> : vector<4x8xf32>
    %101 = tpu.matmul %100, %84, %cst_39 {dimension_numbers = #tpu.dot_dimension_numbers<[1], [0], [0], [1], [0, 0, 1, 1], [], []>} : vector<4x4xf32>, vector<4x8xf32>, vector<4x8xf32> -> vector<4x8xf32>
    %102 = vector.extract_strided_slice %11 {offsets = [24, 0], sizes = [8, 32], strides = [1, 1]} : vector<32x32xf32> to vector<8x32xf32>
    %cst_40 = arith.constant dense<0.000000e+00> : vector<4x32xf32>
    %103 = tpu.matmul %101, %102, %cst_40 {dimension_numbers = #tpu.dot_dimension_numbers<[1], [0], [0], [1], [0, 0, 1, 1], [], []>} : vector<4x8xf32>, vector<8x32xf32>, vector<4x32xf32> -> vector<4x32xf32>
    %104 = arith.addf %81, %103 : vector<4x32xf32>
    %c0_41 = arith.constant 0 : index
    %c0_42 = arith.constant 0 : index
    %105 = vector.load %arg6[%c0_41, %c0_42] : memref<1x32xf32, #tpu.memory_space<vmem>>, vector<1x32xf32>
    %106 = vector.broadcast %105 : vector<1x32xf32> to vector<4x32xf32>
    %107 = arith.addf %104, %106 : vector<4x32xf32>
    %108 = arith.addf %1, %107 : vector<4x32xf32>
    %c0_43 = arith.constant 0 : index
    %c0_44 = arith.constant 0 : index
    %109 = vector.load %arg7[%c0_43, %c0_44] : memref<1x32xf32, #tpu.memory_space<vmem>>, vector<1x32xf32>
    %c0_45 = arith.constant 0 : index
    %c0_46 = arith.constant 0 : index
    %110 = vector.load %arg8[%c0_45, %c0_46] : memref<1x32xf32, #tpu.memory_space<vmem>>, vector<1x32xf32>
    %cst_47 = arith.constant dense<0.000000e+00> : vector<4xf32>
    %111 = vector.multi_reduction <add>, %108, %cst_47 [1] : vector<4x32xf32> to vector<4xf32>
    %112 = vector.shape_cast %111 : vector<4xf32> to vector<4x1xf32>
    %cst_48 = arith.constant 3.200000e+01 : f32
    %113 = vector.broadcast %cst_48 : f32 to vector<4x1xf32>
    %114 = arith.divf %112, %113 : vector<4x1xf32>
    %115 = vector.broadcast %114 : vector<4x1xf32> to vector<4x32xf32>
    %116 = arith.subf %108, %115 : vector<4x32xf32>
    %117 = arith.mulf %116, %116 : vector<4x32xf32>
    %cst_49 = arith.constant dense<0.000000e+00> : vector<4xf32>
    %118 = vector.multi_reduction <add>, %117, %cst_49 [1] : vector<4x32xf32> to vector<4xf32>
    %119 = vector.shape_cast %118 : vector<4xf32> to vector<4x1xf32>
    %cst_50 = arith.constant 3.200000e+01 : f32
    %120 = vector.broadcast %cst_50 : f32 to vector<4x1xf32>
    %121 = arith.divf %119, %120 : vector<4x1xf32>
    %122 = vector.broadcast %114 : vector<4x1xf32> to vector<4x32xf32>
    %123 = arith.subf %108, %122 : vector<4x32xf32>
    %cst_51 = arith.constant 9.99999974E-6 : f32
    %124 = vector.broadcast %cst_51 : f32 to vector<4x1xf32>
    %125 = arith.addf %121, %124 : vector<4x1xf32>
    %126 = math.rsqrt %125 : vector<4x1xf32>
    %127 = vector.broadcast %126 : vector<4x1xf32> to vector<4x32xf32>
    %128 = arith.mulf %123, %127 : vector<4x32xf32>
    %129 = vector.broadcast %109 : vector<1x32xf32> to vector<4x32xf32>
    %130 = arith.mulf %128, %129 : vector<4x32xf32>
    %131 = vector.broadcast %110 : vector<1x32xf32> to vector<4x32xf32>
    %132 = arith.addf %130, %131 : vector<4x32xf32>
    %c0_52 = arith.constant 0 : index
    %c0_53 = arith.constant 0 : index
    %133 = vector.load %arg9[%c0_52, %c0_53] : memref<32x64xf32, #tpu.memory_space<vmem>>, vector<32x64xf32>
    %cst_54 = arith.constant dense<0.000000e+00> : vector<4x64xf32>
    %134 = tpu.matmul %132, %133, %cst_54 {dimension_numbers = #tpu.dot_dimension_numbers<[1], [0], [0], [1], [0, 0, 1, 1], [], []>} : vector<4x32xf32>, vector<32x64xf32>, vector<4x64xf32> -> vector<4x64xf32>
    %c0_55 = arith.constant 0 : index
    %c0_56 = arith.constant 0 : index
    %135 = vector.load %arg10[%c0_55, %c0_56] : memref<1x64xf32, #tpu.memory_space<vmem>>, vector<1x64xf32>
    %136 = vector.broadcast %135 : vector<1x64xf32> to vector<4x64xf32>
    %137 = arith.addf %134, %136 : vector<4x64xf32>
    %cst_57 = arith.constant 0.000000e+00 : f32
    %138 = vector.broadcast %cst_57 : f32 to vector<4x64xf32>
    %139 = arith.maximumf %137, %138 : vector<4x64xf32>
    %c0_58 = arith.constant 0 : index
    %c0_59 = arith.constant 0 : index
    %140 = vector.load %arg11[%c0_58, %c0_59] : memref<64x32xf32, #tpu.memory_space<vmem>>, vector<64x32xf32>
    %cst_60 = arith.constant dense<0.000000e+00> : vector<4x32xf32>
    %141 = tpu.matmul %139, %140, %cst_60 {dimension_numbers = #tpu.dot_dimension_numbers<[1], [0], [0], [1], [0, 0, 1, 1], [], []>} : vector<4x64xf32>, vector<64x32xf32>, vector<4x32xf32> -> vector<4x32xf32>
    %c0_61 = arith.constant 0 : index
    %c0_62 = arith.constant 0 : index
    %142 = vector.load %arg12[%c0_61, %c0_62] : memref<1x32xf32, #tpu.memory_space<vmem>>, vector<1x32xf32>
    %143 = vector.broadcast %142 : vector<1x32xf32> to vector<4x32xf32>
    %144 = arith.addf %141, %143 : vector<4x32xf32>
    %145 = arith.addf %132, %144 : vector<4x32xf32>
    %c0_63 = arith.constant 0 : index
    %c0_64 = arith.constant 0 : index
    %146 = vector.load %arg13[%c0_63, %c0_64] : memref<1x32xf32, #tpu.memory_space<vmem>>, vector<1x32xf32>
    %c0_65 = arith.constant 0 : index
    %c0_66 = arith.constant 0 : index
    %147 = vector.load %arg14[%c0_65, %c0_66] : memref<1x32xf32, #tpu.memory_space<vmem>>, vector<1x32xf32>
    %cst_67 = arith.constant dense<0.000000e+00> : vector<4xf32>
    %148 = vector.multi_reduction <add>, %145, %cst_67 [1] : vector<4x32xf32> to vector<4xf32>
    %149 = vector.shape_cast %148 : vector<4xf32> to vector<4x1xf32>
    %cst_68 = arith.constant 3.200000e+01 : f32
    %150 = vector.broadcast %cst_68 : f32 to vector<4x1xf32>
    %151 = arith.divf %149, %150 : vector<4x1xf32>
    %152 = vector.broadcast %151 : vector<4x1xf32> to vector<4x32xf32>
    %153 = arith.subf %145, %152 : vector<4x32xf32>
    %154 = arith.mulf %153, %153 : vector<4x32xf32>
    %cst_69 = arith.constant dense<0.000000e+00> : vector<4xf32>
    %155 = vector.multi_reduction <add>, %154, %cst_69 [1] : vector<4x32xf32> to vector<4xf32>
    %156 = vector.shape_cast %155 : vector<4xf32> to vector<4x1xf32>
    %cst_70 = arith.constant 3.200000e+01 : f32
    %157 = vector.broadcast %cst_70 : f32 to vector<4x1xf32>
    %158 = arith.divf %156, %157 : vector<4x1xf32>
    %159 = vector.broadcast %151 : vector<4x1xf32> to vector<4x32xf32>
    %160 = arith.subf %145, %159 : vector<4x32xf32>
    %cst_71 = arith.constant 9.99999974E-6 : f32
    %161 = vector.broadcast %cst_71 : f32 to vector<4x1xf32>
    %162 = arith.addf %158, %161 : vector<4x1xf32>
    %163 = math.rsqrt %162 : vector<4x1xf32>
    %164 = vector.broadcast %163 : vector<4x1xf32> to vector<4x32xf32>
    %165 = arith.mulf %160, %164 : vector<4x32xf32>
    %166 = vector.broadcast %146 : vector<1x32xf32> to vector<4x32xf32>
    %167 = arith.mulf %165, %166 : vector<4x32xf32>
    %168 = vector.broadcast %147 : vector<1x32xf32> to vector<4x32xf32>
    %169 = arith.addf %167, %168 : vector<4x32xf32>
    %c0_72 = arith.constant 0 : index
    %c0_73 = arith.constant 0 : index
    %c0_74 = arith.constant 0 : index
    %170 = vector.load %arg15[%c0_72, %c0_73, %c0_74] : memref<1x4x32xf32, #tpu.memory_space<vmem>>, vector<1x4x32xf32>
    %171 = vector.shape_cast %170 : vector<1x4x32xf32> to vector<4x32xf32>
    %172 = vector.shape_cast %169 : vector<4x32xf32> to vector<1x4x32xf32>
    tpu.vector_store %arg15[%c0_72, %c0_73, %c0_74], %172 {strides = array<i32>} : memref<1x4x32xf32, #tpu.memory_space<vmem>>, vector<1x4x32xf32>,
    return
  }
  func.func @transform_0(%arg0: i32) -> (i32, i32, i32) {
    %c0_i32 = arith.constant 0 : i32
    %c0_i32_0 = arith.constant 0 : i32
    %c0_i32_1 = arith.constant 0 : i32
    return %arg0, %c0_i32, %c0_i32_0 : i32, i32, i32
  }
  func.func @transform_1(%arg0: i32) -> (i32, i32, i32) {
    %c0_i32 = arith.constant 0 : i32
    %c0_i32_0 = arith.constant 0 : i32
    %c0_i32_1 = arith.constant 0 : i32
    return %arg0, %c0_i32, %c0_i32_0 : i32, i32, i32
  }
  func.func @transform_2(%arg0: i32) -> (i32, i32) {
    %c0_i32 = arith.constant 0 : i32
    %c0_i32_0 = arith.constant 0 : i32
    %c0_i32_1 = arith.constant 0 : i32
    return %c0_i32, %c0_i32_0 : i32, i32
  }
  func.func @transform_3(%arg0: i32) -> (i32, i32) {
    %c0_i32 = arith.constant 0 : i32
    %c0_i32_0 = arith.constant 0 : i32
    %c0_i32_1 = arith.constant 0 : i32
    return %c0_i32, %c0_i32_0 : i32, i32
  }
  func.func @transform_4(%arg0: i32) -> (i32, i32) {
    %c0_i32 = arith.constant 0 : i32
    %c0_i32_0 = arith.constant 0 : i32
    %c0_i32_1 = arith.constant 0 : i32
    return %c0_i32, %c0_i32_0 : i32, i32
  }
  func.func @transform_5(%arg0: i32) -> (i32, i32) {
    %c0_i32 = arith.constant 0 : i32
    %c0_i32_0 = arith.constant 0 : i32
    %c0_i32_1 = arith.constant 0 : i32
    return %c0_i32, %c0_i32_0 : i32, i32
  }
  func.func @transform_6(%arg0: i32) -> (i32, i32) {
    %c0_i32 = arith.constant 0 : i32
    %c0_i32_0 = arith.constant 0 : i32
    %c0_i32_1 = arith.constant 0 : i32
    return %c0_i32, %c0_i32_0 : i32, i32
  }
  func.func @transform_7(%arg0: i32) -> (i32, i32) {
    %c0_i32 = arith.constant 0 : i32
    %c0_i32_0 = arith.constant 0 : i32
    %c0_i32_1 = arith.constant 0 : i32
    return %c0_i32, %c0_i32_0 : i32, i32
  }
  func.func @transform_8(%arg0: i32) -> (i32, i32) {
    %c0_i32 = arith.constant 0 : i32
    %c0_i32_0 = arith.constant 0 : i32
    %c0_i32_1 = arith.constant 0 : i32
    return %c0_i32, %c0_i32_0 : i32, i32
  }
  func.func @transform_9(%arg0: i32) -> (i32, i32) {
    %c0_i32 = arith.constant 0 : i32
    %c0_i32_0 = arith.constant 0 : i32
    %c0_i32_1 = arith.constant 0 : i32
    return %c0_i32, %c0_i32_0 : i32, i32
  }
  func.func @transform_10(%arg0: i32) -> (i32, i32) {
    %c0_i32 = arith.constant 0 : i32
    %c0_i32_0 = arith.constant 0 : i32
    %c0_i32_1 = arith.constant 0 : i32
    return %c0_i32, %c0_i32_0 : i32, i32
  }
  func.func @transform_11(%arg0: i32) -> (i32, i32) {
    %c0_i32 = arith.constant 0 : i32
    %c0_i32_0 = arith.constant 0 : i32
    %c0_i32_1 = arith.constant 0 : i32
    return %c0_i32, %c0_i32_0 : i32, i32
  }
  func.func @transform_12(%arg0: i32) -> (i32, i32) {
    %c0_i32 = arith.constant 0 : i32
    %c0_i32_0 = arith.constant 0 : i32
    %c0_i32_1 = arith.constant 0 : i32
    return %c0_i32, %c0_i32_0 : i32, i32
  }
  func.func @transform_13(%arg0: i32) -> (i32, i32) {
    %c0_i32 = arith.constant 0 : i32
    %c0_i32_0 = arith.constant 0 : i32
    %c0_i32_1 = arith.constant 0 : i32
    return %c0_i32, %c0_i32_0 : i32, i32
  }
  func.func @transform_14(%arg0: i32) -> (i32, i32, i32) {
    %c0_i32 = arith.constant 0 : i32
    %c0_i32_0 = arith.constant 0 : i32
    %c0_i32_1 = arith.constant 0 : i32
    return %arg0, %c0_i32, %c0_i32_0 : i32, i32, i32
  }
}

module attributes {stable_mosaic.version = 11 : i64} {
  func.func @_dual_lstm_kernel(%arg0: memref<64x2xf32, #tpu.memory_space<vmem>>, %arg1: memref<64x2xf32, #tpu.memory_space<vmem>>, %arg2: memref<2x128xf32, #tpu.memory_space<vmem>>, %arg3: memref<32x128xf32, #tpu.memory_space<vmem>>, %arg4: memref<1x128xf32, #tpu.memory_space<vmem>>, %arg5: memref<2x128xf32, #tpu.memory_space<vmem>>, %arg6: memref<32x128xf32, #tpu.memory_space<vmem>>, %arg7: memref<1x128xf32, #tpu.memory_space<vmem>>, %arg8: memref<8x32xf32, #tpu.memory_space<vmem>>, %arg9: memref<8x32xf32, #tpu.memory_space<vmem>>) attributes {dimension_semantics = [], scalar_prefetch = 0 : i64, scratch_operands = 0 : i64, tpu.core_type = #tpu.core_type<tc>} {
    %c0 = arith.constant 0 : index
    %c0_0 = arith.constant 0 : index
    %0 = vector.load %arg0[%c0, %c0_0] : memref<64x2xf32, #tpu.memory_space<vmem>>, vector<64x2xf32>
    %c0_1 = arith.constant 0 : index
    %c0_2 = arith.constant 0 : index
    %1 = vector.load %arg2[%c0_1, %c0_2] : memref<2x128xf32, #tpu.memory_space<vmem>>, vector<2x128xf32>
    %cst = arith.constant dense<0.000000e+00> : vector<64x128xf32>
    %2 = tpu.matmul %0, %1, %cst {dimension_numbers = #tpu.dot_dimension_numbers<[1], [0], [0], [1], [0, 0, 1, 1], [], []>} : vector<64x2xf32>, vector<2x128xf32>, vector<64x128xf32> -> vector<64x128xf32>
    %c0_3 = arith.constant 0 : index
    %c0_4 = arith.constant 0 : index
    %3 = vector.load %arg4[%c0_3, %c0_4] : memref<1x128xf32, #tpu.memory_space<vmem>>, vector<1x128xf32>
    %4 = vector.broadcast %3 : vector<1x128xf32> to vector<64x128xf32>
    %5 = arith.addf %2, %4 : vector<64x128xf32>
    %c0_5 = arith.constant 0 : index
    %c0_6 = arith.constant 0 : index
    %6 = vector.load %arg1[%c0_5, %c0_6] : memref<64x2xf32, #tpu.memory_space<vmem>>, vector<64x2xf32>
    %c0_7 = arith.constant 0 : index
    %c0_8 = arith.constant 0 : index
    %7 = vector.load %arg5[%c0_7, %c0_8] : memref<2x128xf32, #tpu.memory_space<vmem>>, vector<2x128xf32>
    %cst_9 = arith.constant dense<0.000000e+00> : vector<64x128xf32>
    %8 = tpu.matmul %6, %7, %cst_9 {dimension_numbers = #tpu.dot_dimension_numbers<[1], [0], [0], [1], [0, 0, 1, 1], [], []>} : vector<64x2xf32>, vector<2x128xf32>, vector<64x128xf32> -> vector<64x128xf32>
    %c0_10 = arith.constant 0 : index
    %c0_11 = arith.constant 0 : index
    %9 = vector.load %arg7[%c0_10, %c0_11] : memref<1x128xf32, #tpu.memory_space<vmem>>, vector<1x128xf32>
    %10 = vector.broadcast %9 : vector<1x128xf32> to vector<64x128xf32>
    %11 = arith.addf %8, %10 : vector<64x128xf32>
    %c0_12 = arith.constant 0 : index
    %c0_13 = arith.constant 0 : index
    %12 = vector.load %arg3[%c0_12, %c0_13] : memref<32x128xf32, #tpu.memory_space<vmem>>, vector<32x128xf32>
    %c0_14 = arith.constant 0 : index
    %c0_15 = arith.constant 0 : index
    %13 = vector.load %arg6[%c0_14, %c0_15] : memref<32x128xf32, #tpu.memory_space<vmem>>, vector<32x128xf32>
    %cst_16 = arith.constant 0.000000e+00 : f32
    %14 = vector.broadcast %cst_16 : f32 to vector<8x32xf32>
    %cst_17 = arith.constant 0.000000e+00 : f32
    %15 = vector.broadcast %cst_17 : f32 to vector<8x32xf32>
    %cst_18 = arith.constant 0.000000e+00 : f32
    %16 = vector.broadcast %cst_18 : f32 to vector<8x32xf32>
    %cst_19 = arith.constant 0.000000e+00 : f32
    %17 = vector.broadcast %cst_19 : f32 to vector<8x32xf32>
    %18 = vector.extract_strided_slice %5 {offsets = [0, 0], sizes = [8, 128], strides = [1, 1]} : vector<64x128xf32> to vector<8x128xf32>
    %cst_20 = arith.constant dense<0.000000e+00> : vector<8x128xf32>
    %19 = tpu.matmul %14, %12, %cst_20 {dimension_numbers = #tpu.dot_dimension_numbers<[1], [0], [0], [1], [0, 0, 1, 1], [], []>} : vector<8x32xf32>, vector<32x128xf32>, vector<8x128xf32> -> vector<8x128xf32>
    %20 = arith.addf %18, %19 : vector<8x128xf32>
    %21 = vector.extract_strided_slice %20 {offsets = [0, 0], sizes = [8, 32], strides = [1, 1]} : vector<8x128xf32> to vector<8x32xf32>
    %22 = arith.negf %21 : vector<8x32xf32>
    %23 = math.exp %22 : vector<8x32xf32>
    %cst_21 = arith.constant 1.000000e+00 : f32
    %24 = vector.broadcast %cst_21 : f32 to vector<8x32xf32>
    %25 = arith.addf %24, %23 : vector<8x32xf32>
    %26 = arith.divf %24, %25 : vector<8x32xf32>
    %27 = vector.extract_strided_slice %20 {offsets = [0, 32], sizes = [8, 32], strides = [1, 1]} : vector<8x128xf32> to vector<8x32xf32>
    %28 = arith.negf %27 : vector<8x32xf32>
    %29 = math.exp %28 : vector<8x32xf32>
    %cst_22 = arith.constant 1.000000e+00 : f32
    %30 = vector.broadcast %cst_22 : f32 to vector<8x32xf32>
    %31 = arith.addf %30, %29 : vector<8x32xf32>
    %32 = arith.divf %30, %31 : vector<8x32xf32>
    %33 = vector.extract_strided_slice %20 {offsets = [0, 64], sizes = [8, 32], strides = [1, 1]} : vector<8x128xf32> to vector<8x32xf32>
    %34 = math.tanh %33 : vector<8x32xf32>
    %35 = vector.extract_strided_slice %20 {offsets = [0, 96], sizes = [8, 32], strides = [1, 1]} : vector<8x128xf32> to vector<8x32xf32>
    %36 = arith.negf %35 : vector<8x32xf32>
    %37 = math.exp %36 : vector<8x32xf32>
    %cst_23 = arith.constant 1.000000e+00 : f32
    %38 = vector.broadcast %cst_23 : f32 to vector<8x32xf32>
    %39 = arith.addf %38, %37 : vector<8x32xf32>
    %40 = arith.divf %38, %39 : vector<8x32xf32>
    %41 = arith.mulf %32, %15 : vector<8x32xf32>
    %42 = arith.mulf %26, %34 : vector<8x32xf32>
    %43 = arith.addf %41, %42 : vector<8x32xf32>
    %44 = math.tanh %43 : vector<8x32xf32>
    %45 = arith.mulf %40, %44 : vector<8x32xf32>
    %46 = vector.extract_strided_slice %11 {offsets = [0, 0], sizes = [8, 128], strides = [1, 1]} : vector<64x128xf32> to vector<8x128xf32>
    %cst_24 = arith.constant dense<0.000000e+00> : vector<8x128xf32>
    %47 = tpu.matmul %16, %13, %cst_24 {dimension_numbers = #tpu.dot_dimension_numbers<[1], [0], [0], [1], [0, 0, 1, 1], [], []>} : vector<8x32xf32>, vector<32x128xf32>, vector<8x128xf32> -> vector<8x128xf32>
    %48 = arith.addf %46, %47 : vector<8x128xf32>
    %49 = vector.extract_strided_slice %48 {offsets = [0, 0], sizes = [8, 32], strides = [1, 1]} : vector<8x128xf32> to vector<8x32xf32>
    %50 = arith.negf %49 : vector<8x32xf32>
    %51 = math.exp %50 : vector<8x32xf32>
    %cst_25 = arith.constant 1.000000e+00 : f32
    %52 = vector.broadcast %cst_25 : f32 to vector<8x32xf32>
    %53 = arith.addf %52, %51 : vector<8x32xf32>
    %54 = arith.divf %52, %53 : vector<8x32xf32>
    %55 = vector.extract_strided_slice %48 {offsets = [0, 32], sizes = [8, 32], strides = [1, 1]} : vector<8x128xf32> to vector<8x32xf32>
    %56 = arith.negf %55 : vector<8x32xf32>
    %57 = math.exp %56 : vector<8x32xf32>
    %cst_26 = arith.constant 1.000000e+00 : f32
    %58 = vector.broadcast %cst_26 : f32 to vector<8x32xf32>
    %59 = arith.addf %58, %57 : vector<8x32xf32>
    %60 = arith.divf %58, %59 : vector<8x32xf32>
    %61 = vector.extract_strided_slice %48 {offsets = [0, 64], sizes = [8, 32], strides = [1, 1]} : vector<8x128xf32> to vector<8x32xf32>
    %62 = math.tanh %61 : vector<8x32xf32>
    %63 = vector.extract_strided_slice %48 {offsets = [0, 96], sizes = [8, 32], strides = [1, 1]} : vector<8x128xf32> to vector<8x32xf32>
    %64 = arith.negf %63 : vector<8x32xf32>
    %65 = math.exp %64 : vector<8x32xf32>
    %cst_27 = arith.constant 1.000000e+00 : f32
    %66 = vector.broadcast %cst_27 : f32 to vector<8x32xf32>
    %67 = arith.addf %66, %65 : vector<8x32xf32>
    %68 = arith.divf %66, %67 : vector<8x32xf32>
    %69 = arith.mulf %60, %17 : vector<8x32xf32>
    %70 = arith.mulf %54, %62 : vector<8x32xf32>
    %71 = arith.addf %69, %70 : vector<8x32xf32>
    %72 = math.tanh %71 : vector<8x32xf32>
    %73 = arith.mulf %68, %72 : vector<8x32xf32>
    %74 = vector.extract_strided_slice %5 {offsets = [8, 0], sizes = [8, 128], strides = [1, 1]} : vector<64x128xf32> to vector<8x128xf32>
    %cst_28 = arith.constant dense<0.000000e+00> : vector<8x128xf32>
    %75 = tpu.matmul %45, %12, %cst_28 {dimension_numbers = #tpu.dot_dimension_numbers<[1], [0], [0], [1], [0, 0, 1, 1], [], []>} : vector<8x32xf32>, vector<32x128xf32>, vector<8x128xf32> -> vector<8x128xf32>
    %76 = arith.addf %74, %75 : vector<8x128xf32>
    %77 = vector.extract_strided_slice %76 {offsets = [0, 0], sizes = [8, 32], strides = [1, 1]} : vector<8x128xf32> to vector<8x32xf32>
    %78 = arith.negf %77 : vector<8x32xf32>
    %79 = math.exp %78 : vector<8x32xf32>
    %cst_29 = arith.constant 1.000000e+00 : f32
    %80 = vector.broadcast %cst_29 : f32 to vector<8x32xf32>
    %81 = arith.addf %80, %79 : vector<8x32xf32>
    %82 = arith.divf %80, %81 : vector<8x32xf32>
    %83 = vector.extract_strided_slice %76 {offsets = [0, 32], sizes = [8, 32], strides = [1, 1]} : vector<8x128xf32> to vector<8x32xf32>
    %84 = arith.negf %83 : vector<8x32xf32>
    %85 = math.exp %84 : vector<8x32xf32>
    %cst_30 = arith.constant 1.000000e+00 : f32
    %86 = vector.broadcast %cst_30 : f32 to vector<8x32xf32>
    %87 = arith.addf %86, %85 : vector<8x32xf32>
    %88 = arith.divf %86, %87 : vector<8x32xf32>
    %89 = vector.extract_strided_slice %76 {offsets = [0, 64], sizes = [8, 32], strides = [1, 1]} : vector<8x128xf32> to vector<8x32xf32>
    %90 = math.tanh %89 : vector<8x32xf32>
    %91 = vector.extract_strided_slice %76 {offsets = [0, 96], sizes = [8, 32], strides = [1, 1]} : vector<8x128xf32> to vector<8x32xf32>
    %92 = arith.negf %91 : vector<8x32xf32>
    %93 = math.exp %92 : vector<8x32xf32>
    %cst_31 = arith.constant 1.000000e+00 : f32
    %94 = vector.broadcast %cst_31 : f32 to vector<8x32xf32>
    %95 = arith.addf %94, %93 : vector<8x32xf32>
    %96 = arith.divf %94, %95 : vector<8x32xf32>
    %97 = arith.mulf %88, %43 : vector<8x32xf32>
    %98 = arith.mulf %82, %90 : vector<8x32xf32>
    %99 = arith.addf %97, %98 : vector<8x32xf32>
    %100 = math.tanh %99 : vector<8x32xf32>
    %101 = arith.mulf %96, %100 : vector<8x32xf32>
    %102 = vector.extract_strided_slice %11 {offsets = [8, 0], sizes = [8, 128], strides = [1, 1]} : vector<64x128xf32> to vector<8x128xf32>
    %cst_32 = arith.constant dense<0.000000e+00> : vector<8x128xf32>
    %103 = tpu.matmul %73, %13, %cst_32 {dimension_numbers = #tpu.dot_dimension_numbers<[1], [0], [0], [1], [0, 0, 1, 1], [], []>} : vector<8x32xf32>, vector<32x128xf32>, vector<8x128xf32> -> vector<8x128xf32>
    %104 = arith.addf %102, %103 : vector<8x128xf32>
    %105 = vector.extract_strided_slice %104 {offsets = [0, 0], sizes = [8, 32], strides = [1, 1]} : vector<8x128xf32> to vector<8x32xf32>
    %106 = arith.negf %105 : vector<8x32xf32>
    %107 = math.exp %106 : vector<8x32xf32>
    %cst_33 = arith.constant 1.000000e+00 : f32
    %108 = vector.broadcast %cst_33 : f32 to vector<8x32xf32>
    %109 = arith.addf %108, %107 : vector<8x32xf32>
    %110 = arith.divf %108, %109 : vector<8x32xf32>
    %111 = vector.extract_strided_slice %104 {offsets = [0, 32], sizes = [8, 32], strides = [1, 1]} : vector<8x128xf32> to vector<8x32xf32>
    %112 = arith.negf %111 : vector<8x32xf32>
    %113 = math.exp %112 : vector<8x32xf32>
    %cst_34 = arith.constant 1.000000e+00 : f32
    %114 = vector.broadcast %cst_34 : f32 to vector<8x32xf32>
    %115 = arith.addf %114, %113 : vector<8x32xf32>
    %116 = arith.divf %114, %115 : vector<8x32xf32>
    %117 = vector.extract_strided_slice %104 {offsets = [0, 64], sizes = [8, 32], strides = [1, 1]} : vector<8x128xf32> to vector<8x32xf32>
    %118 = math.tanh %117 : vector<8x32xf32>
    %119 = vector.extract_strided_slice %104 {offsets = [0, 96], sizes = [8, 32], strides = [1, 1]} : vector<8x128xf32> to vector<8x32xf32>
    %120 = arith.negf %119 : vector<8x32xf32>
    %121 = math.exp %120 : vector<8x32xf32>
    %cst_35 = arith.constant 1.000000e+00 : f32
    %122 = vector.broadcast %cst_35 : f32 to vector<8x32xf32>
    %123 = arith.addf %122, %121 : vector<8x32xf32>
    %124 = arith.divf %122, %123 : vector<8x32xf32>
    %125 = arith.mulf %116, %71 : vector<8x32xf32>
    %126 = arith.mulf %110, %118 : vector<8x32xf32>
    %127 = arith.addf %125, %126 : vector<8x32xf32>
    %128 = math.tanh %127 : vector<8x32xf32>
    %129 = arith.mulf %124, %128 : vector<8x32xf32>
    %130 = vector.extract_strided_slice %5 {offsets = [16, 0], sizes = [8, 128], strides = [1, 1]} : vector<64x128xf32> to vector<8x128xf32>
    %cst_36 = arith.constant dense<0.000000e+00> : vector<8x128xf32>
    %131 = tpu.matmul %101, %12, %cst_36 {dimension_numbers = #tpu.dot_dimension_numbers<[1], [0], [0], [1], [0, 0, 1, 1], [], []>} : vector<8x32xf32>, vector<32x128xf32>, vector<8x128xf32> -> vector<8x128xf32>
    %132 = arith.addf %130, %131 : vector<8x128xf32>
    %133 = vector.extract_strided_slice %132 {offsets = [0, 0], sizes = [8, 32], strides = [1, 1]} : vector<8x128xf32> to vector<8x32xf32>
    %134 = arith.negf %133 : vector<8x32xf32>
    %135 = math.exp %134 : vector<8x32xf32>
    %cst_37 = arith.constant 1.000000e+00 : f32
    %136 = vector.broadcast %cst_37 : f32 to vector<8x32xf32>
    %137 = arith.addf %136, %135 : vector<8x32xf32>
    %138 = arith.divf %136, %137 : vector<8x32xf32>
    %139 = vector.extract_strided_slice %132 {offsets = [0, 32], sizes = [8, 32], strides = [1, 1]} : vector<8x128xf32> to vector<8x32xf32>
    %140 = arith.negf %139 : vector<8x32xf32>
    %141 = math.exp %140 : vector<8x32xf32>
    %cst_38 = arith.constant 1.000000e+00 : f32
    %142 = vector.broadcast %cst_38 : f32 to vector<8x32xf32>
    %143 = arith.addf %142, %141 : vector<8x32xf32>
    %144 = arith.divf %142, %143 : vector<8x32xf32>
    %145 = vector.extract_strided_slice %132 {offsets = [0, 64], sizes = [8, 32], strides = [1, 1]} : vector<8x128xf32> to vector<8x32xf32>
    %146 = math.tanh %145 : vector<8x32xf32>
    %147 = vector.extract_strided_slice %132 {offsets = [0, 96], sizes = [8, 32], strides = [1, 1]} : vector<8x128xf32> to vector<8x32xf32>
    %148 = arith.negf %147 : vector<8x32xf32>
    %149 = math.exp %148 : vector<8x32xf32>
    %cst_39 = arith.constant 1.000000e+00 : f32
    %150 = vector.broadcast %cst_39 : f32 to vector<8x32xf32>
    %151 = arith.addf %150, %149 : vector<8x32xf32>
    %152 = arith.divf %150, %151 : vector<8x32xf32>
    %153 = arith.mulf %144, %99 : vector<8x32xf32>
    %154 = arith.mulf %138, %146 : vector<8x32xf32>
    %155 = arith.addf %153, %154 : vector<8x32xf32>
    %156 = math.tanh %155 : vector<8x32xf32>
    %157 = arith.mulf %152, %156 : vector<8x32xf32>
    %158 = vector.extract_strided_slice %11 {offsets = [16, 0], sizes = [8, 128], strides = [1, 1]} : vector<64x128xf32> to vector<8x128xf32>
    %cst_40 = arith.constant dense<0.000000e+00> : vector<8x128xf32>
    %159 = tpu.matmul %129, %13, %cst_40 {dimension_numbers = #tpu.dot_dimension_numbers<[1], [0], [0], [1], [0, 0, 1, 1], [], []>} : vector<8x32xf32>, vector<32x128xf32>, vector<8x128xf32> -> vector<8x128xf32>
    %160 = arith.addf %158, %159 : vector<8x128xf32>
    %161 = vector.extract_strided_slice %160 {offsets = [0, 0], sizes = [8, 32], strides = [1, 1]} : vector<8x128xf32> to vector<8x32xf32>
    %162 = arith.negf %161 : vector<8x32xf32>
    %163 = math.exp %162 : vector<8x32xf32>
    %cst_41 = arith.constant 1.000000e+00 : f32
    %164 = vector.broadcast %cst_41 : f32 to vector<8x32xf32>
    %165 = arith.addf %164, %163 : vector<8x32xf32>
    %166 = arith.divf %164, %165 : vector<8x32xf32>
    %167 = vector.extract_strided_slice %160 {offsets = [0, 32], sizes = [8, 32], strides = [1, 1]} : vector<8x128xf32> to vector<8x32xf32>
    %168 = arith.negf %167 : vector<8x32xf32>
    %169 = math.exp %168 : vector<8x32xf32>
    %cst_42 = arith.constant 1.000000e+00 : f32
    %170 = vector.broadcast %cst_42 : f32 to vector<8x32xf32>
    %171 = arith.addf %170, %169 : vector<8x32xf32>
    %172 = arith.divf %170, %171 : vector<8x32xf32>
    %173 = vector.extract_strided_slice %160 {offsets = [0, 64], sizes = [8, 32], strides = [1, 1]} : vector<8x128xf32> to vector<8x32xf32>
    %174 = math.tanh %173 : vector<8x32xf32>
    %175 = vector.extract_strided_slice %160 {offsets = [0, 96], sizes = [8, 32], strides = [1, 1]} : vector<8x128xf32> to vector<8x32xf32>
    %176 = arith.negf %175 : vector<8x32xf32>
    %177 = math.exp %176 : vector<8x32xf32>
    %cst_43 = arith.constant 1.000000e+00 : f32
    %178 = vector.broadcast %cst_43 : f32 to vector<8x32xf32>
    %179 = arith.addf %178, %177 : vector<8x32xf32>
    %180 = arith.divf %178, %179 : vector<8x32xf32>
    %181 = arith.mulf %172, %127 : vector<8x32xf32>
    %182 = arith.mulf %166, %174 : vector<8x32xf32>
    %183 = arith.addf %181, %182 : vector<8x32xf32>
    %184 = math.tanh %183 : vector<8x32xf32>
    %185 = arith.mulf %180, %184 : vector<8x32xf32>
    %186 = vector.extract_strided_slice %5 {offsets = [24, 0], sizes = [8, 128], strides = [1, 1]} : vector<64x128xf32> to vector<8x128xf32>
    %cst_44 = arith.constant dense<0.000000e+00> : vector<8x128xf32>
    %187 = tpu.matmul %157, %12, %cst_44 {dimension_numbers = #tpu.dot_dimension_numbers<[1], [0], [0], [1], [0, 0, 1, 1], [], []>} : vector<8x32xf32>, vector<32x128xf32>, vector<8x128xf32> -> vector<8x128xf32>
    %188 = arith.addf %186, %187 : vector<8x128xf32>
    %189 = vector.extract_strided_slice %188 {offsets = [0, 0], sizes = [8, 32], strides = [1, 1]} : vector<8x128xf32> to vector<8x32xf32>
    %190 = arith.negf %189 : vector<8x32xf32>
    %191 = math.exp %190 : vector<8x32xf32>
    %cst_45 = arith.constant 1.000000e+00 : f32
    %192 = vector.broadcast %cst_45 : f32 to vector<8x32xf32>
    %193 = arith.addf %192, %191 : vector<8x32xf32>
    %194 = arith.divf %192, %193 : vector<8x32xf32>
    %195 = vector.extract_strided_slice %188 {offsets = [0, 32], sizes = [8, 32], strides = [1, 1]} : vector<8x128xf32> to vector<8x32xf32>
    %196 = arith.negf %195 : vector<8x32xf32>
    %197 = math.exp %196 : vector<8x32xf32>
    %cst_46 = arith.constant 1.000000e+00 : f32
    %198 = vector.broadcast %cst_46 : f32 to vector<8x32xf32>
    %199 = arith.addf %198, %197 : vector<8x32xf32>
    %200 = arith.divf %198, %199 : vector<8x32xf32>
    %201 = vector.extract_strided_slice %188 {offsets = [0, 64], sizes = [8, 32], strides = [1, 1]} : vector<8x128xf32> to vector<8x32xf32>
    %202 = math.tanh %201 : vector<8x32xf32>
    %203 = vector.extract_strided_slice %188 {offsets = [0, 96], sizes = [8, 32], strides = [1, 1]} : vector<8x128xf32> to vector<8x32xf32>
    %204 = arith.negf %203 : vector<8x32xf32>
    %205 = math.exp %204 : vector<8x32xf32>
    %cst_47 = arith.constant 1.000000e+00 : f32
    %206 = vector.broadcast %cst_47 : f32 to vector<8x32xf32>
    %207 = arith.addf %206, %205 : vector<8x32xf32>
    %208 = arith.divf %206, %207 : vector<8x32xf32>
    %209 = arith.mulf %200, %155 : vector<8x32xf32>
    %210 = arith.mulf %194, %202 : vector<8x32xf32>
    %211 = arith.addf %209, %210 : vector<8x32xf32>
    %212 = math.tanh %211 : vector<8x32xf32>
    %213 = arith.mulf %208, %212 : vector<8x32xf32>
    %214 = vector.extract_strided_slice %11 {offsets = [24, 0], sizes = [8, 128], strides = [1, 1]} : vector<64x128xf32> to vector<8x128xf32>
    %cst_48 = arith.constant dense<0.000000e+00> : vector<8x128xf32>
    %215 = tpu.matmul %185, %13, %cst_48 {dimension_numbers = #tpu.dot_dimension_numbers<[1], [0], [0], [1], [0, 0, 1, 1], [], []>} : vector<8x32xf32>, vector<32x128xf32>, vector<8x128xf32> -> vector<8x128xf32>
    %216 = arith.addf %214, %215 : vector<8x128xf32>
    %217 = vector.extract_strided_slice %216 {offsets = [0, 0], sizes = [8, 32], strides = [1, 1]} : vector<8x128xf32> to vector<8x32xf32>
    %218 = arith.negf %217 : vector<8x32xf32>
    %219 = math.exp %218 : vector<8x32xf32>
    %cst_49 = arith.constant 1.000000e+00 : f32
    %220 = vector.broadcast %cst_49 : f32 to vector<8x32xf32>
    %221 = arith.addf %220, %219 : vector<8x32xf32>
    %222 = arith.divf %220, %221 : vector<8x32xf32>
    %223 = vector.extract_strided_slice %216 {offsets = [0, 32], sizes = [8, 32], strides = [1, 1]} : vector<8x128xf32> to vector<8x32xf32>
    %224 = arith.negf %223 : vector<8x32xf32>
    %225 = math.exp %224 : vector<8x32xf32>
    %cst_50 = arith.constant 1.000000e+00 : f32
    %226 = vector.broadcast %cst_50 : f32 to vector<8x32xf32>
    %227 = arith.addf %226, %225 : vector<8x32xf32>
    %228 = arith.divf %226, %227 : vector<8x32xf32>
    %229 = vector.extract_strided_slice %216 {offsets = [0, 64], sizes = [8, 32], strides = [1, 1]} : vector<8x128xf32> to vector<8x32xf32>
    %230 = math.tanh %229 : vector<8x32xf32>
    %231 = vector.extract_strided_slice %216 {offsets = [0, 96], sizes = [8, 32], strides = [1, 1]} : vector<8x128xf32> to vector<8x32xf32>
    %232 = arith.negf %231 : vector<8x32xf32>
    %233 = math.exp %232 : vector<8x32xf32>
    %cst_51 = arith.constant 1.000000e+00 : f32
    %234 = vector.broadcast %cst_51 : f32 to vector<8x32xf32>
    %235 = arith.addf %234, %233 : vector<8x32xf32>
    %236 = arith.divf %234, %235 : vector<8x32xf32>
    %237 = arith.mulf %228, %183 : vector<8x32xf32>
    %238 = arith.mulf %222, %230 : vector<8x32xf32>
    %239 = arith.addf %237, %238 : vector<8x32xf32>
    %240 = math.tanh %239 : vector<8x32xf32>
    %241 = arith.mulf %236, %240 : vector<8x32xf32>
    %242 = vector.extract_strided_slice %5 {offsets = [32, 0], sizes = [8, 128], strides = [1, 1]} : vector<64x128xf32> to vector<8x128xf32>
    %cst_52 = arith.constant dense<0.000000e+00> : vector<8x128xf32>
    %243 = tpu.matmul %213, %12, %cst_52 {dimension_numbers = #tpu.dot_dimension_numbers<[1], [0], [0], [1], [0, 0, 1, 1], [], []>} : vector<8x32xf32>, vector<32x128xf32>, vector<8x128xf32> -> vector<8x128xf32>
    %244 = arith.addf %242, %243 : vector<8x128xf32>
    %245 = vector.extract_strided_slice %244 {offsets = [0, 0], sizes = [8, 32], strides = [1, 1]} : vector<8x128xf32> to vector<8x32xf32>
    %246 = arith.negf %245 : vector<8x32xf32>
    %247 = math.exp %246 : vector<8x32xf32>
    %cst_53 = arith.constant 1.000000e+00 : f32
    %248 = vector.broadcast %cst_53 : f32 to vector<8x32xf32>
    %249 = arith.addf %248, %247 : vector<8x32xf32>
    %250 = arith.divf %248, %249 : vector<8x32xf32>
    %251 = vector.extract_strided_slice %244 {offsets = [0, 32], sizes = [8, 32], strides = [1, 1]} : vector<8x128xf32> to vector<8x32xf32>
    %252 = arith.negf %251 : vector<8x32xf32>
    %253 = math.exp %252 : vector<8x32xf32>
    %cst_54 = arith.constant 1.000000e+00 : f32
    %254 = vector.broadcast %cst_54 : f32 to vector<8x32xf32>
    %255 = arith.addf %254, %253 : vector<8x32xf32>
    %256 = arith.divf %254, %255 : vector<8x32xf32>
    %257 = vector.extract_strided_slice %244 {offsets = [0, 64], sizes = [8, 32], strides = [1, 1]} : vector<8x128xf32> to vector<8x32xf32>
    %258 = math.tanh %257 : vector<8x32xf32>
    %259 = vector.extract_strided_slice %244 {offsets = [0, 96], sizes = [8, 32], strides = [1, 1]} : vector<8x128xf32> to vector<8x32xf32>
    %260 = arith.negf %259 : vector<8x32xf32>
    %261 = math.exp %260 : vector<8x32xf32>
    %cst_55 = arith.constant 1.000000e+00 : f32
    %262 = vector.broadcast %cst_55 : f32 to vector<8x32xf32>
    %263 = arith.addf %262, %261 : vector<8x32xf32>
    %264 = arith.divf %262, %263 : vector<8x32xf32>
    %265 = arith.mulf %256, %211 : vector<8x32xf32>
    %266 = arith.mulf %250, %258 : vector<8x32xf32>
    %267 = arith.addf %265, %266 : vector<8x32xf32>
    %268 = math.tanh %267 : vector<8x32xf32>
    %269 = arith.mulf %264, %268 : vector<8x32xf32>
    %270 = vector.extract_strided_slice %11 {offsets = [32, 0], sizes = [8, 128], strides = [1, 1]} : vector<64x128xf32> to vector<8x128xf32>
    %cst_56 = arith.constant dense<0.000000e+00> : vector<8x128xf32>
    %271 = tpu.matmul %241, %13, %cst_56 {dimension_numbers = #tpu.dot_dimension_numbers<[1], [0], [0], [1], [0, 0, 1, 1], [], []>} : vector<8x32xf32>, vector<32x128xf32>, vector<8x128xf32> -> vector<8x128xf32>
    %272 = arith.addf %270, %271 : vector<8x128xf32>
    %273 = vector.extract_strided_slice %272 {offsets = [0, 0], sizes = [8, 32], strides = [1, 1]} : vector<8x128xf32> to vector<8x32xf32>
    %274 = arith.negf %273 : vector<8x32xf32>
    %275 = math.exp %274 : vector<8x32xf32>
    %cst_57 = arith.constant 1.000000e+00 : f32
    %276 = vector.broadcast %cst_57 : f32 to vector<8x32xf32>
    %277 = arith.addf %276, %275 : vector<8x32xf32>
    %278 = arith.divf %276, %277 : vector<8x32xf32>
    %279 = vector.extract_strided_slice %272 {offsets = [0, 32], sizes = [8, 32], strides = [1, 1]} : vector<8x128xf32> to vector<8x32xf32>
    %280 = arith.negf %279 : vector<8x32xf32>
    %281 = math.exp %280 : vector<8x32xf32>
    %cst_58 = arith.constant 1.000000e+00 : f32
    %282 = vector.broadcast %cst_58 : f32 to vector<8x32xf32>
    %283 = arith.addf %282, %281 : vector<8x32xf32>
    %284 = arith.divf %282, %283 : vector<8x32xf32>
    %285 = vector.extract_strided_slice %272 {offsets = [0, 64], sizes = [8, 32], strides = [1, 1]} : vector<8x128xf32> to vector<8x32xf32>
    %286 = math.tanh %285 : vector<8x32xf32>
    %287 = vector.extract_strided_slice %272 {offsets = [0, 96], sizes = [8, 32], strides = [1, 1]} : vector<8x128xf32> to vector<8x32xf32>
    %288 = arith.negf %287 : vector<8x32xf32>
    %289 = math.exp %288 : vector<8x32xf32>
    %cst_59 = arith.constant 1.000000e+00 : f32
    %290 = vector.broadcast %cst_59 : f32 to vector<8x32xf32>
    %291 = arith.addf %290, %289 : vector<8x32xf32>
    %292 = arith.divf %290, %291 : vector<8x32xf32>
    %293 = arith.mulf %284, %239 : vector<8x32xf32>
    %294 = arith.mulf %278, %286 : vector<8x32xf32>
    %295 = arith.addf %293, %294 : vector<8x32xf32>
    %296 = math.tanh %295 : vector<8x32xf32>
    %297 = arith.mulf %292, %296 : vector<8x32xf32>
    %298 = vector.extract_strided_slice %5 {offsets = [40, 0], sizes = [8, 128], strides = [1, 1]} : vector<64x128xf32> to vector<8x128xf32>
    %cst_60 = arith.constant dense<0.000000e+00> : vector<8x128xf32>
    %299 = tpu.matmul %269, %12, %cst_60 {dimension_numbers = #tpu.dot_dimension_numbers<[1], [0], [0], [1], [0, 0, 1, 1], [], []>} : vector<8x32xf32>, vector<32x128xf32>, vector<8x128xf32> -> vector<8x128xf32>
    %300 = arith.addf %298, %299 : vector<8x128xf32>
    %301 = vector.extract_strided_slice %300 {offsets = [0, 0], sizes = [8, 32], strides = [1, 1]} : vector<8x128xf32> to vector<8x32xf32>
    %302 = arith.negf %301 : vector<8x32xf32>
    %303 = math.exp %302 : vector<8x32xf32>
    %cst_61 = arith.constant 1.000000e+00 : f32
    %304 = vector.broadcast %cst_61 : f32 to vector<8x32xf32>
    %305 = arith.addf %304, %303 : vector<8x32xf32>
    %306 = arith.divf %304, %305 : vector<8x32xf32>
    %307 = vector.extract_strided_slice %300 {offsets = [0, 32], sizes = [8, 32], strides = [1, 1]} : vector<8x128xf32> to vector<8x32xf32>
    %308 = arith.negf %307 : vector<8x32xf32>
    %309 = math.exp %308 : vector<8x32xf32>
    %cst_62 = arith.constant 1.000000e+00 : f32
    %310 = vector.broadcast %cst_62 : f32 to vector<8x32xf32>
    %311 = arith.addf %310, %309 : vector<8x32xf32>
    %312 = arith.divf %310, %311 : vector<8x32xf32>
    %313 = vector.extract_strided_slice %300 {offsets = [0, 64], sizes = [8, 32], strides = [1, 1]} : vector<8x128xf32> to vector<8x32xf32>
    %314 = math.tanh %313 : vector<8x32xf32>
    %315 = vector.extract_strided_slice %300 {offsets = [0, 96], sizes = [8, 32], strides = [1, 1]} : vector<8x128xf32> to vector<8x32xf32>
    %316 = arith.negf %315 : vector<8x32xf32>
    %317 = math.exp %316 : vector<8x32xf32>
    %cst_63 = arith.constant 1.000000e+00 : f32
    %318 = vector.broadcast %cst_63 : f32 to vector<8x32xf32>
    %319 = arith.addf %318, %317 : vector<8x32xf32>
    %320 = arith.divf %318, %319 : vector<8x32xf32>
    %321 = arith.mulf %312, %267 : vector<8x32xf32>
    %322 = arith.mulf %306, %314 : vector<8x32xf32>
    %323 = arith.addf %321, %322 : vector<8x32xf32>
    %324 = math.tanh %323 : vector<8x32xf32>
    %325 = arith.mulf %320, %324 : vector<8x32xf32>
    %326 = vector.extract_strided_slice %11 {offsets = [40, 0], sizes = [8, 128], strides = [1, 1]} : vector<64x128xf32> to vector<8x128xf32>
    %cst_64 = arith.constant dense<0.000000e+00> : vector<8x128xf32>
    %327 = tpu.matmul %297, %13, %cst_64 {dimension_numbers = #tpu.dot_dimension_numbers<[1], [0], [0], [1], [0, 0, 1, 1], [], []>} : vector<8x32xf32>, vector<32x128xf32>, vector<8x128xf32> -> vector<8x128xf32>
    %328 = arith.addf %326, %327 : vector<8x128xf32>
    %329 = vector.extract_strided_slice %328 {offsets = [0, 0], sizes = [8, 32], strides = [1, 1]} : vector<8x128xf32> to vector<8x32xf32>
    %330 = arith.negf %329 : vector<8x32xf32>
    %331 = math.exp %330 : vector<8x32xf32>
    %cst_65 = arith.constant 1.000000e+00 : f32
    %332 = vector.broadcast %cst_65 : f32 to vector<8x32xf32>
    %333 = arith.addf %332, %331 : vector<8x32xf32>
    %334 = arith.divf %332, %333 : vector<8x32xf32>
    %335 = vector.extract_strided_slice %328 {offsets = [0, 32], sizes = [8, 32], strides = [1, 1]} : vector<8x128xf32> to vector<8x32xf32>
    %336 = arith.negf %335 : vector<8x32xf32>
    %337 = math.exp %336 : vector<8x32xf32>
    %cst_66 = arith.constant 1.000000e+00 : f32
    %338 = vector.broadcast %cst_66 : f32 to vector<8x32xf32>
    %339 = arith.addf %338, %337 : vector<8x32xf32>
    %340 = arith.divf %338, %339 : vector<8x32xf32>
    %341 = vector.extract_strided_slice %328 {offsets = [0, 64], sizes = [8, 32], strides = [1, 1]} : vector<8x128xf32> to vector<8x32xf32>
    %342 = math.tanh %341 : vector<8x32xf32>
    %343 = vector.extract_strided_slice %328 {offsets = [0, 96], sizes = [8, 32], strides = [1, 1]} : vector<8x128xf32> to vector<8x32xf32>
    %344 = arith.negf %343 : vector<8x32xf32>
    %345 = math.exp %344 : vector<8x32xf32>
    %cst_67 = arith.constant 1.000000e+00 : f32
    %346 = vector.broadcast %cst_67 : f32 to vector<8x32xf32>
    %347 = arith.addf %346, %345 : vector<8x32xf32>
    %348 = arith.divf %346, %347 : vector<8x32xf32>
    %349 = arith.mulf %340, %295 : vector<8x32xf32>
    %350 = arith.mulf %334, %342 : vector<8x32xf32>
    %351 = arith.addf %349, %350 : vector<8x32xf32>
    %352 = math.tanh %351 : vector<8x32xf32>
    %353 = arith.mulf %348, %352 : vector<8x32xf32>
    %354 = vector.extract_strided_slice %5 {offsets = [48, 0], sizes = [8, 128], strides = [1, 1]} : vector<64x128xf32> to vector<8x128xf32>
    %cst_68 = arith.constant dense<0.000000e+00> : vector<8x128xf32>
    %355 = tpu.matmul %325, %12, %cst_68 {dimension_numbers = #tpu.dot_dimension_numbers<[1], [0], [0], [1], [0, 0, 1, 1], [], []>} : vector<8x32xf32>, vector<32x128xf32>, vector<8x128xf32> -> vector<8x128xf32>
    %356 = arith.addf %354, %355 : vector<8x128xf32>
    %357 = vector.extract_strided_slice %356 {offsets = [0, 0], sizes = [8, 32], strides = [1, 1]} : vector<8x128xf32> to vector<8x32xf32>
    %358 = arith.negf %357 : vector<8x32xf32>
    %359 = math.exp %358 : vector<8x32xf32>
    %cst_69 = arith.constant 1.000000e+00 : f32
    %360 = vector.broadcast %cst_69 : f32 to vector<8x32xf32>
    %361 = arith.addf %360, %359 : vector<8x32xf32>
    %362 = arith.divf %360, %361 : vector<8x32xf32>
    %363 = vector.extract_strided_slice %356 {offsets = [0, 32], sizes = [8, 32], strides = [1, 1]} : vector<8x128xf32> to vector<8x32xf32>
    %364 = arith.negf %363 : vector<8x32xf32>
    %365 = math.exp %364 : vector<8x32xf32>
    %cst_70 = arith.constant 1.000000e+00 : f32
    %366 = vector.broadcast %cst_70 : f32 to vector<8x32xf32>
    %367 = arith.addf %366, %365 : vector<8x32xf32>
    %368 = arith.divf %366, %367 : vector<8x32xf32>
    %369 = vector.extract_strided_slice %356 {offsets = [0, 64], sizes = [8, 32], strides = [1, 1]} : vector<8x128xf32> to vector<8x32xf32>
    %370 = math.tanh %369 : vector<8x32xf32>
    %371 = vector.extract_strided_slice %356 {offsets = [0, 96], sizes = [8, 32], strides = [1, 1]} : vector<8x128xf32> to vector<8x32xf32>
    %372 = arith.negf %371 : vector<8x32xf32>
    %373 = math.exp %372 : vector<8x32xf32>
    %cst_71 = arith.constant 1.000000e+00 : f32
    %374 = vector.broadcast %cst_71 : f32 to vector<8x32xf32>
    %375 = arith.addf %374, %373 : vector<8x32xf32>
    %376 = arith.divf %374, %375 : vector<8x32xf32>
    %377 = arith.mulf %368, %323 : vector<8x32xf32>
    %378 = arith.mulf %362, %370 : vector<8x32xf32>
    %379 = arith.addf %377, %378 : vector<8x32xf32>
    %380 = math.tanh %379 : vector<8x32xf32>
    %381 = arith.mulf %376, %380 : vector<8x32xf32>
    %382 = vector.extract_strided_slice %11 {offsets = [48, 0], sizes = [8, 128], strides = [1, 1]} : vector<64x128xf32> to vector<8x128xf32>
    %cst_72 = arith.constant dense<0.000000e+00> : vector<8x128xf32>
    %383 = tpu.matmul %353, %13, %cst_72 {dimension_numbers = #tpu.dot_dimension_numbers<[1], [0], [0], [1], [0, 0, 1, 1], [], []>} : vector<8x32xf32>, vector<32x128xf32>, vector<8x128xf32> -> vector<8x128xf32>
    %384 = arith.addf %382, %383 : vector<8x128xf32>
    %385 = vector.extract_strided_slice %384 {offsets = [0, 0], sizes = [8, 32], strides = [1, 1]} : vector<8x128xf32> to vector<8x32xf32>
    %386 = arith.negf %385 : vector<8x32xf32>
    %387 = math.exp %386 : vector<8x32xf32>
    %cst_73 = arith.constant 1.000000e+00 : f32
    %388 = vector.broadcast %cst_73 : f32 to vector<8x32xf32>
    %389 = arith.addf %388, %387 : vector<8x32xf32>
    %390 = arith.divf %388, %389 : vector<8x32xf32>
    %391 = vector.extract_strided_slice %384 {offsets = [0, 32], sizes = [8, 32], strides = [1, 1]} : vector<8x128xf32> to vector<8x32xf32>
    %392 = arith.negf %391 : vector<8x32xf32>
    %393 = math.exp %392 : vector<8x32xf32>
    %cst_74 = arith.constant 1.000000e+00 : f32
    %394 = vector.broadcast %cst_74 : f32 to vector<8x32xf32>
    %395 = arith.addf %394, %393 : vector<8x32xf32>
    %396 = arith.divf %394, %395 : vector<8x32xf32>
    %397 = vector.extract_strided_slice %384 {offsets = [0, 64], sizes = [8, 32], strides = [1, 1]} : vector<8x128xf32> to vector<8x32xf32>
    %398 = math.tanh %397 : vector<8x32xf32>
    %399 = vector.extract_strided_slice %384 {offsets = [0, 96], sizes = [8, 32], strides = [1, 1]} : vector<8x128xf32> to vector<8x32xf32>
    %400 = arith.negf %399 : vector<8x32xf32>
    %401 = math.exp %400 : vector<8x32xf32>
    %cst_75 = arith.constant 1.000000e+00 : f32
    %402 = vector.broadcast %cst_75 : f32 to vector<8x32xf32>
    %403 = arith.addf %402, %401 : vector<8x32xf32>
    %404 = arith.divf %402, %403 : vector<8x32xf32>
    %405 = arith.mulf %396, %351 : vector<8x32xf32>
    %406 = arith.mulf %390, %398 : vector<8x32xf32>
    %407 = arith.addf %405, %406 : vector<8x32xf32>
    %408 = math.tanh %407 : vector<8x32xf32>
    %409 = arith.mulf %404, %408 : vector<8x32xf32>
    %410 = vector.extract_strided_slice %5 {offsets = [56, 0], sizes = [8, 128], strides = [1, 1]} : vector<64x128xf32> to vector<8x128xf32>
    %cst_76 = arith.constant dense<0.000000e+00> : vector<8x128xf32>
    %411 = tpu.matmul %381, %12, %cst_76 {dimension_numbers = #tpu.dot_dimension_numbers<[1], [0], [0], [1], [0, 0, 1, 1], [], []>} : vector<8x32xf32>, vector<32x128xf32>, vector<8x128xf32> -> vector<8x128xf32>
    %412 = arith.addf %410, %411 : vector<8x128xf32>
    %413 = vector.extract_strided_slice %412 {offsets = [0, 0], sizes = [8, 32], strides = [1, 1]} : vector<8x128xf32> to vector<8x32xf32>
    %414 = arith.negf %413 : vector<8x32xf32>
    %415 = math.exp %414 : vector<8x32xf32>
    %cst_77 = arith.constant 1.000000e+00 : f32
    %416 = vector.broadcast %cst_77 : f32 to vector<8x32xf32>
    %417 = arith.addf %416, %415 : vector<8x32xf32>
    %418 = arith.divf %416, %417 : vector<8x32xf32>
    %419 = vector.extract_strided_slice %412 {offsets = [0, 32], sizes = [8, 32], strides = [1, 1]} : vector<8x128xf32> to vector<8x32xf32>
    %420 = arith.negf %419 : vector<8x32xf32>
    %421 = math.exp %420 : vector<8x32xf32>
    %cst_78 = arith.constant 1.000000e+00 : f32
    %422 = vector.broadcast %cst_78 : f32 to vector<8x32xf32>
    %423 = arith.addf %422, %421 : vector<8x32xf32>
    %424 = arith.divf %422, %423 : vector<8x32xf32>
    %425 = vector.extract_strided_slice %412 {offsets = [0, 64], sizes = [8, 32], strides = [1, 1]} : vector<8x128xf32> to vector<8x32xf32>
    %426 = math.tanh %425 : vector<8x32xf32>
    %427 = vector.extract_strided_slice %412 {offsets = [0, 96], sizes = [8, 32], strides = [1, 1]} : vector<8x128xf32> to vector<8x32xf32>
    %428 = arith.negf %427 : vector<8x32xf32>
    %429 = math.exp %428 : vector<8x32xf32>
    %cst_79 = arith.constant 1.000000e+00 : f32
    %430 = vector.broadcast %cst_79 : f32 to vector<8x32xf32>
    %431 = arith.addf %430, %429 : vector<8x32xf32>
    %432 = arith.divf %430, %431 : vector<8x32xf32>
    %433 = arith.mulf %424, %379 : vector<8x32xf32>
    %434 = arith.mulf %418, %426 : vector<8x32xf32>
    %435 = arith.addf %433, %434 : vector<8x32xf32>
    %436 = math.tanh %435 : vector<8x32xf32>
    %437 = arith.mulf %432, %436 : vector<8x32xf32>
    %438 = vector.extract_strided_slice %11 {offsets = [56, 0], sizes = [8, 128], strides = [1, 1]} : vector<64x128xf32> to vector<8x128xf32>
    %cst_80 = arith.constant dense<0.000000e+00> : vector<8x128xf32>
    %439 = tpu.matmul %409, %13, %cst_80 {dimension_numbers = #tpu.dot_dimension_numbers<[1], [0], [0], [1], [0, 0, 1, 1], [], []>} : vector<8x32xf32>, vector<32x128xf32>, vector<8x128xf32> -> vector<8x128xf32>
    %440 = arith.addf %438, %439 : vector<8x128xf32>
    %441 = vector.extract_strided_slice %440 {offsets = [0, 0], sizes = [8, 32], strides = [1, 1]} : vector<8x128xf32> to vector<8x32xf32>
    %442 = arith.negf %441 : vector<8x32xf32>
    %443 = math.exp %442 : vector<8x32xf32>
    %cst_81 = arith.constant 1.000000e+00 : f32
    %444 = vector.broadcast %cst_81 : f32 to vector<8x32xf32>
    %445 = arith.addf %444, %443 : vector<8x32xf32>
    %446 = arith.divf %444, %445 : vector<8x32xf32>
    %447 = vector.extract_strided_slice %440 {offsets = [0, 32], sizes = [8, 32], strides = [1, 1]} : vector<8x128xf32> to vector<8x32xf32>
    %448 = arith.negf %447 : vector<8x32xf32>
    %449 = math.exp %448 : vector<8x32xf32>
    %cst_82 = arith.constant 1.000000e+00 : f32
    %450 = vector.broadcast %cst_82 : f32 to vector<8x32xf32>
    %451 = arith.addf %450, %449 : vector<8x32xf32>
    %452 = arith.divf %450, %451 : vector<8x32xf32>
    %453 = vector.extract_strided_slice %440 {offsets = [0, 64], sizes = [8, 32], strides = [1, 1]} : vector<8x128xf32> to vector<8x32xf32>
    %454 = math.tanh %453 : vector<8x32xf32>
    %455 = vector.extract_strided_slice %440 {offsets = [0, 96], sizes = [8, 32], strides = [1, 1]} : vector<8x128xf32> to vector<8x32xf32>
    %456 = arith.negf %455 : vector<8x32xf32>
    %457 = math.exp %456 : vector<8x32xf32>
    %cst_83 = arith.constant 1.000000e+00 : f32
    %458 = vector.broadcast %cst_83 : f32 to vector<8x32xf32>
    %459 = arith.addf %458, %457 : vector<8x32xf32>
    %460 = arith.divf %458, %459 : vector<8x32xf32>
    %461 = arith.mulf %452, %407 : vector<8x32xf32>
    %462 = arith.mulf %446, %454 : vector<8x32xf32>
    %463 = arith.addf %461, %462 : vector<8x32xf32>
    %464 = math.tanh %463 : vector<8x32xf32>
    %465 = arith.mulf %460, %464 : vector<8x32xf32>
    %c0_84 = arith.constant 0 : index
    %c0_85 = arith.constant 0 : index
    %466 = vector.load %arg8[%c0_84, %c0_85] : memref<8x32xf32, #tpu.memory_space<vmem>>, vector<8x32xf32>
    tpu.vector_store %arg8[%c0_84, %c0_85], %437 {strides = array<i32>} : memref<8x32xf32, #tpu.memory_space<vmem>>, vector<8x32xf32>,
    %c0_86 = arith.constant 0 : index
    %c0_87 = arith.constant 0 : index
    %467 = vector.load %arg9[%c0_86, %c0_87] : memref<8x32xf32, #tpu.memory_space<vmem>>, vector<8x32xf32>
    tpu.vector_store %arg9[%c0_86, %c0_87], %465 {strides = array<i32>} : memref<8x32xf32, #tpu.memory_space<vmem>>, vector<8x32xf32>,
    return
  }
}

module attributes {stable_mosaic.version = 11 : i64} {
  func.func @_mdn_kernel(%arg0: memref<2x64xf32, #tpu.memory_space<vmem>>, %arg1: memref<64x64xf32, #tpu.memory_space<vmem>>, %arg2: memref<1x64xf32, #tpu.memory_space<vmem>>, %arg3: memref<64x64xf32, #tpu.memory_space<vmem>>, %arg4: memref<1x64xf32, #tpu.memory_space<vmem>>, %arg5: memref<3x64x5xf32, #tpu.memory_space<vmem>>, %arg6: memref<3x1x5xf32, #tpu.memory_space<vmem>>, %arg7: memref<64x30xf32, #tpu.memory_space<vmem>>, %arg8: memref<1x30xf32, #tpu.memory_space<vmem>>, %arg9: memref<64x30xf32, #tpu.memory_space<vmem>>, %arg10: memref<1x30xf32, #tpu.memory_space<vmem>>, %arg11: memref<3x2x5xf32, #tpu.memory_space<vmem>>, %arg12: memref<2x30xf32, #tpu.memory_space<vmem>>, %arg13: memref<2x30xf32, #tpu.memory_space<vmem>>) attributes {dimension_semantics = [], scalar_prefetch = 0 : i64, scratch_operands = 0 : i64, tpu.core_type = #tpu.core_type<tc>} {
    %c0 = arith.constant 0 : index
    %c0_0 = arith.constant 0 : index
    %0 = vector.load %arg0[%c0, %c0_0] : memref<2x64xf32, #tpu.memory_space<vmem>>, vector<2x64xf32>
    %c0_1 = arith.constant 0 : index
    %c0_2 = arith.constant 0 : index
    %1 = vector.load %arg1[%c0_1, %c0_2] : memref<64x64xf32, #tpu.memory_space<vmem>>, vector<64x64xf32>
    %cst = arith.constant dense<0.000000e+00> : vector<2x64xf32>
    %2 = tpu.matmul %0, %1, %cst {dimension_numbers = #tpu.dot_dimension_numbers<[1], [0], [0], [1], [0, 0, 1, 1], [], []>} : vector<2x64xf32>, vector<64x64xf32>, vector<2x64xf32> -> vector<2x64xf32>
    %c0_3 = arith.constant 0 : index
    %c0_4 = arith.constant 0 : index
    %3 = vector.load %arg2[%c0_3, %c0_4] : memref<1x64xf32, #tpu.memory_space<vmem>>, vector<1x64xf32>
    %4 = vector.broadcast %3 : vector<1x64xf32> to vector<2x64xf32>
    %5 = arith.addf %2, %4 : vector<2x64xf32>
    %cst_5 = arith.constant 0.000000e+00 : f32
    %6 = vector.broadcast %cst_5 : f32 to vector<2x64xf32>
    %7 = arith.maximumf %5, %6 : vector<2x64xf32>
    %c0_6 = arith.constant 0 : index
    %c0_7 = arith.constant 0 : index
    %8 = vector.load %arg3[%c0_6, %c0_7] : memref<64x64xf32, #tpu.memory_space<vmem>>, vector<64x64xf32>
    %cst_8 = arith.constant dense<0.000000e+00> : vector<2x64xf32>
    %9 = tpu.matmul %7, %8, %cst_8 {dimension_numbers = #tpu.dot_dimension_numbers<[1], [0], [0], [1], [0, 0, 1, 1], [], []>} : vector<2x64xf32>, vector<64x64xf32>, vector<2x64xf32> -> vector<2x64xf32>
    %c0_9 = arith.constant 0 : index
    %c0_10 = arith.constant 0 : index
    %10 = vector.load %arg4[%c0_9, %c0_10] : memref<1x64xf32, #tpu.memory_space<vmem>>, vector<1x64xf32>
    %11 = vector.broadcast %10 : vector<1x64xf32> to vector<2x64xf32>
    %12 = arith.addf %9, %11 : vector<2x64xf32>
    %cst_11 = arith.constant 0.000000e+00 : f32
    %13 = vector.broadcast %cst_11 : f32 to vector<2x64xf32>
    %14 = arith.maximumf %12, %13 : vector<2x64xf32>
    %c0_12 = arith.constant 0 : index
    %c0_13 = arith.constant 0 : index
    %15 = vector.load %arg7[%c0_12, %c0_13] : memref<64x30xf32, #tpu.memory_space<vmem>>, vector<64x30xf32>
    %cst_14 = arith.constant dense<0.000000e+00> : vector<2x30xf32>
    %16 = tpu.matmul %14, %15, %cst_14 {dimension_numbers = #tpu.dot_dimension_numbers<[1], [0], [0], [1], [0, 0, 1, 1], [], []>} : vector<2x64xf32>, vector<64x30xf32>, vector<2x30xf32> -> vector<2x30xf32>
    %c0_15 = arith.constant 0 : index
    %c0_16 = arith.constant 0 : index
    %17 = vector.load %arg8[%c0_15, %c0_16] : memref<1x30xf32, #tpu.memory_space<vmem>>, vector<1x30xf32>
    %18 = vector.broadcast %17 : vector<1x30xf32> to vector<2x30xf32>
    %19 = arith.addf %16, %18 : vector<2x30xf32>
    %c0_17 = arith.constant 0 : index
    %c0_18 = arith.constant 0 : index
    %20 = vector.load %arg12[%c0_17, %c0_18] : memref<2x30xf32, #tpu.memory_space<vmem>>, vector<2x30xf32>
    tpu.vector_store %arg12[%c0_17, %c0_18], %19 {strides = array<i32>} : memref<2x30xf32, #tpu.memory_space<vmem>>, vector<2x30xf32>,
    %c0_19 = arith.constant 0 : index
    %c0_20 = arith.constant 0 : index
    %21 = vector.load %arg9[%c0_19, %c0_20] : memref<64x30xf32, #tpu.memory_space<vmem>>, vector<64x30xf32>
    %cst_21 = arith.constant dense<0.000000e+00> : vector<2x30xf32>
    %22 = tpu.matmul %14, %21, %cst_21 {dimension_numbers = #tpu.dot_dimension_numbers<[1], [0], [0], [1], [0, 0, 1, 1], [], []>} : vector<2x64xf32>, vector<64x30xf32>, vector<2x30xf32> -> vector<2x30xf32>
    %c0_22 = arith.constant 0 : index
    %c0_23 = arith.constant 0 : index
    %23 = vector.load %arg10[%c0_22, %c0_23] : memref<1x30xf32, #tpu.memory_space<vmem>>, vector<1x30xf32>
    %24 = vector.broadcast %23 : vector<1x30xf32> to vector<2x30xf32>
    %25 = arith.addf %22, %24 : vector<2x30xf32>
    %26 = math.exp %25 : vector<2x30xf32>
    %c0_24 = arith.constant 0 : index
    %c0_25 = arith.constant 0 : index
    %27 = vector.load %arg13[%c0_24, %c0_25] : memref<2x30xf32, #tpu.memory_space<vmem>>, vector<2x30xf32>
    tpu.vector_store %arg13[%c0_24, %c0_25], %26 {strides = array<i32>} : memref<2x30xf32, #tpu.memory_space<vmem>>, vector<2x30xf32>,
    %c0_26 = arith.constant 0 : index
    %c0_27 = arith.constant 0 : index
    %c0_28 = arith.constant 0 : index
    %28 = vector.load %arg5[%c0_26, %c0_27, %c0_28] : memref<3x64x5xf32, #tpu.memory_space<vmem>>, vector<1x64x5xf32>
    %29 = vector.shape_cast %28 : vector<1x64x5xf32> to vector<64x5xf32>
    %cst_29 = arith.constant dense<0.000000e+00> : vector<2x5xf32>
    %30 = tpu.matmul %14, %29, %cst_29 {dimension_numbers = #tpu.dot_dimension_numbers<[1], [0], [0], [1], [0, 0, 1, 1], [], []>} : vector<2x64xf32>, vector<64x5xf32>, vector<2x5xf32> -> vector<2x5xf32>
    %c0_30 = arith.constant 0 : index
    %c0_31 = arith.constant 0 : index
    %c0_32 = arith.constant 0 : index
    %31 = vector.load %arg6[%c0_30, %c0_31, %c0_32] : memref<3x1x5xf32, #tpu.memory_space<vmem>>, vector<1x1x5xf32>
    %32 = vector.shape_cast %31 : vector<1x1x5xf32> to vector<1x5xf32>
    %33 = vector.broadcast %32 : vector<1x5xf32> to vector<2x5xf32>
    %34 = arith.addf %30, %33 : vector<2x5xf32>
    %c1 = arith.constant 1 : index
    %c0_33 = arith.constant 0 : index
    %c0_34 = arith.constant 0 : index
    %35 = vector.load %arg5[%c1, %c0_33, %c0_34] : memref<3x64x5xf32, #tpu.memory_space<vmem>>, vector<1x64x5xf32>
    %36 = vector.shape_cast %35 : vector<1x64x5xf32> to vector<64x5xf32>
    %cst_35 = arith.constant dense<0.000000e+00> : vector<2x5xf32>
    %37 = tpu.matmul %14, %36, %cst_35 {dimension_numbers = #tpu.dot_dimension_numbers<[1], [0], [0], [1], [0, 0, 1, 1], [], []>} : vector<2x64xf32>, vector<64x5xf32>, vector<2x5xf32> -> vector<2x5xf32>
    %c1_36 = arith.constant 1 : index
    %c0_37 = arith.constant 0 : index
    %c0_38 = arith.constant 0 : index
    %38 = vector.load %arg6[%c1_36, %c0_37, %c0_38] : memref<3x1x5xf32, #tpu.memory_space<vmem>>, vector<1x1x5xf32>
    %39 = vector.shape_cast %38 : vector<1x1x5xf32> to vector<1x5xf32>
    %40 = vector.broadcast %39 : vector<1x5xf32> to vector<2x5xf32>
    %41 = arith.addf %37, %40 : vector<2x5xf32>
    %c2 = arith.constant 2 : index
    %c0_39 = arith.constant 0 : index
    %c0_40 = arith.constant 0 : index
    %42 = vector.load %arg5[%c2, %c0_39, %c0_40] : memref<3x64x5xf32, #tpu.memory_space<vmem>>, vector<1x64x5xf32>
    %43 = vector.shape_cast %42 : vector<1x64x5xf32> to vector<64x5xf32>
    %cst_41 = arith.constant dense<0.000000e+00> : vector<2x5xf32>
    %44 = tpu.matmul %14, %43, %cst_41 {dimension_numbers = #tpu.dot_dimension_numbers<[1], [0], [0], [1], [0, 0, 1, 1], [], []>} : vector<2x64xf32>, vector<64x5xf32>, vector<2x5xf32> -> vector<2x5xf32>
    %c2_42 = arith.constant 2 : index
    %c0_43 = arith.constant 0 : index
    %c0_44 = arith.constant 0 : index
    %45 = vector.load %arg6[%c2_42, %c0_43, %c0_44] : memref<3x1x5xf32, #tpu.memory_space<vmem>>, vector<1x1x5xf32>
    %46 = vector.shape_cast %45 : vector<1x1x5xf32> to vector<1x5xf32>
    %47 = vector.broadcast %46 : vector<1x5xf32> to vector<2x5xf32>
    %48 = arith.addf %44, %47 : vector<2x5xf32>
    %49 = arith.maximumf %34, %41 : vector<2x5xf32>
    %50 = arith.maximumf %49, %48 : vector<2x5xf32>
    %51 = arith.subf %34, %50 : vector<2x5xf32>
    %52 = math.exp %51 : vector<2x5xf32>
    %53 = arith.subf %41, %50 : vector<2x5xf32>
    %54 = math.exp %53 : vector<2x5xf32>
    %55 = arith.subf %48, %50 : vector<2x5xf32>
    %56 = math.exp %55 : vector<2x5xf32>
    %57 = arith.addf %52, %54 : vector<2x5xf32>
    %58 = arith.addf %57, %56 : vector<2x5xf32>
    %cst_45 = arith.constant 1.000000e+00 : f32
    %59 = vector.broadcast %cst_45 : f32 to vector<2x5xf32>
    %60 = arith.divf %59, %58 : vector<2x5xf32>
    %61 = arith.mulf %52, %60 : vector<2x5xf32>
    %c0_46 = arith.constant 0 : index
    %c0_47 = arith.constant 0 : index
    %c0_48 = arith.constant 0 : index
    %62 = vector.load %arg11[%c0_46, %c0_47, %c0_48] : memref<3x2x5xf32, #tpu.memory_space<vmem>>, vector<1x2x5xf32>
    %63 = vector.shape_cast %62 : vector<1x2x5xf32> to vector<2x5xf32>
    %64 = vector.shape_cast %61 : vector<2x5xf32> to vector<1x2x5xf32>
    tpu.vector_store %arg11[%c0_46, %c0_47, %c0_48], %64 {strides = array<i32>} : memref<3x2x5xf32, #tpu.memory_space<vmem>>, vector<1x2x5xf32>,
    %65 = arith.mulf %54, %60 : vector<2x5xf32>
    %c1_49 = arith.constant 1 : index
    %c0_50 = arith.constant 0 : index
    %c0_51 = arith.constant 0 : index
    %66 = vector.load %arg11[%c1_49, %c0_50, %c0_51] : memref<3x2x5xf32, #tpu.memory_space<vmem>>, vector<1x2x5xf32>
    %67 = vector.shape_cast %66 : vector<1x2x5xf32> to vector<2x5xf32>
    %68 = vector.shape_cast %65 : vector<2x5xf32> to vector<1x2x5xf32>
    tpu.vector_store %arg11[%c1_49, %c0_50, %c0_51], %68 {strides = array<i32>} : memref<3x2x5xf32, #tpu.memory_space<vmem>>, vector<1x2x5xf32>,
    %69 = arith.mulf %56, %60 : vector<2x5xf32>
    %c2_52 = arith.constant 2 : index
    %c0_53 = arith.constant 0 : index
    %c0_54 = arith.constant 0 : index
    %70 = vector.load %arg11[%c2_52, %c0_53, %c0_54] : memref<3x2x5xf32, #tpu.memory_space<vmem>>, vector<1x2x5xf32>
    %71 = vector.shape_cast %70 : vector<1x2x5xf32> to vector<2x5xf32>
    %72 = vector.shape_cast %69 : vector<2x5xf32> to vector<1x2x5xf32>
    tpu.vector_store %arg11[%c2_52, %c0_53, %c0_54], %72 {strides = array<i32>} : memref<3x2x5xf32, #tpu.memory_space<vmem>>, vector<1x2x5xf32>,
    return
  }
}

</mosaic_0001>

<bundles_post_ra>
// kernel: _lambda_.5
= control target key start
LH: loop header
LB: loop body
LE: loop exit
PB: predicated region body
PF: predicated region fallthrough
CT: control target
= control target key end

     0   :  { %vm42_vm0 = vcmask 293888   ;;  %vm91_vm1 = vcmask 1043456   ;;  %vm256_vm2 = vcmask 130048   ;;  %s530_s1 = inlined_call_operand.vmem [shape: f32[36,16], index: 1, kind: input, shape index: {}]   ;;  %s531_s0 = inlined_call_operand.vmem [shape: f32[128,36], index: 0, kind: input, shape index: {}]   ;;  %s532_s2 = inlined_call_operand.vmem [shape: f32[1,16], index: 2, kind: input, shape index: {}]   ;;  %s533_s3 = inlined_call_operand.vmem [shape: f32[128,16], index: 3, kind: output, shape index: {}]  }
   0x1   :  { %v30_v0 = vld [vmem:[%s530_s1] sm:$0xff]  ;;  %v31_v1 = vld [vmem:[%s530_s1 + $0x8] sm:$0xff]  ;;  %v32_v2 = vld [vmem:[%s530_s1 + $0x10] sm:$0xff] }
   0x2   :  { %v350_v3 = vpack.c.bf16 %v31_v1, %v30_v0  ;;  %v33_v4 = vld [vmem:[%s530_s1 + $0x18] sm:$0xff]  ;;  %v14_v5 = vld [vmem:[%s531_s0] sm:$0xff]  ;;  %v15_v9 = vld [vmem:[%s531_s0 + $0x8] sm:$0xff] }
   0x3   :  { %v354_v6 = vpack.c.bf16 %v33_v4, %v32_v2  ;;  %326 = vmatprep.mubr.msk.f32.mxu0 %vm42_vm0, %v14_v5  ;;  %v22_v7 = vld [vmem:[%s531_s0 + $0x40] sm:$0xff]  ;;  %v23_v10 = vld [vmem:[%s531_s0 + $0x48] sm:$0xff]  ;;  %v16_v11 = vld [vmem:[%s531_s0 + $0x10] sm:$0xff] }
   0x4   :  { %351 = vmatprep.subr.bf16.mxu0 %v350_v3  ;;  %358 = vmatprep.subr.bf16.mxu1 %v350_v3  ;;  %v34_v8 = vld [vmem:[%s530_s1 + $0x20] sm:$0xf]  ;;  %v24_v12 = vld [vmem:[%s531_s0 + $0x50] sm:$0xff]  ;;  %v17_v13 = vld [vmem:[%s531_s0 + $0x18] sm:$0xff] }
   0x5   :  { %353 = vmatpush3.bf16.msra.mxu0 %v350_v3  ;;  %361 = vmatpush3.bf16.msra.mxu1 %v350_v3  ;;  %v25_v14 = vld [vmem:[%s531_s0 + $0x58] sm:$0xff]  ;;  %v18_v15 = vld [vmem:[%s531_s0 + $0x20] sm:$0xff]  ;;  %v19_v17 = vld [vmem:[%s531_s0 + $0x28] sm:$0xff] }
   0x6   :  { %355 = vmatprep.subr.bf16.mxu0 %v354_v6  ;;  %359 = vmatprep.subr.bf16.mxu1 %v354_v6  ;;  %v26_v16 = vld [vmem:[%s531_s0 + $0x60] sm:$0xff]  ;;  %v27_v18 = vld [vmem:[%s531_s0 + $0x68] sm:$0xff]  ;;  %v20_v19 = vld [vmem:[%s531_s0 + $0x30] sm:$0xff] }
   0x7   :  { %338 = vmatprep.mubr.msk.f32.mxu1 %vm42_vm0, %v22_v7  ;;  %v28_v20 = vld [vmem:[%s531_s0 + $0x70] sm:$0xff]  ;;  %v21_v21 = vld [vmem:[%s531_s0 + $0x38] sm:$0xff]  ;;  %v277_v23 = vld [vmem:[%s532_s2] ss:$0 sm:$0xff] }
   0x8   :  { %v29_v22 = vld [vmem:[%s531_s0 + $0x78] sm:$0xff] }
   0x9   :  { %357 = vmatpush3.bf16.msra.mxu0 %v354_v6  ;;  %362 = vmatpush3.bf16.msra.mxu1 %v354_v6 }
   0xa   :  { %324 = vmatprep.subr.msk.mxu0 %vm91_vm1, %v34_v8  ;;  %360 = vmatprep.subr.msk.mxu1 %vm91_vm1, %v34_v8 }
   0xd   :  { %325 = vmatpush3.msk.msra.mxu0 %vm91_vm1, %v34_v8  ;;  %363 = vmatpush3.msk.msra.mxu1 %vm91_vm1, %v34_v8 }
   0xe   :  { %327 = vmatmul.mubr.msk.f32.vlgmr.msra.gmra.mrb[0].mxu0 %vm42_vm0, %v15_v9  ;;  %339 = vmatmul.mubr.msk.f32.vlgmr.msra.gmra.mrb[0].mxu1 %vm42_vm0, %v23_v10 }
   0xf   :  { %329 = vmatprep.mubr.msk.f32.mxu0 %vm42_vm0, %v16_v11  ;;  %341 = vmatprep.mubr.msk.f32.mxu1 %vm42_vm0, %v24_v12 }
  0x12   :  { %330 = vmatmul.mubr.msk.f32.gmra.mrb[2].mxu0 %vm42_vm0, %v17_v13  ;;  %342 = vmatmul.mubr.msk.f32.gmra.mrb[2].mxu1 %vm42_vm0, %v25_v14 }
  0x13   :  { %332 = vmatprep.mubr.msk.f32.mxu0 %vm42_vm0, %v18_v15  ;;  %344 = vmatprep.mubr.msk.f32.mxu1 %vm42_vm0, %v26_v16 }
  0x16   :  { %333 = vmatmul.mubr.msk.f32.gmra.mrb[4].mxu0 %vm42_vm0, %v19_v17  ;;  %345 = vmatmul.mubr.msk.f32.gmra.mrb[4].mxu1 %vm42_vm0, %v27_v18 }
  0x17   :  { %335 = vmatprep.mubr.msk.f32.mxu0 %vm42_vm0, %v20_v19  ;;  %347 = vmatprep.mubr.msk.f32.mxu1 %vm42_vm0, %v28_v20 }
  0x1a   :  { %336 = vmatmul.mubr.msk.f32.gmra.mrb[6].mxu0 %vm42_vm0, %v21_v21  ;;  %348 = vmatmul.mubr.msk.f32.gmra.mrb[6].mxu1 %vm42_vm0, %v29_v22 }
  0xe1   :  { %v328_v24 = vpop.f32.mrb[0].mxu0  ;;  %v340_v25 = vpop.f32.mrb[0].mxu1 }
  0xe2   :  { %v167_v26 = vadd.f32 %v328_v24, %v277_v23  ;;  %v207_v27 = vadd.f32 %v340_v25, %v277_v23  ;;  %v161_v28 = vpop.f32.mrb[1].mxu0  ;;  %v201_v29 = vpop.f32.mrb[1].mxu1 }
  0xe3   :  { %v162_v30 = vadd.f32 %v277_v23, %v161_v28  ;;  %v202_v31 = vadd.f32 %v277_v23, %v201_v29 }
  0xe4   :  { %v241_v32 = vmax.f32 %v167_v26, 0.0  ;;  %v249_v33 = vmax.f32 %v207_v27, 0.0 }
  0xe5   :  { %v240_v34 = vmax.f32 %v162_v30, 0.0  ;;  %v248_v35 = vmax.f32 %v202_v31, 0.0  ;;  %v331_v36 = vpop.f32.mrb[2].mxu0  ;;  %v343_v37 = vpop.f32.mrb[2].mxu1 }
  0xe6   :  { %258 = vst.msk [vmem:[%s533_s3 + $0x8] sm:$0xff] %vm256_vm2, %v241_v32  ;;  %266 = vst.msk [vmem:[%s533_s3 + $0x48] sm:$0xff] %vm256_vm2, %v249_v33  ;;  %v177_v38 = vadd.f32 %v331_v36, %v277_v23  ;;  %v217_v39 = vadd.f32 %v343_v37, %v277_v23  ;;  %v171_v40 = vpop.f32.mrb[3].mxu0  ;;  %v211_v41 = vpop.f32.mrb[3].mxu1 }
  0xe7   :  { %257 = vst.msk [vmem:[%s533_s3] sm:$0xff] %vm256_vm2, %v240_v34  ;;  %265 = vst.msk [vmem:[%s533_s3 + $0x40] sm:$0xff] %vm256_vm2, %v248_v35  ;;  %v172_v42 = vadd.f32 %v277_v23, %v171_v40  ;;  %v212_v43 = vadd.f32 %v277_v23, %v211_v41 }
  0xe8   :  { %v243_v44 = vmax.f32 %v177_v38, 0.0  ;;  %v251_v45 = vmax.f32 %v217_v39, 0.0 }
  0xe9   :  { %v242_v46 = vmax.f32 %v172_v42, 0.0  ;;  %v250_v47 = vmax.f32 %v212_v43, 0.0  ;;  %v334_v48 = vpop.f32.mrb[4].mxu0  ;;  %v346_v49 = vpop.f32.mrb[4].mxu1 }
  0xea   :  { %260 = vst.msk [vmem:[%s533_s3 + $0x18] sm:$0xff] %vm256_vm2, %v243_v44  ;;  %268 = vst.msk [vmem:[%s533_s3 + $0x58] sm:$0xff] %vm256_vm2, %v251_v45  ;;  %v187_v50 = vadd.f32 %v334_v48, %v277_v23  ;;  %v227_v51 = vadd.f32 %v346_v49, %v277_v23  ;;  %v181_v52 = vpop.f32.mrb[5].mxu0  ;;  %v221_v53 = vpop.f32.mrb[5].mxu1 }
  0xeb   :  { %259 = vst.msk [vmem:[%s533_s3 + $0x10] sm:$0xff] %vm256_vm2, %v242_v46  ;;  %267 = vst.msk [vmem:[%s533_s3 + $0x50] sm:$0xff] %vm256_vm2, %v250_v47  ;;  %v182_v54 = vadd.f32 %v277_v23, %v181_v52  ;;  %v222_v55 = vadd.f32 %v277_v23, %v221_v53 }
  0xec   :  { %v245_v56 = vmax.f32 %v187_v50, 0.0  ;;  %v253_v57 = vmax.f32 %v227_v51, 0.0 }
  0xed   :  { %v244_v58 = vmax.f32 %v182_v54, 0.0  ;;  %v252_v59 = vmax.f32 %v222_v55, 0.0  ;;  %v337_v60 = vpop.f32.mrb[6].mxu0  ;;  %v349_v61 = vpop.f32.mrb[6].mxu1 }
  0xee   :  { %262 = vst.msk [vmem:[%s533_s3 + $0x28] sm:$0xff] %vm256_vm2, %v245_v56  ;;  %270 = vst.msk [vmem:[%s533_s3 + $0x68] sm:$0xff] %vm256_vm2, %v253_v57  ;;  %v197_v62 = vadd.f32 %v337_v60, %v277_v23  ;;  %v237_v63 = vadd.f32 %v349_v61, %v277_v23  ;;  %v191_v0 = vpop.f32.mrb[7].mxu0  ;;  %v231_v1 = vpop.f32.mrb[7].mxu1 }
  0xef   :  { %261 = vst.msk [vmem:[%s533_s3 + $0x20] sm:$0xff] %vm256_vm2, %v244_v58  ;;  %269 = vst.msk [vmem:[%s533_s3 + $0x60] sm:$0xff] %vm256_vm2, %v252_v59  ;;  %v192_v2 = vadd.f32 %v277_v23, %v191_v0  ;;  %v232_v3 = vadd.f32 %v277_v23, %v231_v1 }
  0xf0   :  { %v247_v4 = vmax.f32 %v197_v62, 0.0  ;;  %v255_v5 = vmax.f32 %v237_v63, 0.0 }
  0xf1   :  { %v246_v6 = vmax.f32 %v192_v2, 0.0  ;;  %v254_v7 = vmax.f32 %v232_v3, 0.0 }
  0xf2   :  { %264 = vst.msk [vmem:[%s533_s3 + $0x38] sm:$0xff] %vm256_vm2, %v247_v4  ;;  %272 = vst.msk [vmem:[%s533_s3 + $0x78] sm:$0xff] %vm256_vm2, %v255_v5 }
  0xf3   :  { %263 = vst.msk [vmem:[%s533_s3 + $0x30] sm:$0xff] %vm256_vm2, %v246_v6  ;;  %271 = vst.msk [vmem:[%s533_s3 + $0x70] sm:$0xff] %vm256_vm2, %v254_v7 }

// kernel: _lambda_.6
= control target key start
LH: loop header
LB: loop body
LE: loop exit
PB: predicated region body
PF: predicated region fallthrough
CT: control target
= control target key end

     0   :  { %s2387_s24 = smov 0   ;;  %s2632_s0 = inlined_call_operand.vmem [shape: f32[2,16,144], index: 0, kind: input, shape index: {}]   ;;  %s2633_s1 = inlined_call_operand.vmem [shape: f32[144,32], index: 1, kind: input, shape index: {}]   ;;  %s2634_s2 = inlined_call_operand.vmem [shape: f32[1,32], index: 2, kind: input, shape index: {}]   ;;  %s2635_s3 = inlined_call_operand.vmem [shape: f32[32,96], index: 3, kind: input, shape index: {}]   ;;  %s2636_s4 = inlined_call_operand.vmem [shape: f32[1,96], index: 4, kind: input, shape index: {}]   ;;  %s2637_s5 = inlined_call_operand.vmem [shape: f32[32,32], index: 5, kind: input, shape index: {}]   ;;  %s2638_s6 = inlined_call_operand.vmem [shape: f32[1,32], index: 6, kind: input, shape index: {}]   ;;  %s2639_s7 = inlined_call_operand.vmem [shape: f32[2,1,32], index: 7, kind: output, shape index: {}]  }
   0x1 LB: > { %s1921_s25 = sadd.s32 4294967295, %s2330_s24   ;;  %p1925_p0 = scmp.ge.s32.totalorder %s2330_s24, 1  ;;  %s2330_s24 = sphi %s2387_s24, %s17_s24  }
   0x2   : > { %p237_p1 = scmp.lt.s32.totalorder %s2330_s24, 3 }
   0x4   : > { %p238_p2 = pnand %p1925_p0, %p237_p1 }
   0x5   : > { %v279_v0 = vld [vmem:[%s2633_s1] sm:$0xff] (!%p238_p2)  ;;  %v280_v1 = vld [vmem:[%s2633_s1 + $0x8] sm:$0xff] (!%p238_p2)  ;;  %v281_v2 = vld [vmem:[%s2633_s1 + $0x10] sm:$0xff] (!%p238_p2)  ;;  %p267_p3 = scmp.lt.s32.totalorder (!%p238_p2), %s1921_s25, 1  ;;  %v2332_v3 = vmov (!%p238_p2), 0.0|0.0   ;;  %vm304_vm0 = vcmask (!%p238_p2), 130048  }
   0x6   : > { %241 = sbr.rel (%p238_p2) target bundleno = 4282 (0x10ba), region = 48  ;;  %2142 = vmatprep.subr.bf16.mxu0 (!%p238_p2), %v2332_v3  ;;  %v2143_v4 = vpack.c.bf16 (!%p238_p2), %v280_v1, %v279_v0  ;;  %v282_v5 = vld [vmem:[%s2633_s1 + $0x18] sm:$0xff] (!%p238_p2)  ;;  %v283_v7 = vld [vmem:[%s2633_s1 + $0x20] sm:$0xff] (!%p238_p2)  ;;  %v284_v8 = vld [vmem:[%s2633_s1 + $0x28] sm:$0xff] (!%p238_p2)  ;;  %vm399_vm1 = vcmask (!%p238_p2), 261120   ;;  %vm491_vm2 = vcmask (!%p238_p2), 64512  }
   0x7   : > { %v2146_v6 = vpack.c.bf16 (!%p238_p2), %v282_v5, %v281_v2  ;;  %v2149_v10 = vpack.c.bf16 (!%p238_p2), %v284_v8, %v283_v7  ;;  %v285_v11 = vld [vmem:[%s2633_s1 + $0x30] sm:$0xff] (!%p238_p2)  ;;  %v286_v12 = vld [vmem:[%s2633_s1 + $0x38] sm:$0xff] (!%p238_p2)  ;;  %v287_v14 = vld [vmem:[%s2633_s1 + $0x40] sm:$0xff] (!%p238_p2)  ;;  %s2333_s13 = smov (!%p238_p2), 96   ;;  %s2334_s14 = smov (!%p238_p2), 120   ;;  %vm2337_vm4 = vmmov (!%p238_p2), 0  }
   0x8   : > { %2144 = vmatpush1.bf16.msra.mxu0 (!%p238_p2), %v2143_v4  ;;  %v2152_v13 = vpack.c.bf16 (!%p238_p2), %v286_v12, %v285_v11  ;;  %v288_v15 = vld [vmem:[%s2633_s1 + $0x48] sm:$0xff] (!%p238_p2)  ;;  %v289_v17 = vld [vmem:[%s2633_s1 + $0x50] sm:$0xff] (!%p238_p2)  ;;  %v290_v18 = vld [vmem:[%s2633_s1 + $0x58] sm:$0xff] (!%p238_p2)  ;;  %s2336_s16 = smov (!%p238_p2), 88   ;;  %s2340_s20 = smov (!%p238_p2), 80   ;;  %vm1872_vm5 = vcmask (!%p238_p2), 253952  }
   0x9   : > { %2145 = vmatprep.subr.bf16.mxu0 (!%p238_p2), %v2332_v3  ;;  %v2155_v16 = vpack.c.bf16 (!%p238_p2), %v288_v15, %v287_v14  ;;  %v2158_v19 = vpack.c.bf16 (!%p238_p2), %v290_v18, %v289_v17  ;;  %v291_v20 = vld [vmem:[%s2633_s1 + $0x60] sm:$0xff] (!%p238_p2)  ;;  %v292_v21 = vld [vmem:[%s2633_s1 + $0x68] sm:$0xff] (!%p238_p2)  ;;  %v293_v23 = vld [vmem:[%s2633_s1 + $0x70] sm:$0xff] (!%p238_p2)  ;;  %s2341_s21 = smov (!%p238_p2), 56   ;;  %s2342_s22 = smov (!%p238_p2), 112  }
   0xa   : > { %v2161_v22 = vpack.c.bf16 (!%p238_p2), %v292_v21, %v291_v20  ;;  %v294_v24 = vld [vmem:[%s2633_s1 + $0x78] sm:$0xff] (!%p238_p2)  ;;  %v295_v26 = vld [vmem:[%s2633_s1 + $0x80] sm:$0xff] (!%p238_p2)  ;;  %v296_v27 = vld [vmem:[%s2633_s1 + $0x88] sm:$0xff] (!%p238_p2)  ;;  %v2338_v21 = vmov (!%p238_p2), 0.0   ;;  %s2343_s27 = smov (!%p238_p2), 72   ;;  %s2344_s28 = smov (!%p238_p2), 104  }
   0xb   : > { %v2164_v25 = vpack.c.bf16 (!%p238_p2), %v294_v24, %v293_v23  ;;  %v2167_v28 = vpack.c.bf16 (!%p238_p2), %v296_v27, %v295_v26  ;;  %v388_v32 = vld [vmem:[%s2635_s3] sm:$0xff] (!%p238_p2)  ;;  %v389_v33 = vld [vmem:[%s2635_s3 + $0x8] sm:$0xff] (!%p238_p2)  ;;  %v390_v35 = vld [vmem:[%s2635_s3 + $0x10] sm:$0xff] (!%p238_p2)  ;;  %s2345_s29 = smov (!%p238_p2), 48   ;;  %s2346_s9 = smov (!%p238_p2), 40  }
   0xc   : > { %2147 = vmatpush1.bf16.msra.mxu0 (!%p238_p2), %v2146_v6  ;;  %v2169_v34 = vpack.c.bf16 (!%p238_p2), %v389_v33, %v388_v32  ;;  %v391_v36 = vld [vmem:[%s2635_s3 + $0x18] sm:$0xff] (!%p238_p2)  ;;  %v1928_v38 = vld [vmem:[%s2634_s2] ss:$0 sm:$0xff] (!%p238_p2)  ;;  %vm2503_vm3 = vmpackc.low (!%p238_p2), %vm491_vm2, %vm491_vm2 }
   0xd   : > { %s2643_s25 = smov (!%p267_p3, %s1921_s25), 1  ;;  %2148 = vmatprep.subr.bf16.mxu0 %v2332_v3  ;;  %v2173_v37 = vpack.c.bf16 %v391_v36, %v390_v35  ;;  %v1931_v47 = vld [vmem:[%s2636_s4] ss:$0 sm:$0xff] }
   0xe   : > { %s1968_s15 = sshll.u32 %s2643_s25, 5  ;;  %2170 = vmatprep.subr.bf16.mxu1 %v2169_v34 }
   0xf   : > { %s2421_s18 = scalar_lea.vmem %s2632_s0, %s1968_s15  ;;  %2172 = vmatpush3.bf16.msra.mxu1 %v2169_v34  ;;  %s2335_s15 = smov 64  }
  0x10   : > { %v276_v9 = vld [vmem:[%s2421_s18 + $0x8] sm:$0xff]  ;;  %2150 = vmatpush1.bf16.msra.mxu0 %v2149_v10  ;;  %v275_v29 = vld [vmem:[%s2421_s18] sm:$0xff]  ;;  %v278_v30 = vld [vmem:[%s2421_s18 + $0x18] sm:$0xff]  ;;  %2174 = vmatprep.subr.bf16.mxu1 %v2173_v37 }
  0x11   : > { %1929 = vmatprep.mubr.msk.f32.mxu0 %vm304_vm0, %v276_v9  ;;  %2151 = vmatprep.subr.bf16.mxu0 %v2332_v3  ;;  %v277_v31 = vld [vmem:[%s2421_s18 + $0x10] sm:$0xff] }
  0x13   : > { %2176 = vmatpush3.bf16.msra.mxu1 %v2173_v37 }
  0x14   : > { %2153 = vmatpush1.bf16.msra.mxu0 %v2152_v13 }
  0x15   : > { %2154 = vmatprep.subr.bf16.mxu0 %v2332_v3 }
  0x18   : > { %2156 = vmatpush1.bf16.msra.mxu0 %v2155_v16 }
  0x19   : > { %2157 = vmatprep.subr.bf16.mxu0 %v2332_v3 }
  0x1c   : > { %2159 = vmatpush1.bf16.msra.mxu0 %v2158_v19 }
  0x1d   : > { %2160 = vmatprep.subr.bf16.mxu0 %v2332_v3 }
  0x20   : > { %2162 = vmatpush1.bf16.msra.mxu0 %v2161_v22 }
  0x21   : > { %2163 = vmatprep.subr.bf16.mxu0 %v2332_v3 }
  0x24   : > { %2165 = vmatpush1.bf16.msra.mxu0 %v2164_v25 }
  0x25   : > { %2166 = vmatprep.subr.bf16.mxu0 %v2332_v3 }
  0x28   : > { %2168 = vmatpush1.bf16.msra.mxu0 %v2167_v28 }
  0x29   : > { %2080 = vmatprep.subr.mxu0 %v2338_v21 }
  0x2b   : > { %376 = vmatmul.mubr.f32.vlgmr.msra.gmra.mrb[0].mxu0 %v275_v29 }
  0x2c   : > { %1930 = vmatprep.mubr.msk.f32.mxu0 %vm304_vm0, %v278_v30  ;;  %v2339_v30 = vmov 0.0625  }
  0x2f   : > { %381 = vmatmul.mubr.f32.gmra.mrb[2].mxu0 %v277_v31 }
  0x30   : > { %2082 = vmatprep.mubr.msk.f32.mxu0 %vm2337_vm4, %v2338_v21 }
  0xfe   : > { %v377_v39 = vpop.f32.mrb[0].mxu0 }
  0xff   : > { %v378_v40 = vadd.f32 %v1928_v38, %v377_v39  ;;  %v379_v41 = vpop.f32.mrb[1].mxu0 }
 0x101   : > { %v386_v42 = vmax.f32 %v378_v40, 0.0  ;;  %v482_v40 = vld [vmem:[%s2637_s5 + $0x8] sm:$0xff] }
 0x102   : > { %v382_v43 = vpop.f32.mrb[2].mxu0  ;;  %2081 = vmatpush3.msra.mxu0 %v482_v40 }
 0x103   : > { %v383_v44 = vadd.f32 %v1928_v38, %v382_v43  ;;  %v384_v45 = vpop.f32.mrb[3].mxu0  ;;  %2035 = vmatprep.mubr.msk.f32.mxu1 %vm399_vm1, %v386_v42 }
 0x105   : > { %v387_v46 = vmax.f32 %v383_v44, 0.0 }
 0x107   : > { %2036 = vmatmul.mubr.msk.f32.vlgmr.msra.gmra.mrb[0].mxu1 %vm399_vm1, %v387_v46 }
 0x1da   : > { %v2037_v48 = vpop.f32.mrb[0].mxu1 }
 0x1db   : > { %v2490_v49 = vadd.f32 %v2037_v48, %v1931_v47  ;;  %v472_v50 = vpop.f32.mrb[1].mxu1 }
 0x1dc   : > { %v2492_v51 = vadd.f32 %v1931_v47, %v472_v50 }
 0x1de   : > { %2042 = vmatprep.mubr.msk.f32.mxu1 %vm491_vm2, %v2492_v51  ;;  %v2498_v52 = vpack.i.bf16 %v2490_v49, %v2492_v51 }
 0x1e0   : > { %2253 = vrot.lane.b32.xlu0 %v2498_v52, %s2333_s13 }
 0x252   : > { %v2254_v53 = vpop.permute.xlu0 %2253 }
 0x253   : > { %v2256_v54 = vunpack.i.h.bf16 %v2254_v53  ;;  %v2255_v55 = vunpack.i.l.bf16 %v2254_v53 }
 0x255   : > { %v2177_v57 = vpack.c.bf16 %v2256_v54, %v2255_v55 }
 0x257   : > { %2179 = vmatprep.subr.msk.bf16.mxu1 %vm2503_vm3, %v2177_v57 }
 0x258   : > { %2182 = vmatpush3.bf16.xpose.msk.msra.mxu1 %vm2503_vm3, %v2177_v57 }
 0x25f   : > { %2043 = vmatmul.mubr.msk.f32.vlgmr.msra.gmra.mrb[2].mxu1 %vm491_vm2, %v2490_v49 }
 0x332   : > { %v2044_v58 = vpop.f32.mrb[2].mxu1 }
 0x333   : > { %v576_v59 = vmul.f32 0.35355338, %v2044_v58  ;;  %v566_v60 = vpop.f32.mrb[3].mxu1 }
 0x334   : > { %v575_v61 = vmul.f32 0.35355338, %v566_v60 }
 0x335   : > { %v580_v62 = vsel %vm304_vm0, %v576_v59, -inf }
 0x336   : > { %581 = vmax.xlane.f32.xlu1 %v580_v62  ;;  %v577_v63 = vsel %vm304_vm0, %v575_v61, -inf }
 0x337   : > { %578 = vmax.xlane.f32.xlu0 %v577_v63 }
 0x34d   : > { %761 = vrot.lane.b32.xlu0 %v2490_v49, %s2334_s14 }
 0x3c3   : > { %v582_v0 = vpop.xlane.xlu1 %581 }
 0x3c4   : > { %v584_v1 = vsub.f32 %v576_v59, %v582_v0  ;;  %v579_v2 = vpop.xlane.xlu0 %578 }
 0x3c5   : > { %v583_v4 = vsub.f32 %v575_v61, %v579_v2 }
 0x3c6   : > { %v587_v5 = vmul.f32 1.442695, %v584_v1 }
 0x3c7   : > { %v585_v6 = vmul.f32 1.442695, %v583_v4 }
 0x3c8   : > { %2292 = vpow2.f32 %v587_v5  ;;  %v762_v31 = vpop.permute.xlu0 %761 }
 0x3c9   : > { %2294 = vpow2.f32 %v585_v6 }
 0x3d2   : > { %v2293_v7 = vpop.eup %2292 }
 0x3d3   : > { %v592_v8 = vsel %vm304_vm0, %v2293_v7, 0.0  ;;  %v2295_v9 = vpop.eup %2294 }
 0x3d4   : > { %593 = vadd.xlane.f32.xlu1 %v592_v8  ;;  %v589_v10 = vsel %vm304_vm0, %v2295_v9, 0.0 }
 0x3d8   : > { %590 = vadd.xlane.f32.xlu1 %v589_v10 }
 0x3e9   : > { %2258 = vrot.lane.b32.xlu1 %v2498_v52, %s2335_s15  ;;  %s274_s15 = scalar_lea.vmem %s2639_s7, %s2643_s25 }
 0x3ed   : > { %2263 = vrot.lane.b32.xlu1 %v2498_v52, %s2336_s16 }
 0x3f1   : > { %759 = vrot.lane.b32.xlu1 %v2492_v51, %s2334_s14 }
 0x461   : > { %v594_v11 = vpop.xlane.xlu1 %593 }
 0x462   : > { %2296 = vrcp.f32 %v594_v11 }
 0x465   : > { %v591_v12 = vpop.xlane.xlu1 %590 }
 0x466   : > { %2298 = vrcp.f32 %v591_v12 }
 0x469   : > { %v2259_v13 = vpop.permute.xlu1 %2258 }
 0x46a   : > { %v2261_v14 = vunpack.i.h.bf16 %v2259_v13  ;;  %v2260_v15 = vunpack.i.l.bf16 %v2259_v13 }
 0x46c   : > { %v2183_v16 = vpack.c.bf16 %v2261_v14, %v2260_v15  ;;  %v2297_v17 = vpop.eup %2296 }
 0x46d   : > { %v598_v20 = vmul.f32 %v2297_v17, %v2293_v7  ;;  %v2264_v22 = vpop.permute.xlu1 %2263 }
 0x46e   : > { %2184 = vmatprep.subr.bf16.mxu1 %v2183_v16  ;;  %v2266_v23 = vunpack.i.h.bf16 %v2264_v22  ;;  %v2265_v24 = vunpack.i.l.bf16 %v2264_v22 }
 0x46f   : > { %2186 = vmatpush3.bf16.msra.mxu1 %v2183_v16 }
 0x470   : > { %v2299_v18 = vpop.eup %2298  ;;  %2187 = vmatprep.subr.bf16.mxu1 %v2332_v3  ;;  %v2190_v28 = vpack.c.bf16 %v2266_v23, %v2265_v24 }
 0x471   : > { %v596_v19 = vmul.f32 %v2299_v18, %v2295_v9  ;;  %v760_v29 = vpop.permute.xlu1 %759  ;;  %v481_v9 = vld [vmem:[%s2637_s5] sm:$0xff] }
 0x473   : > { %2049 = vmatprep.mubr.msk.f32.mxu1 %vm304_vm0, %v596_v19 }
 0x474   : > { %2050 = vmatmul.mubr.msk.f32.vlgmr.msra.gmra.mrb[4].mxu1 %vm304_vm0, %v598_v20 }
 0x475   : > { %2056 = vmatprep.mubr.msk.f32.mxu1 %vm2337_vm4, %v2338_v21 }
 0x547   : > { %v2051_v25 = vpop.f32.mrb[4].mxu1 }
 0x548   : > { %v677_v26 = vpop.f32.mrb[5].mxu1 }
 0x549   : > { %v2188_v27 = vpack.c.bf16 %v2051_v25, %v677_v26 }
 0x54b   : > { %2189 = vmatpush3.bf16.msra.mxu1 %v2188_v27 }
 0x54c   : > { %2192 = vmatprep.subr.msk.bf16.mxu1 %vm2503_vm3, %v2190_v28 }
 0x54e   : > { %2057 = vmatmul.mubr.msk.f32.vlgmr.msra.gmra.mrb[6].mxu1 %vm304_vm0, %v2339_v30 }
 0x54f   : > { %2063 = vmatprep.mubr.msk.f32.mxu1 %vm491_vm2, %v760_v29 }
 0x554   : > { %2195 = vmatpush3.bf16.xpose.msk.msra.mxu1 %vm2503_vm3, %v2190_v28 }
 0x55b   : > { %2064 = vmatmul.mubr.msk.f32.vlgmr.msra.gmra.mrb[8].mxu1 %vm491_vm2, %v762_v31 }
 0x621   : > { %v2537_v32 = vpop.f32.mrb[6].mxu1 }
 0x622   : > { %v2058_v33 = vpop.f32.mrb[7].mxu1 }
 0x62e   : > { %v2065_v34 = vpop.f32.mrb[8].mxu1 }
 0x62f   : > { %v851_v35 = vmul.f32 0.35355338, %v2065_v34  ;;  %v841_v36 = vpop.f32.mrb[9].mxu1 }
 0x630   : > { %v850_v37 = vmul.f32 0.35355338, %v841_v36 }
 0x631   : > { %v855_v38 = vsel %vm304_vm0, %v851_v35, -inf }
 0x632   : > { %856 = vmax.xlane.f32.xlu0 %v855_v38  ;;  %v852_v39 = vsel %vm304_vm0, %v850_v37, -inf }
 0x633   : > { %853 = vmax.xlane.f32.xlu1 %v852_v39 }
 0x648   : > { %2273 = vrot.lane.b32.xlu0 %v2498_v52, %s2340_s20 }
 0x6bf   : > { %v857_v41 = vpop.xlane.xlu0 %856 }
 0x6c0   : > { %v859_v42 = vsub.f32 %v851_v35, %v857_v41  ;;  %v854_v43 = vpop.xlane.xlu1 %853 }
 0x6c1   : > { %v858_v44 = vsub.f32 %v850_v37, %v854_v43 }
 0x6c2   : > { %v862_v45 = vmul.f32 1.442695, %v859_v42 }
 0x6c3   : > { %v860_v46 = vmul.f32 1.442695, %v858_v44  ;;  %v2274_v47 = vpop.permute.xlu0 %2273 }
 0x6c4   : > { %2300 = vpow2.f32 %v862_v45  ;;  %v2276_v48 = vunpack.i.h.bf16 %v2274_v47  ;;  %v2275_v50 = vunpack.i.l.bf16 %v2274_v47 }
 0x6c5   : > { %2302 = vpow2.f32 %v860_v46 }
 0x6c6   : > { %v2203_v53 = vpack.c.bf16 %v2276_v48, %v2275_v50 }
 0x6c8   : > { %2205 = vmatprep.subr.msk.bf16.mxu0 %vm2503_vm3, %v2203_v53 }
 0x6ce   : > { %v2301_v54 = vpop.eup %2300 }
 0x6cf   : > { %v867_v55 = vsel %vm304_vm0, %v2301_v54, 0.0  ;;  %v2303_v57 = vpop.eup %2302 }
 0x6d0   : > { %868 = vadd.xlane.f32.xlu1 %v867_v55  ;;  %v864_v58 = vsel %vm304_vm0, %v2303_v57, 0.0 }
 0x6d4   : > { %865 = vadd.xlane.f32.xlu1 %v864_v58  ;;  %v483_v58 = vld [vmem:[%s2637_s5 + $0x10] sm:$0xff] }
 0x6e5   : > { %2268 = vrot.lane.b32.xlu1 %v2498_v52, %s2341_s21 }
 0x6e9   : > { %1177 = vrot.lane.b32.xlu1 %v2492_v51, %s2342_s22 }
 0x6ed   : > { %1179 = vrot.lane.b32.xlu1 %v2490_v49, %s2342_s22 }
 0x75d   : > { %v869_v59 = vpop.xlane.xlu1 %868 }
 0x75e   : > { %2304 = vrcp.f32 %v869_v59 }
 0x761   : > { %v866_v60 = vpop.xlane.xlu1 %865 }
 0x762   : > { %2306 = vrcp.f32 %v866_v60 }
 0x765   : > { %v2269_v61 = vpop.permute.xlu1 %2268 }
 0x766   : > { %v2271_v62 = vunpack.i.h.bf16 %v2269_v61  ;;  %v2270_v63 = vunpack.i.l.bf16 %v2269_v61 }
 0x768   : > { %v2196_v0 = vpack.c.bf16 %v2271_v62, %v2270_v63  ;;  %v2305_v1 = vpop.eup %2304 }
 0x769   : > { %v873_v5 = vmul.f32 %v2305_v1, %v2301_v54  ;;  %v1178_v11 = vpop.permute.xlu1 %1177 }
 0x76a   : > { %2197 = vmatprep.subr.bf16.mxu1 %v2196_v0 }
 0x76b   : > { %2199 = vmatpush3.bf16.msra.mxu1 %v2196_v0 }
 0x76c   : > { %v2307_v2 = vpop.eup %2306  ;;  %2200 = vmatprep.subr.bf16.mxu1 %v2332_v3 }
 0x76d   : > { %v871_v4 = vmul.f32 %v2307_v2, %v2303_v57  ;;  %v1180_v15 = vpop.permute.xlu1 %1179 }
 0x76f   : > { %2070 = vmatprep.mubr.msk.f32.mxu1 %vm304_vm0, %v871_v4 }
 0x770   : > { %2071 = vmatmul.mubr.msk.f32.vlgmr.msra.gmra.mrb[10].mxu1 %vm304_vm0, %v873_v5 }
 0x771   : > { %2077 = vmatprep.mubr.msk.f32.mxu1 %vm2337_vm4, %v2338_v21 }
 0x843   : > { %v2072_v6 = vpop.f32.mrb[10].mxu1 }
 0x844   : > { %v952_v7 = vpop.f32.mrb[11].mxu1 }
 0x845   : > { %v2201_v8 = vpack.c.bf16 %v2072_v6, %v952_v7 }
 0x847   : > { %2202 = vmatpush3.bf16.msra.mxu1 %v2201_v8 }
 0x848   : > { %2085 = vmatprep.subr.mxu1 %v2338_v21 }
 0x84a   : > { %2078 = vmatmul.mubr.msk.f32.vlgmr.msra.gmra.mrb[12].mxu1 %vm304_vm0, %v2339_v30 }
 0x84b   : > { %2086 = vmatpush3.msra.mxu1 %v481_v9  ;;  %2087 = vmatprep.mubr.msk.f32.mxu1 %vm2337_vm4, %v2338_v21 }
 0x84e   : > { %2088 = vmatmul.mubr.msk.f32.vlgmr.msra.gmra.mrb[14].mxu1 %vm491_vm2, %v2537_v32 }
 0x91d   : > { %v1027_v10 = vpop.f32.mrb[12].mxu1 }
 0x91e   : > { %v2079_v12 = vpop.f32.mrb[13].mxu1  ;;  %2083 = vmatmul.mubr.msk.f32.vlgmr.msra.gmra.mrb[4].mxu0 %vm491_vm2, %v1027_v10 }
 0x91f   : > { %2208 = vmatpush3.bf16.xpose.msk.msra.mxu0 %vm2503_vm3, %v2203_v53  ;;  %2094 = vmatprep.mubr.msk.f32.mxu0 %vm491_vm2, %v1178_v11 }
 0x920   : > { %2111 = vmatprep.subr.mxu0 %v2338_v21 }
 0x921   : > { %v1173_v13 = vpop.f32.mrb[14].mxu1 }
 0x922   : > { %v2089_v14 = vpop.f32.mrb[15].mxu1 }
 0x926   : > { %2095 = vmatmul.mubr.msk.f32.vlgmr.msra.gmra.mrb[6].mxu0 %vm491_vm2, %v1180_v15 }
 0x927   : > { %2113 = vmatprep.mubr.msk.f32.mxu0 %vm2337_vm4, %v2338_v21  ;;  %2112 = vmatpush3.msra.mxu0 %v483_v58 }
 0x9f1   : > { %v1100_v16 = vpop.f32.mrb[4].mxu0 }
 0x9f2   : > { %v2575_v17 = vadd.f32 %v1173_v13, %v1100_v16  ;;  %v2084_v18 = vpop.f32.mrb[5].mxu0 }
 0x9f9   : > { %v2096_v19 = vpop.f32.mrb[6].mxu0 }
 0x9fa   : > { %v1269_v20 = vmul.f32 0.35355338, %v2096_v19  ;;  %v1259_v22 = vpop.f32.mrb[7].mxu0 }
 0x9fb   : > { %v1268_v23 = vmul.f32 0.35355338, %v1259_v22 }
 0x9fc   : > { %v1273_v24 = vsel %vm304_vm0, %v1269_v20, -inf }
 0x9fd   : > { %1274 = vmax.xlane.f32.xlu0 %v1273_v24  ;;  %v1270_v25 = vsel %vm304_vm0, %v1268_v23, -inf }
 0x9fe   : > { %1271 = vmax.xlane.f32.xlu1 %v1270_v25 }
 0xa8a   : > { %v1275_v26 = vpop.xlane.xlu0 %1274 }
 0xa8b   : > { %v1277_v27 = vsub.f32 %v1269_v20, %v1275_v26  ;;  %v1272_v28 = vpop.xlane.xlu1 %1271 }
 0xa8c   : > { %v1276_v29 = vsub.f32 %v1268_v23, %v1272_v28 }
 0xa8d   : > { %v1280_v31 = vmul.f32 1.442695, %v1277_v27 }
 0xa8e   : > { %v1278_v32 = vmul.f32 1.442695, %v1276_v29 }
 0xa8f   : > { %2308 = vpow2.f32 %v1280_v31 }
 0xa90   : > { %2310 = vpow2.f32 %v1278_v32 }
 0xa99   : > { %v2309_v33 = vpop.eup %2308 }
 0xa9a   : > { %v2311_v34 = vpop.eup %2310  ;;  %v1285_v35 = vsel %vm304_vm0, %v2309_v33, 0.0 }
 0xa9b   : > { %1286 = vadd.xlane.f32.xlu1 %v1285_v35  ;;  %v1282_v36 = vsel %vm304_vm0, %v2311_v34, 0.0 }
 0xa9c   : > { %1283 = vadd.xlane.f32.xlu0 %v1282_v36 }
 0xaac   : > { %2283 = vrot.lane.b32.xlu1 %v2498_v52, %s2343_s27 }
 0xab0   : > { %1523 = vrot.lane.b32.xlu1 %v2492_v51, %s2344_s28 }
 0xab2   : > { %2278 = vrot.lane.b32.xlu0 %v2498_v52, %s2345_s29 }
 0xab6   : > { %1525 = vrot.lane.b32.xlu0 %v2490_v49, %s2344_s28 }
 0xb28   : > { %v1287_v37 = vpop.xlane.xlu1 %1286 }
 0xb29   : > { %2312 = vrcp.f32 %v1287_v37  ;;  %v1284_v38 = vpop.xlane.xlu0 %1283 }
 0xb2a   : > { %2314 = vrcp.f32 %v1284_v38 }
 0xb2c   : > { %v2284_v49 = vpop.permute.xlu1 %2283 }
 0xb2d   : > { %v2279_v39 = vpop.permute.xlu0 %2278  ;;  %v2286_v46 = vunpack.i.h.bf16 %v2284_v49  ;;  %v2285_v47 = vunpack.i.l.bf16 %v2284_v49 }
 0xb2e   : > { %v2281_v40 = vunpack.i.h.bf16 %v2279_v39  ;;  %v2280_v41 = vunpack.i.l.bf16 %v2279_v39 }
 0xb2f   : > { %v2216_v54 = vpack.c.bf16 %v2286_v46, %v2285_v47 }
 0xb30   : > { %v2209_v42 = vpack.c.bf16 %v2281_v40, %v2280_v41  ;;  %v1524_v55 = vpop.permute.xlu1 %1523 }
 0xb31   : > { %v1526_v57 = vpop.permute.xlu0 %1525 }
 0xb32   : > { %2210 = vmatprep.subr.bf16.mxu1 %v2209_v42 }
 0xb33   : > { %v2313_v43 = vpop.eup %2312  ;;  %2212 = vmatpush3.bf16.msra.mxu1 %v2209_v42 }
 0xb34   : > { %v2315_v44 = vpop.eup %2314  ;;  %2213 = vmatprep.subr.bf16.mxu1 %v2332_v3  ;;  %v1291_v45 = vmul.f32 %v2313_v43, %v2309_v33 }
 0xb35   : > { %v1289_v51 = vmul.f32 %v2315_v44, %v2311_v34 }
 0xb37   : > { %2101 = vmatprep.mubr.msk.f32.mxu1 %vm304_vm0, %v1289_v51 }
 0xb38   : > { %2102 = vmatmul.mubr.msk.f32.vlgmr.msra.gmra.mrb[16].mxu1 %vm304_vm0, %v1291_v45 }
 0xb39   : > { %2108 = vmatprep.mubr.msk.f32.mxu1 %vm2337_vm4, %v2338_v21 }
 0xc0b   : > { %v2103_v48 = vpop.f32.mrb[16].mxu1 }
 0xc0c   : > { %v1370_v50 = vpop.f32.mrb[17].mxu1 }
 0xc0d   : > { %v2214_v53 = vpack.c.bf16 %v2103_v48, %v1370_v50 }
 0xc0f   : > { %2215 = vmatpush3.bf16.msra.mxu1 %v2214_v53 }
 0xc10   : > { %2218 = vmatprep.subr.msk.bf16.mxu1 %vm2503_vm3, %v2216_v54 }
 0xc12   : > { %2109 = vmatmul.mubr.msk.f32.vlgmr.msra.gmra.mrb[18].mxu1 %vm304_vm0, %v2339_v30 }
 0xc13   : > { %2120 = vmatprep.mubr.msk.f32.mxu1 %vm491_vm2, %v1524_v55 }
 0xc18   : > { %2221 = vmatpush3.bf16.xpose.msk.msra.mxu1 %vm2503_vm3, %v2216_v54 }
 0xc19   : > { %2137 = vmatprep.subr.mxu1 %v2338_v21 }
 0xc1f   : > { %2121 = vmatmul.mubr.msk.f32.vlgmr.msra.gmra.mrb[20].mxu1 %vm491_vm2, %v1526_v57 }
 0xc20   : > { %2139 = vmatprep.mubr.msk.f32.mxu1 %vm2337_vm4, %v2338_v21 }
 0xce5   : > { %v1445_v59 = vpop.f32.mrb[18].mxu1 }
 0xce6   : > { %2114 = vmatmul.mubr.msk.f32.vlgmr.msra.gmra.mrb[8].mxu0 %vm491_vm2, %v1445_v59  ;;  %v2110_v60 = vpop.f32.mrb[19].mxu1 }
 0xcf2   : > { %v2122_v61 = vpop.f32.mrb[20].mxu1 }
 0xcf3   : > { %v1615_v56 = vmul.f32 0.35355338, %v2122_v61  ;;  %v1605_v62 = vpop.f32.mrb[21].mxu1 }
 0xcf4   : > { %v1614_v63 = vmul.f32 0.35355338, %v1605_v62 }
 0xcf5   : > { %v1619_v0 = vsel %vm304_vm0, %v1615_v56, -inf }
 0xcf6   : > { %1620 = vmax.xlane.f32.xlu0 %v1619_v0  ;;  %v1616_v1 = vsel %vm304_vm0, %v1614_v63, -inf }
 0xcf7   : > { %1617 = vmax.xlane.f32.xlu1 %v1616_v1 }
 0xd83   : > { %v1621_v2 = vpop.xlane.xlu0 %1620 }
 0xd84   : > { %v1623_v4 = vsub.f32 %v1615_v56, %v1621_v2  ;;  %v1618_v5 = vpop.xlane.xlu1 %1617 }
 0xd85   : > { %v1622_v6 = vsub.f32 %v1614_v63, %v1618_v5 }
 0xd86   : > { %v1626_v7 = vmul.f32 1.442695, %v1623_v4 }
 0xd87   : > { %v1624_v8 = vmul.f32 1.442695, %v1622_v6 }
 0xd88   : > { %2316 = vpow2.f32 %v1626_v7 }
 0xd89   : > { %2318 = vpow2.f32 %v1624_v8 }
 0xd92   : > { %v2317_v9 = vpop.eup %2316 }
 0xd93   : > { %v2319_v10 = vpop.eup %2318  ;;  %v1631_v11 = vsel %vm304_vm0, %v2317_v9, 0.0 }
 0xd94   : > { %1632 = vadd.xlane.f32.xlu1 %v1631_v11  ;;  %v1628_v12 = vsel %vm304_vm0, %v2319_v10, 0.0 }
 0xd95   : > { %1629 = vadd.xlane.f32.xlu0 %v1628_v12 }
 0xdab   : > { %2288 = vrot.lane.b32.xlu0 %v2498_v52, %s2346_s9 }
 0xdb9   : > { %v1518_v13 = vpop.f32.mrb[8].mxu0 }
 0xdba   : > { %v1522_v14 = vadd.f32 %v1518_v13, %v2575_v17  ;;  %v2115_v15 = vpop.f32.mrb[9].mxu0  ;;  %v484_v17 = vld [vmem:[%s2637_s5 + $0x18] sm:$0xff] }
 0xdbb   : > { %2138 = vmatpush3.msra.mxu1 %v484_v17 }
 0xe21   : > { %v1633_v16 = vpop.xlane.xlu1 %1632 }
 0xe22   : > { %2320 = vrcp.f32 %v1633_v16  ;;  %v1630_v18 = vpop.xlane.xlu0 %1629 }
 0xe23   : > { %2322 = vrcp.f32 %v1630_v18 }
 0xe26   : > { %v2289_v19 = vpop.permute.xlu0 %2288 }
 0xe27   : > { %v2291_v20 = vunpack.i.h.bf16 %v2289_v19  ;;  %v2290_v22 = vunpack.i.l.bf16 %v2289_v19 }
 0xe29   : > { %v2222_v23 = vpack.c.bf16 %v2291_v20, %v2290_v22 }
 0xe2b   : > { %2223 = vmatprep.subr.bf16.mxu0 %v2222_v23 }
 0xe2c   : > { %v2321_v24 = vpop.eup %2320  ;;  %2225 = vmatpush3.bf16.msra.mxu0 %v2222_v23 }
 0xe2d   : > { %v2323_v25 = vpop.eup %2322  ;;  %2226 = vmatprep.subr.bf16.mxu0 %v2332_v3  ;;  %v1637_v52 = vmul.f32 %v2321_v24, %v2317_v9 }
 0xe2e   : > { %v1635_v26 = vmul.f32 %v2323_v25, %v2319_v10 }
 0xe30   : > { %2127 = vmatprep.mubr.msk.f32.mxu0 %vm304_vm0, %v1635_v26 }
 0xe31   : > { %2128 = vmatmul.mubr.msk.f32.vlgmr.msra.gmra.mrb[10].mxu0 %vm304_vm0, %v1637_v52 }
 0xe32   : > { %2134 = vmatprep.mubr.msk.f32.mxu0 %vm2337_vm4, %v2338_v21  ;;  %v1869_v21 = vld [vmem:[%s2638_s6] sm:$0x1] }
 0xf04   : > { %v2129_v27 = vpop.f32.mrb[10].mxu0 }
 0xf05   : > { %v1716_v28 = vpop.f32.mrb[11].mxu0 }
 0xf06   : > { %v2227_v29 = vpack.c.bf16 %v2129_v27, %v1716_v28 }
 0xf08   : > { %2228 = vmatpush3.bf16.msra.mxu0 %v2227_v29 }
 0xf0b   : > { %2135 = vmatmul.mubr.msk.f32.vlgmr.msra.gmra.mrb[12].mxu0 %vm304_vm0, %v2339_v30 }
 0xfde   : > { %v1791_v3 = vpop.f32.mrb[12].mxu0 }
 0xfdf   : > { %v2136_v31 = vpop.f32.mrb[13].mxu0  ;;  %2140 = vmatmul.mubr.msk.f32.vlgmr.msra.gmra.mrb[22].mxu1 %vm491_vm2, %v1791_v3 }
0x10b2   : > { %v1864_v32 = vpop.f32.mrb[22].mxu1 }
0x10b3   : > { %v1868_v33 = vadd.f32 %v1864_v32, %v1522_v14  ;;  %v2141_v34 = vpop.f32.mrb[23].mxu1 }
0x10b5   : > { %v1870_v35 = vadd.f32 %v1869_v21, %v1868_v33 }
0x10b7   : > { %v1871_v36 = vmax.f32 %v1870_v35, 0.0 }
0x10b9   : > { %1873 = vst.msk [vmem:[%s274_s15] sm:$0x1] %vm1872_vm5, %v1871_v36 }
0x10ba PF: > { %s17_s24 = sadd.s32 1, %s2330_s24  }
0x10bb   : > { %p14_p4 = scmp.ge.s32.totalorder %s17_s24, 4  }
0x10bd   :  { %16 = sbr.rel (!%p14_p4) target bundleno = 1 (0x1), region = 78 }

// kernel: _lambda_.9
= control target key start
LH: loop header
LB: loop body
LE: loop exit
PB: predicated region body
PF: predicated region fallthrough
CT: control target
= control target key end

     0   :  { %v1059_v3 = vmov 0.0|0.0   ;;  %vm1060_vm0 = vmmov 0   ;;  %v1061_v6 = vmov 0.0   ;;  %s1394_s0 = inlined_call_operand.vmem [shape: f32[2,64], index: 0, kind: input, shape index: {}]   ;;  %s1395_s1 = inlined_call_operand.vmem [shape: f32[64,64], index: 1, kind: input, shape index: {}]   ;;  %s1396_s2 = inlined_call_operand.vmem [shape: f32[1,64], index: 2, kind: input, shape index: {}]   ;;  %s1397_s3 = inlined_call_operand.vmem [shape: f32[64,64], index: 3, kind: input, shape index: {}]   ;;  %s1398_s4 = inlined_call_operand.vmem [shape: f32[1,64], index: 4, kind: input, shape index: {}]   ;;  %s1399_s5 = inlined_call_operand.vmem [shape: f32[3,64,5], index: 5, kind: input, shape index: {}]   ;;  %s1400_s6 = inlined_call_operand.vmem [shape: f32[3,1,5], index: 6, kind: input, shape index: {}]   ;;  %s1401_s7 = inlined_call_operand.vmem [shape: f32[64,30], index: 7, kind: input, shape index: {}]   ;;  %s1402_s8 = inlined_call_operand.vmem [shape: f32[1,30], index: 8, kind: input, shape index: {}]   ;;  %s1403_s9 = inlined_call_operand.vmem [shape: f32[64,30], index: 9, kind: input, shape index: {}]   ;;  %s1404_s10 = inlined_call_operand.vmem [shape: f32[1,30], index: 10, kind: input, shape index: {}]   ;;  %s1405_s11 = inlined_call_operand.hbm [shape: f32[3,2,5], index: 11, kind: output, shape index: {0}]   ;;  %s1406_s12 = inlined_call_operand.vmem [shape: f32[2,30], index: 12, kind: output, shape index: {1}]   ;;  %s1407_s13 = inlined_call_operand.vmem [shape: f32[2,30], index: 13, kind: output, shape index: {2}]  }
   0x1   :  { %v43_v0 = vld [vmem:[%s1395_s1] sm:$0xff]  ;;  %v44_v1 = vld [vmem:[%s1395_s1 + $0x8] sm:$0xff]  ;;  %v45_v2 = vld [vmem:[%s1395_s1 + $0x10] sm:$0xff]  ;;  %935 = vmatprep.subr.bf16.mxu0 %v1059_v3  ;;  %818 = vmatprep.mubr.msk.f32.mxu0 %vm1060_vm0, %v1061_v6 }
   0x2   :  { %v936_v4 = vpack.c.bf16 %v44_v1, %v43_v0  ;;  %v46_v5 = vld [vmem:[%s1395_s1 + $0x18] sm:$0xff]  ;;  %947 = vmatprep.subr.bf16.mxu1 %v1059_v3  ;;  %837 = vmatprep.mubr.msk.f32.mxu1 %vm1060_vm0, %v1061_v6  ;;  %v133_v8 = vld [vmem:[%s1397_s3] sm:$0xff]  ;;  %v134_v9 = vld [vmem:[%s1397_s3 + $0x8] sm:$0xff] }
   0x3   :  { %v939_v7 = vpack.c.bf16 %v46_v5, %v45_v2  ;;  %v135_v10 = vld [vmem:[%s1397_s3 + $0x10] sm:$0xff]  ;;  %v47_v11 = vld [vmem:[%s1395_s1 + $0x20] sm:$0xff]  ;;  %v48_v12 = vld [vmem:[%s1395_s1 + $0x28] sm:$0xff]  ;;  %v948_v13 = vpack.c.bf16 %v134_v9, %v133_v8 }
   0x4   :  { %937 = vmatpush3.bf16.msra.mxu0 %v936_v4  ;;  %v136_v14 = vld [vmem:[%s1397_s3 + $0x18] sm:$0xff] }
   0x5   :  { %938 = vmatprep.subr.bf16.mxu0 %v1059_v3 }
   0x6   :  { %19 = vsyncpa [#allocation3], 0  ;;  %949 = vmatpush3.bf16.msra.mxu1 %v948_v13  ;;  %v951_v15 = vpack.c.bf16 %v136_v14, %v135_v10  ;;  %v942_v16 = vpack.c.bf16 %v48_v12, %v47_v11  ;;  %v137_v17 = vld [vmem:[%s1397_s3 + $0x20] sm:$0xff]  ;;  %v138_v18 = vld [vmem:[%s1397_s3 + $0x28] sm:$0xff]  ;;  %vm58_vm1 = vcmask 523264   ;;  %vm310_vm2 = vcmask 238592  }
   0x7   :  { %950 = vmatprep.subr.bf16.mxu1 %v1059_v3  ;;  %v49_v19 = vld [vmem:[%s1395_s1 + $0x30] sm:$0xff]  ;;  %v50_v20 = vld [vmem:[%s1395_s1 + $0x38] sm:$0xff]  ;;  %v954_v21 = vpack.c.bf16 %v138_v18, %v137_v17  ;;  %v42_v23 = vld [vmem:[%s1394_s0] sm:$0x3]  ;;  %vm675_vm3 = vcmask 33792  }
   0x8   :  { %940 = vmatpush3.bf16.msra.mxu0 %v939_v7  ;;  %v945_v22 = vpack.c.bf16 %v50_v20, %v49_v19  ;;  %v139_v24 = vld [vmem:[%s1397_s3 + $0x30] sm:$0xff]  ;;  %v140_v25 = vld [vmem:[%s1397_s3 + $0x38] sm:$0xff]  ;;  %v222_v27 = vld [vmem:[%s1401_s7] sm:$0xff] }
   0x9   :  { %941 = vmatprep.subr.bf16.mxu0 %v1059_v3  ;;  %v957_v26 = vpack.c.bf16 %v140_v25, %v139_v24  ;;  %v223_v28 = vld [vmem:[%s1401_s7 + $0x8] sm:$0xff]  ;;  %v224_v30 = vld [vmem:[%s1401_s7 + $0x10] sm:$0xff]  ;;  %v225_v31 = vld [vmem:[%s1401_s7 + $0x18] sm:$0xff] }
   0xa   :  { %952 = vmatpush3.bf16.msra.mxu1 %v951_v15  ;;  %v960_v29 = vpack.c.bf16 %v223_v28, %v222_v27  ;;  %v963_v32 = vpack.c.bf16 %v225_v31, %v224_v30  ;;  %v226_v33 = vld [vmem:[%s1401_s7 + $0x20] sm:$0xff]  ;;  %v227_v34 = vld [vmem:[%s1401_s7 + $0x28] sm:$0xff]  ;;  %v314_v44 = vld [vmem:[%s1403_s9 + $0x10] sm:$0xff] }
   0xb   :  { %953 = vmatprep.subr.bf16.mxu1 %v1059_v3  ;;  %v966_v35 = vpack.c.bf16 %v227_v34, %v226_v33  ;;  %v707_v36 = vld [vmem:[%s1396_s2] ss:$0 sm:$0xff]  ;;  %v313_v38 = vld [vmem:[%s1403_s9 + $0x8] sm:$0xff]  ;;  %v315_v45 = vld [vmem:[%s1403_s9 + $0x18] sm:$0xff] }
   0xc   :  { %943 = vmatpush3.bf16.msra.mxu0 %v942_v16  ;;  %v312_v37 = vld [vmem:[%s1403_s9] sm:$0xff]  ;;  %v975_v46 = vpack.c.bf16 %v315_v45, %v314_v44  ;;  %v317_v48 = vld [vmem:[%s1403_s9 + $0x28] sm:$0xff]  ;;  %v228_v50 = vld [vmem:[%s1401_s7 + $0x30] sm:$0xff] }
   0xd   :  { %944 = vmatprep.subr.bf16.mxu0 %v1059_v3  ;;  %v972_v42 = vpack.c.bf16 %v313_v38, %v312_v37  ;;  %v316_v47 = vld [vmem:[%s1403_s9 + $0x20] sm:$0xff]  ;;  %v229_v51 = vld [vmem:[%s1401_s7 + $0x38] sm:$0xff]  ;;  %v318_v52 = vld [vmem:[%s1403_s9 + $0x30] sm:$0xff] }
   0xe   :  { %955 = vmatpush3.bf16.msra.mxu1 %v954_v21  ;;  %v978_v49 = vpack.c.bf16 %v317_v48, %v316_v47  ;;  %v969_v53 = vpack.c.bf16 %v229_v51, %v228_v50  ;;  %v319_v54 = vld [vmem:[%s1403_s9 + $0x38] sm:$0xff]  ;;  %v709_v56 = vld [vmem:[%s1398_s4] ss:$0 sm:$0xff]  ;;  %v401_v58 = vld [vmem:[%s1399_s5 + $0x8] sm:$0xff] }
   0xf   :  { %956 = vmatprep.subr.bf16.mxu1 %v1059_v3  ;;  %v981_v55 = vpack.c.bf16 %v319_v54, %v318_v52  ;;  %v400_v57 = vld [vmem:[%s1399_s5] sm:$0xff]  ;;  %v718_v60 = vld [vmem:[%s1399_s5 + $0x48] sm:$0xff]  ;;  %v402_v2 = vld [vmem:[%s1399_s5 + $0x10] sm:$0xff] }
  0x10   :  { %946 = vmatpush3.bf16.msra.mxu0 %v945_v22  ;;  %v717_v59 = vld [vmem:[%s1399_s5 + $0x40] sm:$0xff]  ;;  %v984_v0 = vpack.c.bf16 %v401_v58, %v400_v57  ;;  %v403_v5 = vld [vmem:[%s1399_s5 + $0x18] sm:$0xff]  ;;  %v719_v7 = vld [vmem:[%s1399_s5 + $0x50] sm:$0xff] }
  0x11   :  { %959 = vmatprep.subr.bf16.mxu0 %v1059_v3  ;;  %v996_v1 = vpack.c.bf16 %v718_v60, %v717_v59  ;;  %v720_v8 = vld [vmem:[%s1399_s5 + $0x58] sm:$0xff]  ;;  %v987_v9 = vpack.c.bf16 %v403_v5, %v402_v2  ;;  %v404_v11 = vld [vmem:[%s1399_s5 + $0x20] sm:$0xff]  ;;  %v405_v12 = vld [vmem:[%s1399_s5 + $0x28] sm:$0xff] }
  0x12   :  { %958 = vmatpush3.bf16.msra.mxu1 %v957_v26  ;;  %v999_v10 = vpack.c.bf16 %v720_v8, %v719_v7  ;;  %v721_v13 = vld [vmem:[%s1399_s5 + $0x60] sm:$0xff]  ;;  %v722_v14 = vld [vmem:[%s1399_s5 + $0x68] sm:$0xff]  ;;  %v990_v15 = vpack.c.bf16 %v405_v12, %v404_v11  ;;  %v406_v17 = vld [vmem:[%s1399_s5 + $0x30] sm:$0xff] }
  0x13   :  { %819 = vmatmul.mubr.msk.f32.vlgmr.msra.gmra.mrb[0].mxu0 %vm58_vm1, %v42_v23  ;;  %971 = vmatprep.subr.bf16.mxu1 %v1059_v3  ;;  %v1002_v16 = vpack.c.bf16 %v722_v14, %v721_v13  ;;  %v407_v18 = vld [vmem:[%s1399_s5 + $0x38] sm:$0xff]  ;;  %v723_v19 = vld [vmem:[%s1399_s5 + $0x70] sm:$0xff]  ;;  %v728_v23 = vld [vmem:[%s1399_s5 + $0x80] sm:$0xff] }
  0x14   :  { %856 = vmatprep.mubr.msk.f32.mxu0 %vm1060_vm0, %v1061_v6  ;;  %961 = vmatpush3.bf16.msra.mxu0 %v960_v29  ;;  %v724_v20 = vld [vmem:[%s1399_s5 + $0x78] sm:$0xff]  ;;  %v993_v21 = vpack.c.bf16 %v407_v18, %v406_v17  ;;  %v729_v24 = vld [vmem:[%s1399_s5 + $0x88] sm:$0xff]  ;;  %v730_v26 = vld [vmem:[%s1399_s5 + $0x90] sm:$0xff] }
  0x15   :  { %962 = vmatprep.subr.bf16.mxu0 %v1059_v3  ;;  %v1005_v22 = vpack.c.bf16 %v724_v20, %v723_v19  ;;  %v1008_v25 = vpack.c.bf16 %v729_v24, %v728_v23  ;;  %v731_v27 = vld [vmem:[%s1399_s5 + $0x98] sm:$0xff]  ;;  %v732_v29 = vld [vmem:[%s1399_s5 + $0xa0] sm:$0xff]  ;;  %v733_v30 = vld [vmem:[%s1399_s5 + $0xa8] sm:$0xff] }
  0x16   :  { %v1011_v28 = vpack.c.bf16 %v731_v27, %v730_v26  ;;  %v1014_v31 = vpack.c.bf16 %v733_v30, %v732_v29  ;;  %v711_v34 = vld [vmem:[%s1402_s8] ss:$0 sm:$0xff]  ;;  %v737_v52 = vld [vmem:[%s1400_s6 + $0x2] ss:$0 sm:$0xff] }
  0x18   :  { %964 = vmatpush3.bf16.msra.mxu0 %v963_v32  ;;  %v734_v32 = vld [vmem:[%s1399_s5 + $0xb0] sm:$0xff] }
  0x19   :  { %965 = vmatprep.subr.bf16.mxu0 %v1059_v3 }
  0x1c   :  { %967 = vmatpush3.bf16.msra.mxu0 %v966_v35  ;;  %v713_v35 = vld [vmem:[%s1404_s10] ss:$0 sm:$0xff] }
  0x1d   :  { %968 = vmatprep.subr.bf16.mxu0 %v1059_v3 }
  0x20   :  { %970 = vmatpush3.bf16.msra.mxu0 %v969_v53 }
  0x21   :  { %983 = vmatprep.subr.bf16.mxu0 %v1059_v3 }
  0xe6   :  { %v128_v39 = vpop.f32.mrb[0].mxu0 }
  0xe7   :  { %v129_v40 = vadd.f32 %v707_v36, %v128_v39  ;;  %v820_v41 = vpop.f32.mrb[1].mxu0 }
  0xe9   :  { %v132_v43 = vmax.f32 %v129_v40, 0.0 }
  0xeb   :  { %838 = vmatmul.mubr.msk.f32.vlgmr.msra.gmra.mrb[0].mxu1 %vm58_vm1, %v132_v43  ;;  %v726_v43 = vld [vmem:[%s1400_s6 + $0x1] ss:$0 sm:$0xff] }
  0xec   :  { %973 = vmatpush3.bf16.msra.mxu1 %v972_v42  ;;  %875 = vmatprep.mubr.msk.f32.mxu1 %vm1060_vm0, %v1061_v6  ;;  %v715_v42 = vld [vmem:[%s1400_s6] ss:$0 sm:$0xff]  ;;  %s1062_s6 = smov [#allocation2]  }
  0xed   :  { %974 = vmatprep.subr.bf16.mxu1 %v1059_v3 }
  0xf0   :  { %976 = vmatpush3.bf16.msra.mxu1 %v975_v46 }
  0xf1   :  { %977 = vmatprep.subr.bf16.mxu1 %v1059_v3 }
  0xf4   :  { %979 = vmatpush3.bf16.msra.mxu1 %v978_v49 }
  0xf5   :  { %980 = vmatprep.subr.bf16.mxu1 %v1059_v3 }
  0xf8   :  { %982 = vmatpush3.bf16.msra.mxu1 %v981_v55 }
  0xf9   :  { %995 = vmatprep.subr.bf16.mxu1 %v1059_v3 }
 0x1be   :  { %v217_v61 = vpop.f32.mrb[0].mxu1 }
 0x1bf   :  { %v218_v62 = vadd.f32 %v709_v56, %v217_v61  ;;  %v839_v63 = vpop.f32.mrb[1].mxu1 }
 0x1c1   :  { %v221_v4 = vmax.f32 %v218_v62, 0.0 }
 0x1c3   :  { %857 = vmatmul.mubr.msk.f32.vlgmr.msra.gmra.mrb[2].mxu0 %vm58_vm1, %v221_v4  ;;  %876 = vmatmul.mubr.msk.f32.vlgmr.msra.gmra.mrb[2].mxu1 %vm58_vm1, %v221_v4 }
 0x1c4   :  { %985 = vmatpush3.bf16.msra.mxu0 %v984_v0  ;;  %997 = vmatpush3.bf16.msra.mxu1 %v996_v1 }
 0x1c5   :  { %986 = vmatprep.subr.bf16.mxu0 %v1059_v3  ;;  %998 = vmatprep.subr.bf16.mxu1 %v1059_v3 }
 0x1c6   :  { %894 = vmatprep.mubr.msk.f32.mxu0 %vm1060_vm0, %v1061_v6  ;;  %913 = vmatprep.mubr.msk.f32.mxu1 %vm1060_vm0, %v1061_v6 }
 0x1c8   :  { %988 = vmatpush3.bf16.msra.mxu0 %v987_v9  ;;  %1000 = vmatpush3.bf16.msra.mxu1 %v999_v10 }
 0x1c9   :  { %989 = vmatprep.subr.bf16.mxu0 %v1059_v3  ;;  %1001 = vmatprep.subr.bf16.mxu1 %v1059_v3 }
 0x1cc   :  { %991 = vmatpush3.bf16.msra.mxu0 %v990_v15  ;;  %1003 = vmatpush3.bf16.msra.mxu1 %v1002_v16 }
 0x1cd   :  { %992 = vmatprep.subr.bf16.mxu0 %v1059_v3  ;;  %1004 = vmatprep.subr.bf16.mxu1 %v1059_v3 }
 0x1d0   :  { %994 = vmatpush3.bf16.msra.mxu0 %v993_v21  ;;  %1006 = vmatpush3.bf16.msra.mxu1 %v1005_v22 }
 0x1d1   :  { %1007 = vmatprep.subr.bf16.mxu0 %v1059_v3 }
 0x1d3   :  { %895 = vmatmul.mubr.msk.f32.vlgmr.msra.gmra.mrb[4].mxu0 %vm58_vm1, %v221_v4  ;;  %914 = vmatmul.mubr.msk.f32.vlgmr.msra.gmra.mrb[4].mxu1 %vm58_vm1, %v221_v4 }
 0x1d4   :  { %1009 = vmatpush3.bf16.msra.mxu0 %v1008_v25  ;;  %932 = vmatprep.mubr.msk.f32.mxu0 %vm1060_vm0, %v1061_v6  ;;  %v735_v6 = vld [vmem:[%s1399_s5 + $0xb8] sm:$0xff] }
 0x1d5   :  { %1010 = vmatprep.subr.bf16.mxu0 %v1059_v3  ;;  %v1017_v33 = vpack.c.bf16 %v735_v6, %v734_v32 }
 0x1d8   :  { %1012 = vmatpush3.bf16.msra.mxu0 %v1011_v28 }
 0x1d9   :  { %1013 = vmatprep.subr.bf16.mxu0 %v1059_v3 }
 0x1dc   :  { %1015 = vmatpush3.bf16.msra.mxu0 %v1014_v31 }
 0x1dd   :  { %1016 = vmatprep.subr.bf16.mxu0 %v1059_v3 }
 0x1e0   :  { %1018 = vmatpush3.bf16.msra.mxu0 %v1017_v33 }
 0x1e3   :  { %933 = vmatmul.mubr.msk.f32.vlgmr.msra.gmra.mrb[6].mxu0 %vm58_vm1, %v221_v4 }
 0x296   :  { %v306_v36 = vpop.f32.mrb[2].mxu0  ;;  %v393_v37 = vpop.f32.mrb[2].mxu1 }
 0x297   :  { %v307_v38 = vadd.f32 %v711_v34, %v306_v36  ;;  %v394_v39 = vadd.f32 %v713_v35, %v393_v37  ;;  %v858_v40 = vpop.f32.mrb[3].mxu0  ;;  %v877_v41 = vpop.f32.mrb[3].mxu1 }
 0x299   :  { %311 = vst.msk [vmem:[%s1406_s12] sm:$0x3] %vm310_vm2, %v307_v38  ;;  %v397_v3 = vmul.f32 1.442695, %v394_v39 }
 0x29b   :  { %1025 = vpow2.f32 %v397_v3 }
 0x2a5   :  { %v1026_v44 = vpop.eup %1025 }
 0x2a6   :  { %399 = vst.msk [vmem:[%s1407_s13] sm:$0x3] %vm310_vm2, %v1026_v44  ;;  %v481_v45 = vpop.f32.mrb[4].mxu0  ;;  %v568_v46 = vpop.f32.mrb[4].mxu1  ;;  %s688_s13 = sshll.u32 %s1062_s6, 4  ;;  %s689_s13 = int_to_ptr.vmem [resolvable:$true] %s688_s13 }
 0x2a7   :  { %v482_v47 = vadd.f32 %v715_v42, %v481_v45  ;;  %v569_v48 = vadd.f32 %v726_v43, %v568_v46  ;;  %v896_v49 = vpop.f32.mrb[5].mxu0  ;;  %v915_v50 = vpop.f32.mrb[5].mxu1  ;;  %s1035_s2 = scalar_lea.vmem %s689_s13, 96  ;;  %p1040_p1 = scmp.lt.s32.totalorder %s689_s13, %s689_s13 }
 0x2a8   :  { %p1036_p0 = scmp.ne.s32.totalorder %s689_s13, %s1035_s2  ;;  %p1041_p2 = scmp.lt.s32.totalorder %s1035_s2, %s1035_s2 }
 0x2a9   :  { %v659_v51 = vmax.f32 %v482_v47, %v569_v48 }
 0x2aa   :  { %p1042_p3 = por %p1041_p2, %p1040_p1 }
 0x2ac   :  { %p1043_p4 = pnand %p1042_p3, %p1036_p0 }
 0x2b6   :  { %v655_v53 = vpop.f32.mrb[6].mxu0 }
 0x2b7   :  { %v656_v54 = vadd.f32 %v737_v52, %v655_v53  ;;  %v934_v55 = vpop.f32.mrb[7].mxu0 }
 0x2b9   :  { %v660_v56 = vmax.f32 %v659_v51, %v656_v54 }
 0x2bb   :  { %v661_v57 = vsub.f32 %v482_v47, %v660_v56  ;;  %v664_v58 = vsub.f32 %v569_v48, %v660_v56  ;;  %v667_v59 = vsub.f32 %v656_v54, %v660_v56 }
 0x2bd   :  { %v662_v60 = vmul.f32 1.442695, %v661_v57  ;;  %v665_v61 = vmul.f32 1.442695, %v664_v58  ;;  %v668_v62 = vmul.f32 1.442695, %v667_v59 }
 0x2bf   :  { %1027 = vpow2.f32 %v662_v60 }
 0x2c0   :  { %1029 = vpow2.f32 %v665_v61 }
 0x2c1   :  { %1031 = vpow2.f32 %v668_v62 }
 0x2c9   :  { %v1028_v63 = vpop.eup %1027 }
 0x2ca   :  { %v1030_v0 = vpop.eup %1029 }
 0x2cb   :  { %v670_v1 = vadd.f32 %v1030_v0, %v1028_v63  ;;  %v1032_v2 = vpop.eup %1031 }
 0x2cd   :  { %v671_v4 = vadd.f32 %v1032_v2, %v670_v1 }
 0x2cf   :  { %1033 = vrcp.f32 %v671_v4 }
 0x2d9   :  { %v1034_v5 = vpop.eup %1033 }
 0x2da   :  { %v674_v7 = vmul.f32 %v1034_v5, %v1028_v63  ;;  %v677_v8 = vmul.f32 %v1034_v5, %v1030_v0  ;;  %v680_v9 = vmul.f32 %v1034_v5, %v1032_v2 }
 0x2dc   :  { %676 = vst.msk [vmem:[#allocation2] sm:$0x3] %vm675_vm3, %v674_v7  ;;  %679 = vst.msk [vmem:[#allocation2 + $0x2] sm:$0x3] %vm675_vm3, %v677_v8 }
 0x2dd   :  { %682 = vst.msk [vmem:[#allocation2 + $0x4] sm:$0x3] %vm675_vm3, %v680_v9 }
 0x2de   :  { %1046 = shalt.err (!%p1043_p4)
}
 0x2df   :  { %s1047_s27 = scalar_lea.hbm %s1405_s11, 96 }
 0x2e0   :  { %p1048_p5 = scmp.ne.s32.totalorder %s1405_s11, %s1047_s27  ;;  %p1051_p6 = scmp.lt.u32.totalorder %s1047_s27, %s1405_s11 }
 0x2e2   :  { %p1053_p7 = pnand %p1051_p6, %p1048_p5 }
 0x2e4   :  { %1056 = shalt.err (!%p1053_p7)
}
 0x2e5   :  { %s1063_s14 = smov 32   ;;  %s1064_s15 = smov 2  }
 0x2e6   :  { %694 = dma.vmem_to_hbm [thread:$0]  %s689_s13, 96, %s1405_s11, [#allocation3], %s1063_s14, %s1063_s14, %s1064_s15  }
 0x2e7   :  { %1057 = dma.done.wait [#allocation3], 96  }
 0x2e8   :  { %1058 = vsyncadd [#allocation3], 4294967200 }
 0x2e9   :  { %706 = vsyncpa [#allocation3], 1 }

// kernel: _lambda_.8
= control target key start
LH: loop header
LB: loop body
LE: loop exit
PB: predicated region body
PF: predicated region fallthrough
CT: control target
= control target key end

     0   :  { %s2198_s29 = smov 0   ;;  %s2422_s0 = inlined_call_operand.vmem [shape: f32[2,4,32], index: 0, kind: input, shape index: {}]   ;;  %s2423_s1 = inlined_call_operand.vmem [shape: f32[2,1,4], index: 1, kind: input, shape index: {}]   ;;  %s2424_s2 = inlined_call_operand.vmem [shape: f32[32,96], index: 2, kind: input, shape index: {}]   ;;  %s2425_s3 = inlined_call_operand.vmem [shape: f32[1,96], index: 3, kind: input, shape index: {}]   ;;  %s2426_s4 = inlined_call_operand.vmem [shape: f32[32,32], index: 4, kind: input, shape index: {}]   ;;  %s2427_s5 = inlined_call_operand.vmem [shape: f32[1,32], index: 5, kind: input, shape index: {}]   ;;  %s2428_s6 = inlined_call_operand.vmem [shape: f32[1,32], index: 6, kind: input, shape index: {}]   ;;  %s2429_s7 = inlined_call_operand.vmem [shape: f32[1,32], index: 7, kind: input, shape index: {}]   ;;  %s2430_s8 = inlined_call_operand.vmem [shape: f32[32,64], index: 8, kind: input, shape index: {}]   ;;  %s2431_s9 = inlined_call_operand.vmem [shape: f32[1,64], index: 9, kind: input, shape index: {}]   ;;  %s2432_s10 = inlined_call_operand.vmem [shape: f32[64,32], index: 10, kind: input, shape index: {}]   ;;  %s2433_s11 = inlined_call_operand.vmem [shape: f32[1,32], index: 11, kind: input, shape index: {}]   ;;  %s2434_s12 = inlined_call_operand.vmem [shape: f32[1,32], index: 12, kind: input, shape index: {}]   ;;  %s2435_s13 = inlined_call_operand.vmem [shape: f32[1,32], index: 13, kind: input, shape index: {}]   ;;  %s2436_s14 = inlined_call_operand.vmem [shape: f32[2,4,32], index: 14, kind: output, shape index: {}]  }
   0x1 LB: > { %s1851_s30 = sadd.s32 4294967295, %s2107_s29   ;;  %p1855_p0 = scmp.ge.s32.totalorder %s2107_s29, 1  ;;  %s2107_s29 = sphi %s2198_s29, %s24_s29  }
   0x2   : > { %p419_p1 = scmp.lt.s32.totalorder %s2107_s29, 3 }
   0x4   : > { %p420_p2 = pnand %p1855_p0, %p419_p1 }
   0x5   : > { %v480_v0 = vld [vmem:[%s2424_s2] sm:$0xff] (!%p420_p2)  ;;  %v481_v1 = vld [vmem:[%s2424_s2 + $0x8] sm:$0xff] (!%p420_p2)  ;;  %v482_v2 = vld [vmem:[%s2424_s2 + $0x10] sm:$0xff] (!%p420_p2)  ;;  %v2109_v3 = vmov (!%p420_p2), 0.0|0.0   ;;  %vm2110_vm0 = vmmov (!%p420_p2), 0   ;;  %v2111_v6 = vmov (!%p420_p2), 0.0   ;;  %v649_v16 = vlaneseq (!%p420_p2) }
   0x6   : > { %423 = sbr.rel (%p420_p2) target bundleno = 3652 (0xe44), region = 76  ;;  %2035 = vmatprep.subr.bf16.mxu0 (!%p420_p2), %v2109_v3  ;;  %v2036_v4 = vpack.c.bf16 (!%p420_p2), %v481_v1, %v480_v0  ;;  %v483_v5 = vld [vmem:[%s2424_s2 + $0x18] sm:$0xff] (!%p420_p2)  ;;  %1942 = vmatprep.mubr.msk.f32.mxu0 (!%p420_p2), %vm2110_vm0, %v2111_v6  ;;  %p466_p3 = scmp.lt.s32.totalorder (!%p420_p2), %s1851_s30, 1  ;;  %vm491_vm1 = vcmask (!%p420_p2), 261120   ;;  %v1858_v9 = vld [vmem:[%s2425_s3] ss:$0 sm:$0xff] (!%p420_p2) }
   0x7   : > { %1950 = vmatprep.subr.mxu1 (!%p420_p2), %v2111_v6  ;;  %1952 = vmatprep.mubr.msk.f32.mxu1 (!%p420_p2), %vm2110_vm0, %v2111_v6  ;;  %v2039_v7 = vpack.c.bf16 (!%p420_p2), %v483_v5, %v482_v2  ;;  %s2112_s15 = smov (!%p420_p2), 120   ;;  %s2113_s16 = smov (!%p420_p2), 96   ;;  %vm572_vm2 = vcmask (!%p420_p2), 64512   ;;  %v650_v17 = vshrl.u32 (!%p420_p2), %v649_v16, 7  ;;  %vm655_vm3 = vcmask (!%p420_p2), 27648   ;;  %v566_v42 = vld [vmem:[%s2426_s4 + $0x8] sm:$0xff] (!%p420_p2) }
   0x8   : > { %2037 = vmatpush3.bf16.msra.mxu0 (!%p420_p2), %v2036_v4  ;;  %s2114_s17 = smov (!%p420_p2), 88   ;;  %s2115_s21 = smov (!%p420_p2), 56   ;;  %vm673_vm4 = vcmask (!%p420_p2), 1043456   ;;  %vm669_vm5 = vcmask (!%p420_p2), 31744   ;;  %v565_v51 = vld [vmem:[%s2426_s4] sm:$0xff] (!%p420_p2)  ;;  %vm1555_vm6 = vcmask (!%p420_p2), 257024  }
   0x9   : > { %2038 = vmatprep.subr.bf16.mxu0 (!%p420_p2), %v2109_v3  ;;  %v651_v20 = vsub.s32 (!%p420_p2), 0, %v650_v17  ;;  %s2116_s22 = smov (!%p420_p2), 64   ;;  %s2117_s24 = smov (!%p420_p2), 80   ;;  %vm1684_vm7 = vcmask (!%p420_p2), 523264  }
   0xa   : > { %s2118_s25 = smov (!%p420_p2), 112   ;;  %s2121_s18 = smov (!%p420_p2), 48  }
   0xc   : > { %2040 = vmatpush3.bf16.msra.mxu0 (!%p420_p2), %v2039_v7 }
   0xd   : > { %s2438_s30 = smov (!%p466_p3, %s1851_s30), 1  ;;  %1945 = vmatprep.subr.mxu0 %v2111_v6 }
   0xe   : > { %s1856_s23 = sshll.u32 %s2438_s30, 2  ;;  %s472_s20 = scalar_lea.vmem %s2423_s1, %s2438_s30 }
   0xf   : > { %s469_s26 = scalar_lea.vmem %s2422_s0, %s1856_s23  ;;  %v478_v18 = vld [vmem:[%s472_s20] sm:$0x1] }
  0x10   : > { %v2233_v8 = vld [vmem:[%s469_s26] sm:$0xf]  ;;  %v479_v19 = vmul.f32 -1e+09, %v478_v18  ;;  %s476_s26 = scalar_lea.vmem %s2436_s14, %s1856_s23 }
  0x11   : > { %1943 = vmatmul.mubr.msk.f32.vlgmr.msra.gmra.mrb[0].mxu0 %vm491_vm1, %v2233_v8 }
  0x12   : > { %1947 = vmatprep.mubr.msk.f32.mxu0 %vm2110_vm0, %v2111_v6  ;;  %v2263_v21 = vrot.slane %v479_v19, %v651_v20  ;;  %v567_v19 = vld [vmem:[%s2426_s4 + $0x10] sm:$0xff] }
  0xe4   : > { %v561_v10 = vpop.f32.mrb[0].mxu0 }
  0xe5   : > { %v2243_v11 = vadd.f32 %v1858_v9, %v561_v10  ;;  %v1944_v12 = vpop.f32.mrb[1].mxu0 }
  0xe7   : > { %746 = vrot.lane.b32.xlu1 %v2243_v11, %s2112_s15  ;;  %570 = vrot.lane.b32.xlu0 %v2243_v11, %s2113_s16  ;;  %s2119_s16 = smov 72  }
  0xeb   : > { %748 = vrot.lane.b32.xlu0 %v2243_v11, %s2114_s17  ;;  %s2120_s17 = smov 104  }
 0x159   : > { %v571_v13 = vpop.permute.xlu0 %570  ;;  %v747_v15 = vpop.permute.xlu1 %746 }
 0x15a   : > { %1946 = vmatpush3.xpose.msk.msra.mxu0 %vm572_vm2, %v571_v13 }
 0x15b   : > { %1955 = vmatprep.subr.mxu0 %v2111_v6 }
 0x15d   : > { %1948 = vmatmul.mubr.msk.f32.vlgmr.msra.gmra.mrb[2].mxu0 %vm572_vm2, %v2243_v11  ;;  %v749_v14 = vpop.permute.xlu0 %748 }
 0x15e   : > { %1956 = vmatpush3.xpose.msk.msra.mxu0 %vm572_vm2, %v749_v14  ;;  %1957 = vmatprep.mubr.msk.f32.mxu0 %vm2110_vm0, %v2111_v6 }
 0x15f   : > { %1965 = vmatprep.subr.mxu0 %v2111_v6 }
 0x161   : > { %1958 = vmatmul.mubr.msk.f32.vlgmr.msra.gmra.mrb[4].mxu0 %vm572_vm2, %v747_v15 }
 0x162   : > { %1967 = vmatprep.mubr.msk.f32.mxu0 %vm2110_vm0, %v2111_v6  ;;  %1966 = vmatpush3.msra.mxu0 %v566_v42  ;;  %v1880_v42 = vld [vmem:[%s2427_s5] ss:$0 sm:$0xff] }
 0x163   : > { %1975 = vmatprep.subr.mxu0 %v2111_v6 }
 0x230   : > { %v643_v22 = vpop.f32.mrb[2].mxu0 }
 0x231   : > { %v647_v23 = vmul.f32 0.35355338, %v643_v22  ;;  %v1949_v24 = vpop.f32.mrb[3].mxu0 }
 0x233   : > { %v654_v25 = vadd.f32 %v2263_v21, %v647_v23 }
 0x234   : > { %v820_v26 = vpop.f32.mrb[4].mxu0 }
 0x235   : > { %v824_v27 = vmul.f32 0.35355338, %v820_v26  ;;  %v1959_v28 = vpop.f32.mrb[5].mxu0  ;;  %v656_v29 = vsel %vm655_vm3, %v654_v25, -inf }
 0x236   : > { %657 = vmax.xlane.f32.xlu1 %v656_v29 }
 0x237   : > { %v825_v30 = vadd.f32 %v824_v27, %v2263_v21 }
 0x239   : > { %v826_v31 = vsel %vm655_vm3, %v825_v30, -inf }
 0x23a   : > { %827 = vmax.xlane.f32.xlu0 %v826_v31 }
 0x2c3   : > { %v658_v32 = vpop.xlane.xlu1 %657 }
 0x2c4   : > { %v659_v33 = vsub.f32 %v654_v25, %v658_v32 }
 0x2c6   : > { %v660_v34 = vmul.f32 1.442695, %v659_v33 }
 0x2c7   : > { %v828_v35 = vpop.xlane.xlu0 %827 }
 0x2c8   : > { %2081 = vpow2.f32 %v660_v34  ;;  %v829_v36 = vsub.f32 %v825_v30, %v828_v35 }
 0x2ca   : > { %v830_v37 = vmul.f32 1.442695, %v829_v36 }
 0x2cc   : > { %2083 = vpow2.f32 %v830_v37 }
 0x2d2   : > { %v2082_v38 = vpop.eup %2081 }
 0x2d3   : > { %v662_v39 = vsel %vm655_vm3, %v2082_v38, 0.0 }
 0x2d4   : > { %663 = vadd.xlane.f32.xlu0 %v662_v39 }
 0x2d6   : > { %v2084_v40 = vpop.eup %2083 }
 0x2d7   : > { %v832_v41 = vsel %vm655_vm3, %v2084_v40, 0.0 }
 0x2d8   : > { %833 = vadd.xlane.f32.xlu1 %v832_v41 }
 0x2e9   : > { %837 = vrot.lane.b32.xlu1 %v2243_v11, %s2115_s21  ;;  %s2122_s21 = smov 40  }
 0x2ea   : > { %667 = vrot.lane.b32.xlu0 %v2243_v11, %s2116_s22 }
 0x2ed   : > { %1062 = vrot.lane.b32.xlu1 %v2243_v11, %s2117_s24 }
 0x2ee   : > { %1060 = vrot.lane.b32.xlu0 %v2243_v11, %s2118_s25 }
 0x361   : > { %v664_v43 = vpop.xlane.xlu0 %663 }
 0x362   : > { %2085 = vrcp.f32 %v664_v43 }
 0x365   : > { %v834_v44 = vpop.xlane.xlu1 %833  ;;  %v668_v45 = vpop.permute.xlu0 %667 }
 0x366   : > { %2087 = vrcp.f32 %v834_v44  ;;  %1951 = vmatpush3.msk.msra.mxu1 %vm673_vm4, %v668_v45 }
 0x367   : > { %1960 = vmatprep.subr.mxu1 %v2111_v6 }
 0x369   : > { %v838_v48 = vpop.permute.xlu1 %837  ;;  %v1061_v57 = vpop.permute.xlu0 %1060 }
 0x36c   : > { %v2086_v46 = vpop.eup %2085 }
 0x36d   : > { %v666_v47 = vmul.f32 %v2086_v46, %v2082_v38  ;;  %v1063_v55 = vpop.permute.xlu1 %1062 }
 0x36f   : > { %1953 = vmatmul.mubr.msk.f32.vlgmr.msra.gmra.mrb[0].mxu1 %vm669_vm5, %v666_v47 }
 0x370   : > { %v2088_v49 = vpop.eup %2087  ;;  %1961 = vmatpush3.msk.msra.mxu1 %vm673_vm4, %v838_v48  ;;  %1962 = vmatprep.mubr.msk.f32.mxu1 %vm2110_vm0, %v2111_v6 }
 0x371   : > { %v836_v50 = vmul.f32 %v2088_v49, %v2084_v40  ;;  %1970 = vmatprep.subr.mxu1 %v2111_v6 }
 0x373   : > { %1963 = vmatmul.mubr.msk.f32.vlgmr.msra.gmra.mrb[2].mxu1 %vm669_vm5, %v836_v50 }
 0x374   : > { %1972 = vmatprep.mubr.msk.f32.mxu1 %vm2110_vm0, %v2111_v6  ;;  %1971 = vmatpush3.msra.mxu1 %v565_v51 }
 0x375   : > { %1980 = vmatprep.subr.mxu1 %v2111_v6 }
 0x442   : > { %v742_v52 = vpop.f32.mrb[0].mxu1 }
 0x443   : > { %v1954_v53 = vpop.f32.mrb[1].mxu1  ;;  %1973 = vmatmul.mubr.msk.f32.vlgmr.msra.gmra.mrb[4].mxu1 %vm572_vm2, %v742_v52  ;;  %v1584_v52 = vld [vmem:[%s2430_s8] sm:$0xff] }
 0x444   : > { %1982 = vmatprep.mubr.msk.f32.mxu1 %vm2110_vm0, %v2111_v6  ;;  %v1585_v53 = vld [vmem:[%s2430_s8 + $0x8] sm:$0xff] }
 0x446   : > { %v910_v54 = vpop.f32.mrb[2].mxu1 }
 0x447   : > { %v1964_v56 = vpop.f32.mrb[3].mxu1  ;;  %1968 = vmatmul.mubr.msk.f32.vlgmr.msra.gmra.mrb[6].mxu0 %vm572_vm2, %v910_v54  ;;  %v2042_v54 = vpack.c.bf16 %v1585_v53, %v1584_v52 }
 0x448   : > { %1976 = vmatpush3.xpose.msk.msra.mxu0 %vm572_vm2, %v1063_v55  ;;  %1977 = vmatprep.mubr.msk.f32.mxu0 %vm2110_vm0, %v2111_v6  ;;  %v1587_v55 = vld [vmem:[%s2430_s8 + $0x18] sm:$0xff] }
 0x449   : > { %1985 = vmatprep.subr.mxu0 %v2111_v6 }
 0x44b   : > { %1978 = vmatmul.mubr.msk.f32.vlgmr.msra.gmra.mrb[8].mxu0 %vm572_vm2, %v1061_v57  ;;  %v1669_v57 = vld [vmem:[%s2432_s10] sm:$0xff] }
 0x44c   : > { %1987 = vmatprep.mubr.msk.f32.mxu0 %vm2110_vm0, %v2111_v6  ;;  %1986 = vmatpush3.msra.mxu0 %v567_v19 }
 0x44d   : > { %1995 = vmatprep.subr.mxu0 %v2111_v6 }
 0x516   : > { %v1056_v58 = vpop.f32.mrb[4].mxu1 }
 0x517   : > { %v1974_v59 = vpop.f32.mrb[5].mxu1 }
 0x518   : > { %v1671_v59 = vld [vmem:[%s2432_s10 + $0x10] sm:$0xff] }
 0x51a   : > { %v983_v60 = vpop.f32.mrb[6].mxu0 }
 0x51b   : > { %v2304_v61 = vadd.f32 %v1056_v58, %v983_v60  ;;  %v1969_v62 = vpop.f32.mrb[7].mxu0  ;;  %v1670_v58 = vld [vmem:[%s2432_s10 + $0x8] sm:$0xff] }
 0x51c   : > { %v2048_v60 = vpack.c.bf16 %v1670_v58, %v1669_v57 }
 0x51e   : > { %v1134_v63 = vpop.f32.mrb[8].mxu0 }
 0x51f   : > { %v1138_v0 = vmul.f32 0.35355338, %v1134_v63  ;;  %v1979_v1 = vpop.f32.mrb[9].mxu0  ;;  %v1673_v63 = vld [vmem:[%s2432_s10 + $0x20] sm:$0xff] }
 0x521   : > { %v1139_v2 = vadd.f32 %v1138_v0, %v2263_v21  ;;  %v1674_v0 = vld [vmem:[%s2432_s10 + $0x28] sm:$0xff] }
 0x522   : > { %v2054_v1 = vpack.c.bf16 %v1674_v0, %v1673_v63 }
 0x523   : > { %v1140_v4 = vsel %vm655_vm3, %v1139_v2, -inf }
 0x524   : > { %1141 = vmax.xlane.f32.xlu1 %v1140_v4 }
 0x535   : > { %1304 = vrot.lane.b32.xlu1 %v2243_v11, %s2119_s16 }
 0x539   : > { %1302 = vrot.lane.b32.xlu1 %v2243_v11, %s2120_s17 }
 0x5b1   : > { %v1142_v5 = vpop.xlane.xlu1 %1141 }
 0x5b2   : > { %v1143_v7 = vsub.f32 %v1139_v2, %v1142_v5 }
 0x5b4   : > { %v1144_v9 = vmul.f32 1.442695, %v1143_v7 }
 0x5b5   : > { %v1305_v16 = vpop.permute.xlu1 %1304 }
 0x5b6   : > { %2089 = vpow2.f32 %v1144_v9  ;;  %v1881_v9 = vld [vmem:[%s2428_s6] ss:$0 sm:$0xff] }
 0x5b9   : > { %v1303_v18 = vpop.permute.xlu1 %1302 }
 0x5c0   : > { %v2090_v10 = vpop.eup %2089 }
 0x5c1   : > { %v1146_v12 = vsel %vm655_vm3, %v2090_v10, 0.0 }
 0x5c2   : > { %1147 = vadd.xlane.f32.xlu0 %v1146_v12  ;;  %v1882_v12 = vld [vmem:[%s2429_s7] ss:$0 sm:$0xff] }
 0x5d8   : > { %1151 = vrot.lane.b32.xlu0 %v2243_v11, %s2121_s18 }
 0x64f   : > { %v1148_v13 = vpop.xlane.xlu0 %1147 }
 0x650   : > { %2091 = vrcp.f32 %v1148_v13 }
 0x653   : > { %v1152_v14 = vpop.permute.xlu0 %1151 }
 0x654   : > { %1981 = vmatpush3.msk.msra.mxu1 %vm673_vm4, %v1152_v14 }
 0x655   : > { %1990 = vmatprep.subr.mxu1 %v2111_v6 }
 0x65a   : > { %v2092_v15 = vpop.eup %2091 }
 0x65b   : > { %v1150_v17 = vmul.f32 %v2092_v15, %v2090_v10  ;;  %v1676_v15 = vld [vmem:[%s2432_s10 + $0x38] sm:$0xff] }
 0x65d   : > { %1983 = vmatmul.mubr.msk.f32.vlgmr.msra.gmra.mrb[6].mxu1 %vm669_vm5, %v1150_v17  ;;  %v1883_v17 = vld [vmem:[%s2431_s9] ss:$0 sm:$0xff] }
 0x65e   : > { %1991 = vmatpush3.xpose.msk.msra.mxu1 %vm572_vm2, %v1305_v16  ;;  %1992 = vmatprep.mubr.msk.f32.mxu1 %vm2110_vm0, %v2111_v6 }
 0x65f   : > { %2000 = vmatprep.subr.mxu1 %v2111_v6 }
 0x661   : > { %1993 = vmatmul.mubr.msk.f32.vlgmr.msra.gmra.mrb[8].mxu1 %vm572_vm2, %v1303_v18 }
 0x662   : > { %2002 = vmatprep.mubr.msk.f32.mxu1 %vm2110_vm0, %v2111_v6 }
 0x730   : > { %v1224_v20 = vpop.f32.mrb[6].mxu1 }
 0x731   : > { %v1984_v22 = vpop.f32.mrb[7].mxu1  ;;  %1988 = vmatmul.mubr.msk.f32.vlgmr.msra.gmra.mrb[10].mxu0 %vm572_vm2, %v1224_v20 }
 0x732   : > { %1997 = vmatprep.mubr.msk.f32.mxu0 %vm2110_vm0, %v2111_v6 }
 0x734   : > { %v1376_v23 = vpop.f32.mrb[8].mxu1 }
 0x735   : > { %v1380_v24 = vmul.f32 0.35355338, %v1376_v23  ;;  %v1994_v25 = vpop.f32.mrb[9].mxu1  ;;  %v1885_v23 = vld [vmem:[%s2433_s11] ss:$0 sm:$0xff] }
 0x737   : > { %v1381_v26 = vadd.f32 %v1380_v24, %v2263_v21  ;;  %v568_v21 = vld [vmem:[%s2426_s4 + $0x18] sm:$0xff] }
 0x738   : > { %2001 = vmatpush3.msra.mxu1 %v568_v21 }
 0x739   : > { %v1382_v27 = vsel %vm655_vm3, %v1381_v26, -inf  ;;  %2047 = vmatprep.subr.bf16.mxu1 %v2109_v3 }
 0x73a   : > { %1383 = vmax.xlane.f32.xlu0 %v1382_v27 }
 0x750   : > { %1393 = vrot.lane.b32.xlu0 %v2243_v11, %s2122_s21 }
 0x7c7   : > { %v1384_v28 = vpop.xlane.xlu0 %1383 }
 0x7c8   : > { %v1385_v29 = vsub.f32 %v1381_v26, %v1384_v28 }
 0x7ca   : > { %v1386_v30 = vmul.f32 1.442695, %v1385_v29 }
 0x7cb   : > { %v1394_v31 = vpop.permute.xlu0 %1393 }
 0x7cc   : > { %2093 = vpow2.f32 %v1386_v30  ;;  %1996 = vmatpush3.msk.msra.mxu0 %vm673_vm4, %v1394_v31 }
 0x7cd   : > { %2041 = vmatprep.subr.bf16.mxu0 %v2109_v3 }
 0x7d6   : > { %v2094_v32 = vpop.eup %2093 }
 0x7d7   : > { %v1388_v33 = vsel %vm655_vm3, %v2094_v32, 0.0 }
 0x7d8   : > { %1389 = vadd.xlane.f32.xlu1 %v1388_v33 }
 0x804   : > { %v1297_v11 = vpop.f32.mrb[10].mxu0 }
 0x805   : > { %v1301_v34 = vadd.f32 %v1297_v11, %v2304_v61  ;;  %v1989_v35 = vpop.f32.mrb[11].mxu0  ;;  %v1672_v61 = vld [vmem:[%s2432_s10 + $0x18] sm:$0xff] }
 0x806   : > { %v2051_v62 = vpack.c.bf16 %v1672_v61, %v1671_v59 }
 0x865   : > { %v1390_v36 = vpop.xlane.xlu1 %1389 }
 0x866   : > { %2095 = vrcp.f32 %v1390_v36  ;;  %v1887_v36 = vld [vmem:[%s2434_s12] ss:$0 sm:$0xff] }
 0x870   : > { %v2096_v37 = vpop.eup %2095 }
 0x871   : > { %v1392_v38 = vmul.f32 %v2096_v37, %v2094_v32 }
 0x873   : > { %1998 = vmatmul.mubr.msk.f32.vlgmr.msra.gmra.mrb[12].mxu0 %vm669_vm5, %v1392_v38  ;;  %v1888_v38 = vld [vmem:[%s2435_s13] ss:$0 sm:$0xff] }
 0x874   : > { %2013 = vmatprep.mubr.msk.f32.mxu0 %vm2110_vm0, %v2111_v6  ;;  %2043 = vmatpush3.bf16.msra.mxu0 %v2042_v54 }
 0x875   : > { %2044 = vmatprep.subr.bf16.mxu0 %v2109_v3 }
 0x946   : > { %v1466_v39 = vpop.f32.mrb[12].mxu0 }
 0x947   : > { %v1999_v40 = vpop.f32.mrb[13].mxu0  ;;  %2003 = vmatmul.mubr.msk.f32.vlgmr.msra.gmra.mrb[10].mxu1 %vm572_vm2, %v1466_v39 }
 0x948   : > { %2032 = vmatprep.mubr.msk.f32.mxu1 %vm2110_vm0, %v2111_v6  ;;  %2049 = vmatpush3.bf16.msra.mxu1 %v2048_v60 }
 0x949   : > { %2050 = vmatprep.subr.bf16.mxu1 %v2109_v3 }
 0x94c   : > { %2052 = vmatpush3.bf16.msra.mxu1 %v2051_v62 }
 0x94d   : > { %2053 = vmatprep.subr.bf16.mxu1 %v2109_v3 }
 0x950   : > { %2055 = vmatpush3.bf16.msra.mxu1 %v2054_v1 }
 0x951   : > { %2056 = vmatprep.subr.bf16.mxu1 %v2109_v3  ;;  %v1675_v3 = vld [vmem:[%s2432_s10 + $0x30] sm:$0xff] }
 0x952   : > { %v2057_v16 = vpack.c.bf16 %v1676_v15, %v1675_v3 }
 0x954   : > { %2058 = vmatpush3.bf16.msra.mxu1 %v2057_v16 }
 0xa1a   : > { %v1539_v41 = vpop.f32.mrb[10].mxu1 }
 0xa1b   : > { %v1543_v43 = vadd.f32 %v1539_v41, %v1301_v34  ;;  %v2004_v44 = vpop.f32.mrb[11].mxu1 }
 0xa1d   : > { %v1551_v45 = vadd.f32 %v1880_v42, %v1543_v43 }
 0xa1f   : > { %v1552_v46 = vadd.f32 %v1551_v45, %v2233_v8  ;;  %v1586_v8 = vld [vmem:[%s2430_s8 + $0x10] sm:$0xff] }
 0xa20   : > { %v2045_v56 = vpack.c.bf16 %v1587_v55, %v1586_v8 }
 0xa21   : > { %v1556_v47 = vsel %vm1555_vm6, %v1552_v46, 0.0 }
 0xa22   : > { %1557 = vadd.xlane.f32.xlu1 %v1556_v47  ;;  %2046 = vmatpush3.bf16.msra.mxu0 %v2045_v56 }
 0xaaf   : > { %v1558_v48 = vpop.xlane.xlu1 %1557 }
 0xab0   : > { %v1560_v49 = vmul.f32 0.03125, %v1558_v48 }
 0xab2   : > { %v1561_v50 = vsub.f32 %v1552_v46, %v1560_v49 }
 0xab4   : > { %v1562_v51 = vmul.f32 %v1561_v50, %v1561_v50 }
 0xab6   : > { %v1563_v6 = vsel %vm1555_vm6, %v1562_v51, 0.0 }
 0xab7   : > { %1564 = vadd.xlane.f32.xlu1 %v1563_v6 }
 0xb44   : > { %v1565_v2 = vpop.xlane.xlu1 %1564 }
 0xb45   : > { %v1566_v4 = vmul.f32 0.03125, %v1565_v2 }
 0xb47   : > { %v1567_v5 = vadd.f32 1e-05, %v1566_v4 }
 0xb49   : > { %2097 = vrsqrt.f32 %v1567_v5 }
 0xb53   : > { %v2098_v7 = vpop.eup %2097 }
 0xb54   : > { %v1569_v10 = vmul.f32 %v2098_v7, %v1561_v50 }
 0xb56   : > { %v1576_v13 = vmul.f32 %v1881_v9, %v1569_v10 }
 0xb58   : > { %v1583_v14 = vadd.f32 %v1882_v12, %v1576_v13 }
 0xb5a   : > { %2014 = vmatmul.mubr.msk.f32.vlgmr.msra.gmra.mrb[14].mxu0 %vm491_vm1, %v1583_v14 }
 0xc2d   : > { %v1664_v18 = vpop.f32.mrb[14].mxu0 }
 0xc2e   : > { %v1665_v19 = vadd.f32 %v1883_v17, %v1664_v18  ;;  %v2015_v20 = vpop.f32.mrb[15].mxu0 }
 0xc30   : > { %v1668_v22 = vmax.f32 %v1665_v19, 0.0 }
 0xc32   : > { %2033 = vmatmul.mubr.msk.f32.vlgmr.msra.gmra.mrb[12].mxu1 %vm1684_vm7, %v1668_v22 }
 0xd05   : > { %v1754_v24 = vpop.f32.mrb[12].mxu1 }
 0xd06   : > { %v1755_v25 = vadd.f32 %v1885_v23, %v1754_v24  ;;  %v2034_v26 = vpop.f32.mrb[13].mxu1 }
 0xd08   : > { %v1758_v27 = vadd.f32 %v1755_v25, %v1583_v14 }
 0xd0a   : > { %v1761_v28 = vsel %vm1555_vm6, %v1758_v27, 0.0 }
 0xd0b   : > { %1762 = vadd.xlane.f32.xlu1 %v1761_v28 }
 0xd98   : > { %v1763_v29 = vpop.xlane.xlu1 %1762 }
 0xd99   : > { %v1764_v30 = vmul.f32 0.03125, %v1763_v29 }
 0xd9b   : > { %v1765_v31 = vsub.f32 %v1758_v27, %v1764_v30 }
 0xd9d   : > { %v1766_v32 = vmul.f32 %v1765_v31, %v1765_v31 }
 0xd9f   : > { %v1767_v33 = vsel %vm1555_vm6, %v1766_v32, 0.0 }
 0xda0   : > { %1768 = vadd.xlane.f32.xlu1 %v1767_v33 }
 0xe2d   : > { %v1769_v21 = vpop.xlane.xlu1 %1768 }
 0xe2e   : > { %v1770_v11 = vmul.f32 0.03125, %v1769_v21 }
 0xe30   : > { %v1771_v34 = vadd.f32 1e-05, %v1770_v11 }
 0xe32   : > { %2099 = vrsqrt.f32 %v1771_v34 }
 0xe3c   : > { %v2100_v35 = vpop.eup %2099 }
 0xe3d   : > { %v1773_v37 = vmul.f32 %v2100_v35, %v1765_v31 }
 0xe3f   : > { %v1780_v39 = vmul.f32 %v1887_v36, %v1773_v37 }
 0xe41   : > { %v1787_v40 = vadd.f32 %v1888_v38, %v1780_v39 }
 0xe43   : > { %1788 = vst.msk [vmem:[%s476_s26] sm:$0xf] %vm1555_vm6, %v1787_v40 }
 0xe44 PF: > { %s24_s29 = sadd.s32 1, %s2107_s29  }
 0xe45   : > { %p21_p4 = scmp.ge.s32.totalorder %s24_s29, 4  }
 0xe47   :  { %23 = sbr.rel (!%p21_p4) target bundleno = 1 (0x1), region = 109 }

// kernel: _lambda_.7
= control target key start
LH: loop header
LB: loop body
LE: loop exit
PB: predicated region body
PF: predicated region fallthrough
CT: control target
= control target key end

     0   :  { %vm72_vm0 = vcmask 1041408   ;;  %vm47_vm1 = vcmask 15360   ;;  %v2530_v13 = vmov 0.0|0.0   ;;  %vm2531_vm2 = vmmov 0   ;;  %s2923_s2 = inlined_call_operand.vmem [shape: f32[2,128], index: 2, kind: input, shape index: {}]   ;;  %s2924_s5 = inlined_call_operand.vmem [shape: f32[2,128], index: 5, kind: input, shape index: {}]   ;;  %s2925_s0 = inlined_call_operand.vmem [shape: f32[64,2], index: 0, kind: input, shape index: {}]   ;;  %s2926_s1 = inlined_call_operand.vmem [shape: f32[64,2], index: 1, kind: input, shape index: {}]   ;;  %s2927_s3 = inlined_call_operand.vmem [shape: f32[32,128], index: 3, kind: input, shape index: {}]   ;;  %s2928_s6 = inlined_call_operand.vmem [shape: f32[32,128], index: 6, kind: input, shape index: {}]   ;;  %s2929_s4 = inlined_call_operand.vmem [shape: f32[1,128], index: 4, kind: input, shape index: {}]   ;;  %s2930_s7 = inlined_call_operand.vmem [shape: f32[1,128], index: 7, kind: input, shape index: {}]   ;;  %s2931_s8 = inlined_call_operand.vmem [shape: f32[8,32], index: 8, kind: output, shape index: {0}]   ;;  %s2932_s9 = inlined_call_operand.vmem [shape: f32[8,32], index: 9, kind: output, shape index: {1}]  }
   0x1   :  { %v39_v0 = vld [vmem:[%s2923_s2] sm:$0x3]  ;;  %v32_v4 = vld [vmem:[%s2925_s0 + $0x8] sm:$0xff]  ;;  %v33_v8 = vld [vmem:[%s2925_s0 + $0x10] sm:$0xff]  ;;  %v2532_v31 = vmov 0.0   ;;  %vm337_vm3 = vcmask 261120  }
   0x2   :  { %v189_v1 = vld [vmem:[%s2924_s5] sm:$0x3]  ;;  %2097 = vmatprep.subr.msk.mxu0 %vm72_vm0, %v39_v0  ;;  %v182_v5 = vld [vmem:[%s2926_s1 + $0x8] sm:$0xff]  ;;  %v183_v10 = vld [vmem:[%s2926_s1 + $0x10] sm:$0xff] }
   0x3   :  { %v31_v2 = vld [vmem:[%s2925_s0] sm:$0xff]  ;;  %2111 = vmatprep.subr.msk.mxu1 %vm72_vm0, %v189_v1  ;;  %2098 = vmatpush3.msk.msra.mxu0 %vm72_vm0, %v39_v0  ;;  %v330_v7 = vld [vmem:[%s2927_s3 + $0x8] sm:$0xff]  ;;  %v34_v14 = vld [vmem:[%s2925_s0 + $0x18] sm:$0xff] }
   0x4   :  { %v181_v3 = vld [vmem:[%s2926_s1] sm:$0xff]  ;;  %2099 = vmatprep.mubr.msk.f32.mxu0 %vm47_vm1, %v31_v2  ;;  %2112 = vmatpush3.msk.msra.mxu1 %vm72_vm0, %v189_v1  ;;  %v334_v12 = vld [vmem:[%s2928_s6 + $0x8] sm:$0xff]  ;;  %v184_v15 = vld [vmem:[%s2926_s1 + $0x18] sm:$0xff] }
   0x5   :  { %v329_v6 = vld [vmem:[%s2927_s3] sm:$0xff]  ;;  %2113 = vmatprep.mubr.msk.f32.mxu1 %vm47_vm1, %v181_v3  ;;  %2100 = vmatmul.mubr.msk.f32.vlgmr.msra.gmra.mrb[0].mxu0 %vm47_vm1, %v32_v4  ;;  %v331_v18 = vld [vmem:[%s2927_s3 + $0x10] sm:$0xff]  ;;  %v332_v19 = vld [vmem:[%s2927_s3 + $0x18] sm:$0xff] }
   0x6   :  { %v2618_v9 = vpack.c.bf16 %v330_v7, %v329_v6  ;;  %2114 = vmatmul.mubr.msk.f32.vlgmr.msra.gmra.mrb[0].mxu1 %vm47_vm1, %v182_v5  ;;  %v333_v11 = vld [vmem:[%s2928_s6] sm:$0xff]  ;;  %2301 = vmatprep.subr.bf16.mxu0 %v2530_v13  ;;  %v2657_v21 = vpack.c.bf16 %v332_v19, %v331_v18  ;;  %v335_v22 = vld [vmem:[%s2928_s6 + $0x10] sm:$0xff]  ;;  %v336_v23 = vld [vmem:[%s2928_s6 + $0x18] sm:$0xff] }
   0x7   :  { %2102 = vmatprep.mubr.msk.f32.mxu0 %vm47_vm1, %v33_v8  ;;  %v2639_v16 = vpack.c.bf16 %v334_v12, %v333_v11  ;;  %2116 = vmatprep.mubr.msk.f32.mxu1 %vm47_vm1, %v183_v10  ;;  %v35_v17 = vld [vmem:[%s2925_s0 + $0x20] sm:$0xff]  ;;  %v36_v24 = vld [vmem:[%s2925_s0 + $0x28] sm:$0xff]  ;;  %v37_v26 = vld [vmem:[%s2925_s0 + $0x30] sm:$0xff]  ;;  %v2683_v28 = vpack.c.bf16 %v336_v23, %v335_v22 }
   0x8   :  { %2303 = vmatpush3.bf16.msra.mxu0 %v2618_v9  ;;  %2307 = vmatprep.subr.bf16.mxu1 %v2530_v13  ;;  %v185_v20 = vld [vmem:[%s2926_s1 + $0x20] sm:$0xff]  ;;  %v186_v25 = vld [vmem:[%s2926_s1 + $0x28] sm:$0xff]  ;;  %v187_v27 = vld [vmem:[%s2926_s1 + $0x30] sm:$0xff] }
   0x9   :  { %2304 = vmatprep.subr.bf16.mxu0 %v2530_v13  ;;  %2103 = vmatmul.mubr.msk.f32.gmra.mrb[2].mxu0 %vm47_vm1, %v34_v14  ;;  %v38_v29 = vld [vmem:[%s2925_s0 + $0x38] sm:$0xff]  ;;  %v1949_v32 = vld [vmem:[%s2929_s4] ss:$0 sm:$0xff]  ;;  %s2533_s4 = smov 64  }
   0xa   :  { %2117 = vmatmul.mubr.msk.f32.gmra.mrb[2].mxu1 %vm47_vm1, %v184_v15  ;;  %2105 = vmatprep.mubr.msk.f32.mxu0 %vm47_vm1, %v35_v17  ;;  %v188_v30 = vld [vmem:[%s2926_s1 + $0x38] sm:$0xff]  ;;  %v1959_v33 = vld [vmem:[%s2930_s7] ss:$0 sm:$0xff]  ;;  %s2534_s7 = smov 32  }
   0xb   :  { %2309 = vmatpush3.bf16.msra.mxu1 %v2639_v16  ;;  %2119 = vmatprep.mubr.msk.f32.mxu1 %vm47_vm1, %v185_v20 }
   0xc   :  { %2306 = vmatpush3.bf16.msra.mxu0 %v2657_v21  ;;  %2310 = vmatprep.subr.bf16.mxu1 %v2530_v13 }
   0xd   :  { %2313 = vmatprep.subr.bf16.mxu0 %v2530_v13  ;;  %2106 = vmatmul.mubr.msk.f32.gmra.mrb[4].mxu0 %vm47_vm1, %v36_v24 }
   0xe   :  { %2120 = vmatmul.mubr.msk.f32.gmra.mrb[4].mxu1 %vm47_vm1, %v186_v25  ;;  %2108 = vmatprep.mubr.msk.f32.mxu0 %vm47_vm1, %v37_v26 }
   0xf   :  { %2122 = vmatprep.mubr.msk.f32.mxu1 %vm47_vm1, %v187_v27  ;;  %2312 = vmatpush3.bf16.msra.mxu1 %v2683_v28 }
  0x10   :  { %2319 = vmatprep.subr.bf16.mxu1 %v2530_v13 }
  0x11   :  { %2109 = vmatmul.mubr.msk.f32.gmra.mrb[6].mxu0 %vm47_vm1, %v38_v29 }
  0x12   :  { %2123 = vmatmul.mubr.msk.f32.gmra.mrb[6].mxu1 %vm47_vm1, %v188_v30  ;;  %2133 = vmatprep.mubr.msk.f32.mxu0 %vm2531_vm2, %v2532_v31 }
  0x13   :  { %2144 = vmatprep.mubr.msk.f32.mxu1 %vm2531_vm2, %v2532_v31 }
  0x15   :  { %2134 = vmatmul.mubr.f32.vlgmr.msra.gmra.mrb[8].mxu0 %v2532_v31 }
  0x16   :  { %2145 = vmatmul.mubr.f32.vlgmr.msra.gmra.mrb[8].mxu1 %v2532_v31  ;;  %2315 = vmatpush3.bf16.msra.mxu0 %v2618_v9 }
  0x17   :  { %2321 = vmatpush3.bf16.msra.mxu1 %v2639_v16  ;;  %2316 = vmatprep.subr.bf16.mxu0 %v2530_v13 }
  0x18   :  { %2155 = vmatprep.mubr.msk.f32.mxu0 %vm2531_vm2, %v2532_v31  ;;  %2322 = vmatprep.subr.bf16.mxu1 %v2530_v13 }
  0x19   :  { %2166 = vmatprep.mubr.msk.f32.mxu1 %vm2531_vm2, %v2532_v31 }
  0x1a   :  { %2318 = vmatpush3.bf16.msra.mxu0 %v2657_v21 }
  0x1b   :  { %2324 = vmatpush3.bf16.msra.mxu1 %v2683_v28  ;;  %2325 = vmatprep.subr.bf16.mxu0 %v2530_v13 }
  0x1c   :  { %2331 = vmatprep.subr.bf16.mxu1 %v2530_v13 }
  0xd8   :  { %v2101_v34 = vpop.f32.mrb[0].mxu0 }
  0xd9   :  { %v2115_v35 = vpop.f32.mrb[0].mxu1  ;;  %v2725_v36 = vadd.f32 %v2101_v34, %v1949_v32  ;;  %v142_v37 = vpop.f32.mrb[1].mxu0 }
  0xda   :  { %v2727_v38 = vadd.f32 %v2115_v35, %v1959_v33  ;;  %v290_v39 = vpop.f32.mrb[1].mxu1  ;;  %v143_v0 = vadd.f32 %v1949_v32, %v142_v37 }
  0xdb   :  { %v291_v1 = vadd.f32 %v1959_v33, %v290_v39 }
  0xdc   :  { %v2104_v40 = vpop.f32.mrb[2].mxu0 }
  0xdd   :  { %v2118_v41 = vpop.f32.mrb[2].mxu1  ;;  %v2729_v42 = vadd.f32 %v2104_v40, %v1949_v32  ;;  %v152_v43 = vpop.f32.mrb[3].mxu0 }
  0xde   :  { %v2731_v44 = vadd.f32 %v2118_v41, %v1959_v33  ;;  %v300_v45 = vpop.f32.mrb[3].mxu1  ;;  %v2733_v46 = vadd.f32 %v1949_v32, %v152_v43 }
  0xdf   :  { %v2735_v47 = vadd.f32 %v1959_v33, %v300_v45 }
  0xe0   :  { %v2107_v48 = vpop.f32.mrb[4].mxu0 }
  0xe1   :  { %v2121_v49 = vpop.f32.mrb[4].mxu1  ;;  %v2737_v50 = vadd.f32 %v2107_v48, %v1949_v32  ;;  %v162_v51 = vpop.f32.mrb[5].mxu0 }
  0xe2   :  { %v2739_v52 = vadd.f32 %v2121_v49, %v1959_v33  ;;  %v310_v53 = vpop.f32.mrb[5].mxu1  ;;  %v2741_v54 = vadd.f32 %v1949_v32, %v162_v51 }
  0xe3   :  { %v2743_v55 = vadd.f32 %v1959_v33, %v310_v53 }
  0xe4   :  { %v2110_v56 = vpop.f32.mrb[6].mxu0 }
  0xe5   :  { %v2124_v57 = vpop.f32.mrb[6].mxu1  ;;  %v2745_v58 = vadd.f32 %v2110_v56, %v1949_v32  ;;  %v172_v59 = vpop.f32.mrb[7].mxu0 }
  0xe6   :  { %v2747_v60 = vadd.f32 %v2124_v57, %v1959_v33  ;;  %v320_v61 = vpop.f32.mrb[7].mxu1  ;;  %v2749_v62 = vadd.f32 %v1949_v32, %v172_v59 }
  0xe7   :  { %v2751_v63 = vadd.f32 %v1959_v33, %v320_v61 }
  0xe8   :  { %v407_v2 = vpop.f32.mrb[8].mxu0 }
  0xe9   :  { %v502_v3 = vpop.f32.mrb[8].mxu1  ;;  %v411_v4 = vadd.f32 %v407_v2, %v143_v0  ;;  %v2135_v6 = vpop.f32.mrb[9].mxu0 }
  0xea   :  { %v506_v5 = vadd.f32 %v502_v3, %v291_v1  ;;  %v2146_v7 = vpop.f32.mrb[9].mxu1 }
  0xeb   :  { %2402 = vtanh.f32 %v411_v4  ;;  %v1969_v11 = vmul.f32 -1.442695, %v411_v4 }
  0xec   :  { %2404 = vtanh.f32 %v506_v5  ;;  %v1970_v12 = vmul.f32 -1.442695, %v506_v5 }
  0xed   :  { %2406 = vpow2.f32 %v1969_v11 }
  0xee   :  { %2408 = vpow2.f32 %v1970_v12 }
  0xf5   :  { %v2403_v8 = vpop.eup %2402 }
  0xf6   :  { %421 = vrot.lane.b32.xlu0 %v2403_v8, %s2533_s4  ;;  %v2405_v10 = vpop.eup %2404 }
  0xf7   :  { %v2407_v14 = vpop.eup %2406 }
  0xf8   :  { %v415_v15 = vadd.f32 1.0, %v2407_v14  ;;  %v2409_v17 = vpop.eup %2408 }
  0xf9   :  { %v510_v18 = vadd.f32 1.0, %v2409_v17 }
  0xfa   :  { %516 = vrot.lane.b32.xlu0 %v2405_v10, %s2533_s4  ;;  %2410 = vrcp.f32 %v415_v15 }
  0xfb   :  { %2412 = vrcp.f32 %v510_v18 }
 0x104   :  { %v2411_v19 = vpop.eup %2410 }
 0x105   :  { %v2413_v23 = vpop.eup %2412  ;;  %v419_v26 = vmul.f32 0.0, %v2411_v19 }
 0x106   :  { %v514_v30 = vmul.f32 0.0, %v2413_v23 }
 0x168   :  { %v422_v20 = vpop.permute.xlu0 %421 }
 0x169   :  { %v424_v22 = vmul.f32 %v2411_v19, %v422_v20 }
 0x16b   :  { %426 = vrot.lane.b32.xlu1 %v424_v22, %s2534_s7 }
 0x16c   :  { %v517_v24 = vpop.permute.xlu0 %516 }
 0x16d   :  { %v519_v25 = vmul.f32 %v2413_v23, %v517_v24 }
 0x16f   :  { %521 = vrot.lane.b32.xlu1 %v519_v25, %s2534_s7 }
 0x1dd   :  { %v427_v27 = vpop.permute.xlu1 %426 }
 0x1de   :  { %v429_v29 = vadd.f32 %v427_v27, %v419_v26 }
 0x1e0   :  { %2414 = vtanh.f32 %v429_v29 }
 0x1e1   :  { %v522_v32 = vpop.permute.xlu1 %521 }
 0x1e2   :  { %v524_v33 = vadd.f32 %v522_v32, %v514_v30 }
 0x1e4   :  { %2416 = vtanh.f32 %v524_v33 }
 0x1ea   :  { %v2415_v34 = vpop.eup %2414 }
 0x1eb   :  { %432 = vrot.lane.b32.xlu0 %v2415_v34, %s2533_s4 }
 0x1ee   :  { %v2417_v35 = vpop.eup %2416 }
 0x1ef   :  { %527 = vrot.lane.b32.xlu1 %v2417_v35, %s2533_s4 }
 0x25d   :  { %v433_v37 = vpop.permute.xlu0 %432 }
 0x25e   :  { %v435_v39 = vmul.f32 %v2411_v19, %v433_v37 }
 0x260   :  { %532 = vrot.lane.b32.xlu0 %v435_v39, %s2534_s7 }
 0x261   :  { %v528_v40 = vpop.permute.xlu1 %527 }
 0x262   :  { %v530_v41 = vmul.f32 %v2413_v23, %v528_v40 }
 0x264   :  { %632 = vrot.lane.b32.xlu1 %v530_v41, %s2534_s7 }
 0x2d2   :  { %v533_v43 = vpop.permute.xlu0 %532 }
 0x2d3   :  { %2156 = vmatmul.mubr.msk.f32.vlgmr.msra.gmra.mrb[10].mxu0 %vm337_vm3, %v533_v43 }
 0x2d4   :  { %2327 = vmatpush3.bf16.msra.mxu0 %v2618_v9  ;;  %2177 = vmatprep.mubr.msk.f32.mxu0 %vm2531_vm2, %v2532_v31 }
 0x2d5   :  { %2328 = vmatprep.subr.bf16.mxu0 %v2530_v13 }
 0x2d6   :  { %v633_v45 = vpop.permute.xlu1 %632 }
 0x2d7   :  { %2167 = vmatmul.mubr.msk.f32.vlgmr.msra.gmra.mrb[10].mxu1 %vm337_vm3, %v633_v45 }
 0x2d8   :  { %2330 = vmatpush3.bf16.msra.mxu0 %v2657_v21  ;;  %2333 = vmatpush3.bf16.msra.mxu1 %v2639_v16 }
 0x2d9   :  { %2334 = vmatprep.subr.bf16.mxu1 %v2530_v13  ;;  %2188 = vmatprep.mubr.msk.f32.mxu1 %vm2531_vm2, %v2532_v31 }
 0x2da   :  { %2337 = vmatprep.subr.bf16.mxu0 %v2530_v13 }
 0x2dc   :  { %2336 = vmatpush3.bf16.msra.mxu1 %v2683_v28 }
 0x2dd   :  { %2343 = vmatprep.subr.bf16.mxu1 %v2530_v13 }
 0x3a6   :  { %v602_v48 = vpop.f32.mrb[10].mxu0 }
 0x3a7   :  { %v606_v49 = vadd.f32 %v602_v48, %v2725_v36  ;;  %v2157_v51 = vpop.f32.mrb[11].mxu0 }
 0x3a9   :  { %2418 = vtanh.f32 %v606_v49  ;;  %v1972_v0 = vmul.f32 -1.442695, %v606_v49 }
 0x3aa   :  { %v702_v53 = vpop.f32.mrb[10].mxu1 }
 0x3ab   :  { %v706_v56 = vadd.f32 %v702_v53, %v2727_v38  ;;  %v2168_v57 = vpop.f32.mrb[11].mxu1 }
 0x3ad   :  { %2420 = vtanh.f32 %v706_v56  ;;  %v1974_v1 = vmul.f32 -1.442695, %v706_v56 }
 0x3ae   :  { %2422 = vpow2.f32 %v1972_v0 }
 0x3af   :  { %2424 = vpow2.f32 %v1974_v1 }
 0x3b3   :  { %v2419_v59 = vpop.eup %2418 }
 0x3b4   :  { %616 = vrot.lane.b32.xlu0 %v2419_v59, %s2533_s4 }
 0x3b7   :  { %v2421_v61 = vpop.eup %2420 }
 0x3b8   :  { %716 = vrot.lane.b32.xlu1 %v2421_v61, %s2533_s4  ;;  %v2423_v2 = vpop.eup %2422 }
 0x3b9   :  { %v610_v3 = vadd.f32 1.0, %v2423_v2  ;;  %v2425_v36 = vpop.eup %2424 }
 0x3ba   :  { %v710_v4 = vadd.f32 1.0, %v2425_v36 }
 0x3bb   :  { %2426 = vrcp.f32 %v610_v3 }
 0x3bc   :  { %2428 = vrcp.f32 %v710_v4 }
 0x3c5   :  { %v2427_v5 = vpop.eup %2426 }
 0x3c6   :  { %v2429_v7 = vpop.eup %2428  ;;  %v614_v11 = vmul.f32 %v2427_v5, %v429_v29 }
 0x3c7   :  { %v714_v15 = vmul.f32 %v2429_v7, %v524_v33 }
 0x426   :  { %v617_v38 = vpop.permute.xlu0 %616 }
 0x427   :  { %v619_v6 = vmul.f32 %v2427_v5, %v617_v38 }
 0x429   :  { %621 = vrot.lane.b32.xlu0 %v619_v6, %s2534_s7 }
 0x42a   :  { %v717_v8 = vpop.permute.xlu1 %716 }
 0x42b   :  { %v719_v10 = vmul.f32 %v2429_v7, %v717_v8 }
 0x42d   :  { %721 = vrot.lane.b32.xlu1 %v719_v10, %s2534_s7 }
 0x49b   :  { %v622_v12 = vpop.permute.xlu0 %621 }
 0x49c   :  { %v624_v14 = vadd.f32 %v622_v12, %v614_v11 }
 0x49e   :  { %2430 = vtanh.f32 %v624_v14 }
 0x49f   :  { %v722_v17 = vpop.permute.xlu1 %721 }
 0x4a0   :  { %v724_v18 = vadd.f32 %v722_v17, %v714_v15 }
 0x4a2   :  { %2432 = vtanh.f32 %v724_v18 }
 0x4a8   :  { %v2431_v19 = vpop.eup %2430 }
 0x4a9   :  { %627 = vrot.lane.b32.xlu0 %v2431_v19, %s2533_s4 }
 0x4ac   :  { %v2433_v20 = vpop.eup %2432 }
 0x4ad   :  { %727 = vrot.lane.b32.xlu1 %v2433_v20, %s2533_s4 }
 0x51b   :  { %v628_v22 = vpop.permute.xlu0 %627 }
 0x51c   :  { %v630_v23 = vmul.f32 %v2427_v5, %v628_v22 }
 0x51e   :  { %732 = vrot.lane.b32.xlu0 %v630_v23, %s2534_s7 }
 0x51f   :  { %v728_v24 = vpop.permute.xlu1 %727 }
 0x520   :  { %v730_v25 = vmul.f32 %v2429_v7, %v728_v24 }
 0x522   :  { %832 = vrot.lane.b32.xlu1 %v730_v25, %s2534_s7 }
 0x590   :  { %v733_v26 = vpop.permute.xlu0 %732 }
 0x591   :  { %2178 = vmatmul.mubr.msk.f32.vlgmr.msra.gmra.mrb[12].mxu0 %vm337_vm3, %v733_v26 }
 0x592   :  { %2339 = vmatpush3.bf16.msra.mxu0 %v2618_v9  ;;  %2199 = vmatprep.mubr.msk.f32.mxu0 %vm2531_vm2, %v2532_v31 }
 0x593   :  { %2340 = vmatprep.subr.bf16.mxu0 %v2530_v13 }
 0x594   :  { %v833_v27 = vpop.permute.xlu1 %832 }
 0x595   :  { %2189 = vmatmul.mubr.msk.f32.vlgmr.msra.gmra.mrb[12].mxu1 %vm337_vm3, %v833_v27 }
 0x596   :  { %2342 = vmatpush3.bf16.msra.mxu0 %v2657_v21  ;;  %2345 = vmatpush3.bf16.msra.mxu1 %v2639_v16 }
 0x597   :  { %2346 = vmatprep.subr.bf16.mxu1 %v2530_v13  ;;  %2210 = vmatprep.mubr.msk.f32.mxu1 %vm2531_vm2, %v2532_v31 }
 0x598   :  { %2349 = vmatprep.subr.bf16.mxu0 %v2530_v13 }
 0x59a   :  { %2348 = vmatpush3.bf16.msra.mxu1 %v2683_v28 }
 0x59b   :  { %2355 = vmatprep.subr.bf16.mxu1 %v2530_v13 }
 0x664   :  { %v802_v29 = vpop.f32.mrb[12].mxu0 }
 0x665   :  { %v806_v30 = vadd.f32 %v802_v29, %v2733_v46  ;;  %v2179_v32 = vpop.f32.mrb[13].mxu0 }
 0x667   :  { %2434 = vtanh.f32 %v806_v30  ;;  %v1976_v40 = vmul.f32 -1.442695, %v806_v30 }
 0x668   :  { %v902_v33 = vpop.f32.mrb[12].mxu1 }
 0x669   :  { %v906_v34 = vadd.f32 %v902_v33, %v2735_v47  ;;  %v2190_v35 = vpop.f32.mrb[13].mxu1 }
 0x66b   :  { %2436 = vtanh.f32 %v906_v34  ;;  %v1978_v41 = vmul.f32 -1.442695, %v906_v34 }
 0x66c   :  { %2438 = vpow2.f32 %v1976_v40 }
 0x66d   :  { %2440 = vpow2.f32 %v1978_v41 }
 0x671   :  { %v2435_v37 = vpop.eup %2434 }
 0x672   :  { %816 = vrot.lane.b32.xlu0 %v2435_v37, %s2533_s4 }
 0x675   :  { %v2437_v39 = vpop.eup %2436 }
 0x676   :  { %916 = vrot.lane.b32.xlu1 %v2437_v39, %s2533_s4  ;;  %v2439_v43 = vpop.eup %2438 }
 0x677   :  { %v810_v45 = vadd.f32 1.0, %v2439_v43  ;;  %v2441_v46 = vpop.eup %2440 }
 0x678   :  { %v910_v48 = vadd.f32 1.0, %v2441_v46 }
 0x679   :  { %2442 = vrcp.f32 %v810_v45 }
 0x67a   :  { %2444 = vrcp.f32 %v910_v48 }
 0x683   :  { %v2443_v49 = vpop.eup %2442 }
 0x684   :  { %v2445_v53 = vpop.eup %2444  ;;  %v814_v59 = vmul.f32 %v2443_v49, %v624_v14 }
 0x685   :  { %v914_v1 = vmul.f32 %v2445_v53, %v724_v18 }
 0x6e4   :  { %v817_v47 = vpop.permute.xlu0 %816 }
 0x6e5   :  { %v819_v51 = vmul.f32 %v2443_v49, %v817_v47 }
 0x6e7   :  { %821 = vrot.lane.b32.xlu0 %v819_v51, %s2534_s7 }
 0x6e8   :  { %v917_v56 = vpop.permute.xlu1 %916 }
 0x6e9   :  { %v919_v57 = vmul.f32 %v2445_v53, %v917_v56 }
 0x6eb   :  { %921 = vrot.lane.b32.xlu1 %v919_v57, %s2534_s7 }
 0x759   :  { %v822_v61 = vpop.permute.xlu0 %821 }
 0x75a   :  { %v824_v0 = vadd.f32 %v822_v61, %v814_v59 }
 0x75c   :  { %2446 = vtanh.f32 %v824_v0 }
 0x75d   :  { %v922_v2 = vpop.permute.xlu1 %921 }
 0x75e   :  { %v924_v3 = vadd.f32 %v922_v2, %v914_v1 }
 0x760   :  { %2448 = vtanh.f32 %v924_v3 }
 0x766   :  { %v2447_v36 = vpop.eup %2446 }
 0x767   :  { %827 = vrot.lane.b32.xlu0 %v2447_v36, %s2533_s4 }
 0x76a   :  { %v2449_v4 = vpop.eup %2448 }
 0x76b   :  { %927 = vrot.lane.b32.xlu1 %v2449_v4, %s2533_s4 }
 0x7d9   :  { %v828_v5 = vpop.permute.xlu0 %827 }
 0x7da   :  { %v830_v38 = vmul.f32 %v2443_v49, %v828_v5 }
 0x7dc   :  { %932 = vrot.lane.b32.xlu0 %v830_v38, %s2534_s7 }
 0x7dd   :  { %v928_v6 = vpop.permute.xlu1 %927 }
 0x7de   :  { %v930_v7 = vmul.f32 %v2445_v53, %v928_v6 }
 0x7e0   :  { %1032 = vrot.lane.b32.xlu1 %v930_v7, %s2534_s7 }
 0x84e   :  { %v933_v8 = vpop.permute.xlu0 %932 }
 0x84f   :  { %2200 = vmatmul.mubr.msk.f32.vlgmr.msra.gmra.mrb[14].mxu0 %vm337_vm3, %v933_v8 }
 0x850   :  { %2351 = vmatpush3.bf16.msra.mxu0 %v2618_v9  ;;  %2221 = vmatprep.mubr.msk.f32.mxu0 %vm2531_vm2, %v2532_v31 }
 0x851   :  { %2352 = vmatprep.subr.bf16.mxu0 %v2530_v13 }
 0x852   :  { %v1033_v10 = vpop.permute.xlu1 %1032 }
 0x853   :  { %2211 = vmatmul.mubr.msk.f32.vlgmr.msra.gmra.mrb[14].mxu1 %vm337_vm3, %v1033_v10 }
 0x854   :  { %2354 = vmatpush3.bf16.msra.mxu0 %v2657_v21  ;;  %2357 = vmatpush3.bf16.msra.mxu1 %v2639_v16 }
 0x855   :  { %2358 = vmatprep.subr.bf16.mxu1 %v2530_v13  ;;  %2232 = vmatprep.mubr.msk.f32.mxu1 %vm2531_vm2, %v2532_v31 }
 0x856   :  { %2361 = vmatprep.subr.bf16.mxu0 %v2530_v13 }
 0x858   :  { %2360 = vmatpush3.bf16.msra.mxu1 %v2683_v28 }
 0x859   :  { %2367 = vmatprep.subr.bf16.mxu1 %v2530_v13 }
 0x922   :  { %v1002_v11 = vpop.f32.mrb[14].mxu0 }
 0x923   :  { %v1006_v12 = vadd.f32 %v1002_v11, %v2729_v42  ;;  %v2201_v14 = vpop.f32.mrb[15].mxu0 }
 0x925   :  { %2450 = vtanh.f32 %v1006_v12  ;;  %v1980_v22 = vmul.f32 -1.442695, %v1006_v12 }
 0x926   :  { %v1102_v15 = vpop.f32.mrb[14].mxu1 }
 0x927   :  { %v1106_v17 = vadd.f32 %v1102_v15, %v2731_v44  ;;  %v2212_v18 = vpop.f32.mrb[15].mxu1 }
 0x929   :  { %2452 = vtanh.f32 %v1106_v17  ;;  %v1982_v23 = vmul.f32 -1.442695, %v1106_v17 }
 0x92a   :  { %2454 = vpow2.f32 %v1980_v22 }
 0x92b   :  { %2456 = vpow2.f32 %v1982_v23 }
 0x92f   :  { %v2451_v19 = vpop.eup %2450 }
 0x930   :  { %1016 = vrot.lane.b32.xlu0 %v2451_v19, %s2533_s4 }
 0x933   :  { %v2453_v20 = vpop.eup %2452 }
 0x934   :  { %1116 = vrot.lane.b32.xlu1 %v2453_v20, %s2533_s4  ;;  %v2455_v24 = vpop.eup %2454 }
 0x935   :  { %v1010_v25 = vadd.f32 1.0, %v2455_v24  ;;  %v2457_v42 = vpop.eup %2456 }
 0x936   :  { %v1110_v26 = vadd.f32 1.0, %v2457_v42 }
 0x937   :  { %2458 = vrcp.f32 %v1010_v25 }
 0x938   :  { %2460 = vrcp.f32 %v1110_v26 }
 0x941   :  { %v2459_v27 = vpop.eup %2458 }
 0x942   :  { %v2461_v30 = vpop.eup %2460  ;;  %v1014_v34 = vmul.f32 %v2459_v27, %v824_v0 }
 0x943   :  { %v1114_v39 = vmul.f32 %v2461_v30, %v924_v3 }
 0x9a2   :  { %v1017_v44 = vpop.permute.xlu0 %1016 }
 0x9a3   :  { %v1019_v29 = vmul.f32 %v2459_v27, %v1017_v44 }
 0x9a5   :  { %1021 = vrot.lane.b32.xlu0 %v1019_v29, %s2534_s7 }
 0x9a6   :  { %v1117_v32 = vpop.permute.xlu1 %1116 }
 0x9a7   :  { %v1119_v33 = vmul.f32 %v2461_v30, %v1117_v32 }
 0x9a9   :  { %1121 = vrot.lane.b32.xlu1 %v1119_v33, %s2534_s7 }
 0xa17   :  { %v1022_v35 = vpop.permute.xlu0 %1021 }
 0xa18   :  { %v1024_v37 = vadd.f32 %v1022_v35, %v1014_v34 }
 0xa1a   :  { %2462 = vtanh.f32 %v1024_v37 }
 0xa1b   :  { %v1122_v40 = vpop.permute.xlu1 %1121 }
 0xa1c   :  { %v1124_v41 = vadd.f32 %v1122_v40, %v1114_v39 }
 0xa1e   :  { %2464 = vtanh.f32 %v1124_v41 }
 0xa24   :  { %v2463_v43 = vpop.eup %2462 }
 0xa25   :  { %1027 = vrot.lane.b32.xlu0 %v2463_v43, %s2533_s4 }
 0xa28   :  { %v2465_v45 = vpop.eup %2464 }
 0xa29   :  { %1127 = vrot.lane.b32.xlu1 %v2465_v45, %s2533_s4 }
 0xa97   :  { %v1028_v46 = vpop.permute.xlu0 %1027 }
 0xa98   :  { %v1030_v48 = vmul.f32 %v2459_v27, %v1028_v46 }
 0xa9a   :  { %1132 = vrot.lane.b32.xlu0 %v1030_v48, %s2534_s7 }
 0xa9b   :  { %v1128_v49 = vpop.permute.xlu1 %1127 }
 0xa9c   :  { %v1130_v47 = vmul.f32 %v2461_v30, %v1128_v49 }
 0xa9e   :  { %1232 = vrot.lane.b32.xlu1 %v1130_v47, %s2534_s7 }
 0xb0c   :  { %v1133_v51 = vpop.permute.xlu0 %1132 }
 0xb0d   :  { %2222 = vmatmul.mubr.msk.f32.vlgmr.msra.gmra.mrb[16].mxu0 %vm337_vm3, %v1133_v51 }
 0xb0e   :  { %2363 = vmatpush3.bf16.msra.mxu0 %v2618_v9  ;;  %2243 = vmatprep.mubr.msk.f32.mxu0 %vm2531_vm2, %v2532_v31 }
 0xb0f   :  { %2364 = vmatprep.subr.bf16.mxu0 %v2530_v13 }
 0xb10   :  { %v1233_v53 = vpop.permute.xlu1 %1232 }
 0xb11   :  { %2233 = vmatmul.mubr.msk.f32.vlgmr.msra.gmra.mrb[16].mxu1 %vm337_vm3, %v1233_v53 }
 0xb12   :  { %2366 = vmatpush3.bf16.msra.mxu0 %v2657_v21  ;;  %2369 = vmatpush3.bf16.msra.mxu1 %v2639_v16 }
 0xb13   :  { %2370 = vmatprep.subr.bf16.mxu1 %v2530_v13  ;;  %2254 = vmatprep.mubr.msk.f32.mxu1 %vm2531_vm2, %v2532_v31 }
 0xb14   :  { %2373 = vmatprep.subr.bf16.mxu0 %v2530_v13 }
 0xb16   :  { %2372 = vmatpush3.bf16.msra.mxu1 %v2683_v28 }
 0xb17   :  { %2379 = vmatprep.subr.bf16.mxu1 %v2530_v13 }
 0xbe0   :  { %v1202_v56 = vpop.f32.mrb[16].mxu0 }
 0xbe1   :  { %v1206_v57 = vadd.f32 %v1202_v56, %v2741_v54  ;;  %v2223_v59 = vpop.f32.mrb[17].mxu0 }
 0xbe3   :  { %2466 = vtanh.f32 %v1206_v57  ;;  %v1984_v36 = vmul.f32 -1.442695, %v1206_v57 }
 0xbe4   :  { %v1302_v61 = vpop.f32.mrb[16].mxu1 }
 0xbe5   :  { %v1306_v0 = vadd.f32 %v1302_v61, %v2743_v55  ;;  %v2234_v1 = vpop.f32.mrb[17].mxu1 }
 0xbe7   :  { %2468 = vtanh.f32 %v1306_v0  ;;  %v1986_v4 = vmul.f32 -1.442695, %v1306_v0 }
 0xbe8   :  { %2470 = vpow2.f32 %v1984_v36 }
 0xbe9   :  { %2472 = vpow2.f32 %v1986_v4 }
 0xbed   :  { %v2467_v2 = vpop.eup %2466 }
 0xbee   :  { %1216 = vrot.lane.b32.xlu0 %v2467_v2, %s2533_s4 }
 0xbf1   :  { %v2469_v3 = vpop.eup %2468 }
 0xbf2   :  { %1316 = vrot.lane.b32.xlu1 %v2469_v3, %s2533_s4  ;;  %v2471_v5 = vpop.eup %2470 }
 0xbf3   :  { %v1210_v38 = vadd.f32 1.0, %v2471_v5  ;;  %v2473_v54 = vpop.eup %2472 }
 0xbf4   :  { %v1310_v6 = vadd.f32 1.0, %v2473_v54 }
 0xbf5   :  { %2474 = vrcp.f32 %v1210_v38 }
 0xbf6   :  { %2476 = vrcp.f32 %v1310_v6 }
 0xbff   :  { %v2475_v7 = vpop.eup %2474 }
 0xc00   :  { %v2477_v10 = vpop.eup %2476  ;;  %v1214_v14 = vmul.f32 %v2475_v7, %v1024_v37 }
 0xc01   :  { %v1314_v18 = vmul.f32 %v2477_v10, %v1124_v41 }
 0xc60   :  { %v1217_v55 = vpop.permute.xlu0 %1216 }
 0xc61   :  { %v1219_v8 = vmul.f32 %v2475_v7, %v1217_v55 }
 0xc63   :  { %1221 = vrot.lane.b32.xlu0 %v1219_v8, %s2534_s7 }
 0xc64   :  { %v1317_v11 = vpop.permute.xlu1 %1316 }
 0xc65   :  { %v1319_v12 = vmul.f32 %v2477_v10, %v1317_v11 }
 0xc67   :  { %1321 = vrot.lane.b32.xlu1 %v1319_v12, %s2534_s7 }
 0xcd5   :  { %v1222_v15 = vpop.permute.xlu0 %1221 }
 0xcd6   :  { %v1224_v17 = vadd.f32 %v1222_v15, %v1214_v14 }
 0xcd8   :  { %2478 = vtanh.f32 %v1224_v17 }
 0xcd9   :  { %v1322_v19 = vpop.permute.xlu1 %1321 }
 0xcda   :  { %v1324_v20 = vadd.f32 %v1322_v19, %v1314_v18 }
 0xcdc   :  { %2480 = vtanh.f32 %v1324_v20 }
 0xce2   :  { %v2479_v22 = vpop.eup %2478 }
 0xce3   :  { %1227 = vrot.lane.b32.xlu0 %v2479_v22, %s2533_s4 }
 0xce6   :  { %v2481_v23 = vpop.eup %2480 }
 0xce7   :  { %1327 = vrot.lane.b32.xlu1 %v2481_v23, %s2533_s4 }
 0xd55   :  { %v1228_v24 = vpop.permute.xlu0 %1227 }
 0xd56   :  { %v1230_v25 = vmul.f32 %v2475_v7, %v1228_v24 }
 0xd58   :  { %1332 = vrot.lane.b32.xlu0 %v1230_v25, %s2534_s7 }
 0xd59   :  { %v1328_v42 = vpop.permute.xlu1 %1327 }
 0xd5a   :  { %v1330_v26 = vmul.f32 %v2477_v10, %v1328_v42 }
 0xd5c   :  { %1432 = vrot.lane.b32.xlu1 %v1330_v26, %s2534_s7 }
 0xdca   :  { %v1333_v27 = vpop.permute.xlu0 %1332 }
 0xdcb   :  { %2244 = vmatmul.mubr.msk.f32.vlgmr.msra.gmra.mrb[18].mxu0 %vm337_vm3, %v1333_v27 }
 0xdcc   :  { %2375 = vmatpush3.bf16.msra.mxu0 %v2618_v9  ;;  %2265 = vmatprep.mubr.msk.f32.mxu0 %vm2531_vm2, %v2532_v31 }
 0xdcd   :  { %2376 = vmatprep.subr.bf16.mxu0 %v2530_v13 }
 0xdce   :  { %v1433_v44 = vpop.permute.xlu1 %1432 }
 0xdcf   :  { %2255 = vmatmul.mubr.msk.f32.vlgmr.msra.gmra.mrb[18].mxu1 %vm337_vm3, %v1433_v44 }
 0xdd0   :  { %2378 = vmatpush3.bf16.msra.mxu0 %v2657_v21  ;;  %2381 = vmatpush3.bf16.msra.mxu1 %v2639_v16 }
 0xdd1   :  { %2382 = vmatprep.subr.bf16.mxu1 %v2530_v13  ;;  %2276 = vmatprep.mubr.msk.f32.mxu1 %vm2531_vm2, %v2532_v31 }
 0xdd2   :  { %2385 = vmatprep.subr.bf16.mxu0 %v2530_v13 }
 0xdd4   :  { %2384 = vmatpush3.bf16.msra.mxu1 %v2683_v28 }
 0xdd5   :  { %2391 = vmatprep.subr.bf16.mxu1 %v2530_v13 }
 0xe9e   :  { %v1402_v29 = vpop.f32.mrb[18].mxu0 }
 0xe9f   :  { %v1406_v30 = vadd.f32 %v1402_v29, %v2737_v50  ;;  %v2245_v32 = vpop.f32.mrb[19].mxu0 }
 0xea1   :  { %2482 = vtanh.f32 %v1406_v30  ;;  %v1988_v40 = vmul.f32 -1.442695, %v1406_v30 }
 0xea2   :  { %v1502_v33 = vpop.f32.mrb[18].mxu1 }
 0xea3   :  { %v1506_v34 = vadd.f32 %v1502_v33, %v2739_v52  ;;  %v2256_v35 = vpop.f32.mrb[19].mxu1 }
 0xea5   :  { %2484 = vtanh.f32 %v1506_v34  ;;  %v1990_v41 = vmul.f32 -1.442695, %v1506_v34 }
 0xea6   :  { %2486 = vpow2.f32 %v1988_v40 }
 0xea7   :  { %2488 = vpow2.f32 %v1990_v41 }
 0xeab   :  { %v2483_v37 = vpop.eup %2482 }
 0xeac   :  { %1416 = vrot.lane.b32.xlu0 %v2483_v37, %s2533_s4 }
 0xeaf   :  { %v2485_v39 = vpop.eup %2484 }
 0xeb0   :  { %1516 = vrot.lane.b32.xlu1 %v2485_v39, %s2533_s4  ;;  %v2487_v43 = vpop.eup %2486 }
 0xeb1   :  { %v1410_v45 = vadd.f32 1.0, %v2487_v43  ;;  %v2489_v50 = vpop.eup %2488 }
 0xeb2   :  { %v1510_v46 = vadd.f32 1.0, %v2489_v50 }
 0xeb3   :  { %2490 = vrcp.f32 %v1410_v45 }
 0xeb4   :  { %2492 = vrcp.f32 %v1510_v46 }
 0xebd   :  { %v2491_v48 = vpop.eup %2490 }
 0xebe   :  { %v2493_v47 = vpop.eup %2492  ;;  %v1414_v56 = vmul.f32 %v2491_v48, %v1224_v17 }
 0xebf   :  { %v1514_v61 = vmul.f32 %v2493_v47, %v1324_v20 }
 0xf1e   :  { %v1417_v52 = vpop.permute.xlu0 %1416 }
 0xf1f   :  { %v1419_v49 = vmul.f32 %v2491_v48, %v1417_v52 }
 0xf21   :  { %1421 = vrot.lane.b32.xlu0 %v1419_v49, %s2534_s7 }
 0xf22   :  { %v1517_v51 = vpop.permute.xlu1 %1516 }
 0xf23   :  { %v1519_v53 = vmul.f32 %v2493_v47, %v1517_v51 }
 0xf25   :  { %1521 = vrot.lane.b32.xlu1 %v1519_v53, %s2534_s7 }
 0xf93   :  { %v1422_v57 = vpop.permute.xlu0 %1421 }
 0xf94   :  { %v1424_v59 = vadd.f32 %v1422_v57, %v1414_v56 }
 0xf96   :  { %2494 = vtanh.f32 %v1424_v59 }
 0xf97   :  { %v1522_v0 = vpop.permute.xlu1 %1521 }
 0xf98   :  { %v1524_v1 = vadd.f32 %v1522_v0, %v1514_v61 }
 0xf9a   :  { %2496 = vtanh.f32 %v1524_v1 }
 0xfa0   :  { %v2495_v2 = vpop.eup %2494 }
 0xfa1   :  { %1427 = vrot.lane.b32.xlu0 %v2495_v2, %s2533_s4 }
 0xfa4   :  { %v2497_v3 = vpop.eup %2496 }
 0xfa5   :  { %1527 = vrot.lane.b32.xlu1 %v2497_v3, %s2533_s4 }
0x1013   :  { %v1428_v36 = vpop.permute.xlu0 %1427 }
0x1014   :  { %v1430_v4 = vmul.f32 %v2491_v48, %v1428_v36 }
0x1016   :  { %1532 = vrot.lane.b32.xlu0 %v1430_v4, %s2534_s7 }
0x1017   :  { %v1528_v5 = vpop.permute.xlu1 %1527 }
0x1018   :  { %v1530_v38 = vmul.f32 %v2493_v47, %v1528_v5 }
0x101a   :  { %1632 = vrot.lane.b32.xlu1 %v1530_v38, %s2534_s7 }
0x1088   :  { %v1533_v54 = vpop.permute.xlu0 %1532 }
0x1089   :  { %2266 = vmatmul.mubr.msk.f32.vlgmr.msra.gmra.mrb[20].mxu0 %vm337_vm3, %v1533_v54 }
0x108a   :  { %2387 = vmatpush3.bf16.msra.mxu0 %v2618_v9  ;;  %2287 = vmatprep.mubr.msk.f32.mxu0 %vm2531_vm2, %v2532_v31 }
0x108b   :  { %2388 = vmatprep.subr.bf16.mxu0 %v2530_v13 }
0x108c   :  { %v1633_v6 = vpop.permute.xlu1 %1632 }
0x108d   :  { %2277 = vmatmul.mubr.msk.f32.vlgmr.msra.gmra.mrb[20].mxu1 %vm337_vm3, %v1633_v6 }
0x108e   :  { %2390 = vmatpush3.bf16.msra.mxu0 %v2657_v21  ;;  %2393 = vmatpush3.bf16.msra.mxu1 %v2639_v16 }
0x108f   :  { %2394 = vmatprep.subr.bf16.mxu1 %v2530_v13  ;;  %2298 = vmatprep.mubr.msk.f32.mxu1 %vm2531_vm2, %v2532_v31 }
0x1092   :  { %2396 = vmatpush3.bf16.msra.mxu1 %v2683_v28 }
0x115c   :  { %v1602_v9 = vpop.f32.mrb[20].mxu0 }
0x115d   :  { %v1606_v7 = vadd.f32 %v1602_v9, %v2749_v62  ;;  %v2267_v55 = vpop.f32.mrb[21].mxu0 }
0x115f   :  { %2498 = vtanh.f32 %v1606_v7  ;;  %v1992_v13 = vmul.f32 -1.442695, %v1606_v7 }
0x1160   :  { %v1702_v8 = vpop.f32.mrb[20].mxu1 }
0x1161   :  { %v1706_v10 = vadd.f32 %v1702_v8, %v2751_v63  ;;  %v2278_v11 = vpop.f32.mrb[21].mxu1 }
0x1163   :  { %2500 = vtanh.f32 %v1706_v10  ;;  %v1994_v31 = vmul.f32 -1.442695, %v1706_v10 }
0x1164   :  { %2502 = vpow2.f32 %v1992_v13 }
0x1165   :  { %2504 = vpow2.f32 %v1994_v31 }
0x1169   :  { %v2499_v21 = vpop.eup %2498 }
0x116a   :  { %1616 = vrot.lane.b32.xlu0 %v2499_v21, %s2533_s4 }
0x116d   :  { %v2501_v16 = vpop.eup %2500 }
0x116e   :  { %1716 = vrot.lane.b32.xlu1 %v2501_v16, %s2533_s4  ;;  %v2503_v28 = vpop.eup %2502 }
0x116f   :  { %v1610_v12 = vadd.f32 1.0, %v2503_v28  ;;  %v2505_v62 = vpop.eup %2504 }
0x1170   :  { %v1710_v14 = vadd.f32 1.0, %v2505_v62 }
0x1171   :  { %2506 = vrcp.f32 %v1610_v12 }
0x1172   :  { %2508 = vrcp.f32 %v1710_v14 }
0x117b   :  { %v2507_v15 = vpop.eup %2506 }
0x117c   :  { %v2509_v18 = vpop.eup %2508  ;;  %v1614_v22 = vmul.f32 %v2507_v15, %v1424_v59 }
0x117d   :  { %v1714_v25 = vmul.f32 %v2509_v18, %v1524_v1 }
0x11dc   :  { %v1617_v63 = vpop.permute.xlu0 %1616 }
0x11dd   :  { %v1619_v17 = vmul.f32 %v2507_v15, %v1617_v63 }
0x11df   :  { %1621 = vrot.lane.b32.xlu0 %v1619_v17, %s2534_s7 }
0x11e0   :  { %v1717_v19 = vpop.permute.xlu1 %1716 }
0x11e1   :  { %v1719_v20 = vmul.f32 %v2509_v18, %v1717_v19 }
0x11e3   :  { %1721 = vrot.lane.b32.xlu1 %v1719_v20, %s2534_s7 }
0x1251   :  { %v1622_v23 = vpop.permute.xlu0 %1621 }
0x1252   :  { %v1624_v24 = vadd.f32 %v1622_v23, %v1614_v22 }
0x1254   :  { %2510 = vtanh.f32 %v1624_v24 }
0x1255   :  { %v1722_v42 = vpop.permute.xlu1 %1721 }
0x1256   :  { %v1724_v26 = vadd.f32 %v1722_v42, %v1714_v25 }
0x1258   :  { %2512 = vtanh.f32 %v1724_v26 }
0x125e   :  { %v2511_v27 = vpop.eup %2510 }
0x125f   :  { %1627 = vrot.lane.b32.xlu0 %v2511_v27, %s2533_s4 }
0x1262   :  { %v2513_v44 = vpop.eup %2512 }
0x1263   :  { %1727 = vrot.lane.b32.xlu1 %v2513_v44, %s2533_s4 }
0x12d1   :  { %v1628_v29 = vpop.permute.xlu0 %1627 }
0x12d2   :  { %v1630_v30 = vmul.f32 %v2507_v15, %v1628_v29 }
0x12d4   :  { %1732 = vrot.lane.b32.xlu0 %v1630_v30, %s2534_s7 }
0x12d5   :  { %v1728_v32 = vpop.permute.xlu1 %1727 }
0x12d6   :  { %v1730_v33 = vmul.f32 %v2509_v18, %v1728_v32 }
0x12d8   :  { %1832 = vrot.lane.b32.xlu1 %v1730_v33, %s2534_s7 }
0x1346   :  { %v1733_v34 = vpop.permute.xlu0 %1732 }
0x1347   :  { %2288 = vmatmul.mubr.msk.f32.vlgmr.msra.gmra.mrb[22].mxu0 %vm337_vm3, %v1733_v34 }
0x134a   :  { %v1833_v35 = vpop.permute.xlu1 %1832 }
0x134b   :  { %2299 = vmatmul.mubr.msk.f32.vlgmr.msra.gmra.mrb[22].mxu1 %vm337_vm3, %v1833_v35 }
0x141a   :  { %v1802_v37 = vpop.f32.mrb[22].mxu0 }
0x141b   :  { %v1806_v39 = vadd.f32 %v1802_v37, %v2745_v58  ;;  %v2289_v40 = vpop.f32.mrb[23].mxu0 }
0x141d   :  { %2514 = vtanh.f32 %v1806_v39  ;;  %v1996_v48 = vmul.f32 -1.442695, %v1806_v39 }
0x141e   :  { %v1902_v41 = vpop.f32.mrb[22].mxu1 }
0x141f   :  { %v1906_v43 = vadd.f32 %v1902_v41, %v2747_v60  ;;  %v2300_v45 = vpop.f32.mrb[23].mxu1 }
0x1421   :  { %2516 = vtanh.f32 %v1906_v43  ;;  %v1998_v52 = vmul.f32 -1.442695, %v1906_v43 }
0x1422   :  { %2518 = vpow2.f32 %v1996_v48 }
0x1423   :  { %2520 = vpow2.f32 %v1998_v52 }
0x1427   :  { %v2515_v50 = vpop.eup %2514 }
0x1428   :  { %1816 = vrot.lane.b32.xlu0 %v2515_v50, %s2533_s4 }
0x142b   :  { %v2517_v46 = vpop.eup %2516 }
0x142c   :  { %1916 = vrot.lane.b32.xlu1 %v2517_v46, %s2533_s4  ;;  %v2519_v49 = vpop.eup %2518 }
0x142d   :  { %v1810_v47 = vadd.f32 1.0, %v2519_v49  ;;  %v2521_v58 = vpop.eup %2520 }
0x142e   :  { %v1910_v51 = vadd.f32 1.0, %v2521_v58 }
0x142f   :  { %2522 = vrcp.f32 %v1810_v47 }
0x1430   :  { %2524 = vrcp.f32 %v1910_v51 }
0x1439   :  { %v2523_v53 = vpop.eup %2522 }
0x143a   :  { %v2525_v57 = vpop.eup %2524  ;;  %v1814_v0 = vmul.f32 %v2523_v53, %v1624_v24 }
0x143b   :  { %v1914_v3 = vmul.f32 %v2525_v57, %v1724_v26 }
0x149a   :  { %v1817_v60 = vpop.permute.xlu0 %1816 }
0x149b   :  { %v1819_v56 = vmul.f32 %v2523_v53, %v1817_v60 }
0x149d   :  { %1821 = vrot.lane.b32.xlu0 %v1819_v56, %s2534_s7 }
0x149e   :  { %v1917_v59 = vpop.permute.xlu1 %1916 }
0x149f   :  { %v1919_v61 = vmul.f32 %v2525_v57, %v1917_v59 }
0x14a1   :  { %1921 = vrot.lane.b32.xlu1 %v1919_v61, %s2534_s7 }
0x150f   :  { %v1822_v1 = vpop.permute.xlu0 %1821 }
0x1510   :  { %v1824_v2 = vadd.f32 %v1822_v1, %v1814_v0 }
0x1512   :  { %2526 = vtanh.f32 %v1824_v2 }
0x1513   :  { %v1922_v36 = vpop.permute.xlu1 %1921 }
0x1514   :  { %v1924_v4 = vadd.f32 %v1922_v36, %v1914_v3 }
0x1516   :  { %2528 = vtanh.f32 %v1924_v4 }
0x151c   :  { %v2527_v5 = vpop.eup %2526 }
0x151d   :  { %1827 = vrot.lane.b32.xlu0 %v2527_v5, %s2533_s4 }
0x1520   :  { %v2529_v38 = vpop.eup %2528 }
0x1521   :  { %1927 = vrot.lane.b32.xlu1 %v2529_v38, %s2533_s4 }
0x158f   :  { %v1828_v54 = vpop.permute.xlu0 %1827 }
0x1590   :  { %v1830_v6 = vmul.f32 %v2523_v53, %v1828_v54 }
0x1592   :  { %1932 = vrot.lane.b32.xlu0 %v1830_v6, %s2534_s7 }
0x1593   :  { %v1928_v9 = vpop.permute.xlu1 %1927 }
0x1594   :  { %v1930_v7 = vmul.f32 %v2525_v57, %v1928_v9 }
0x1596   :  { %1937 = vrot.lane.b32.xlu1 %v1930_v7, %s2534_s7 }
0x1604   :  { %v1933_v55 = vpop.permute.xlu0 %1932 }
0x1605   :  { %1935 = vst.msk [vmem:[%s2931_s8] sm:$0xff] %vm337_vm3, %v1933_v55 }
0x1608   :  { %v1938_v8 = vpop.permute.xlu1 %1937 }
0x1609   :  { %1940 = vst.msk [vmem:[%s2932_s9] sm:$0xff] %vm337_vm3, %v1938_v8 }

</bundles_post_ra>
